<compile_context>
chip_gen: v7x
topology: tpu7x:2x2x1
jax: 0.10.0
libtpu: 0.0.40
codegen_flags: <defaults>
</compile_context>

<pallas_src>
import functools

import jax
import jax.numpy as jnp
from jax.experimental import pallas as pl
from jax.experimental.pallas import tpu as pltpu


def _sigmoid(x):
    # 0.5 * (tanh(x/2) + 1): exact logistic, one EUP op, no exp() overflow for the
    # -100 padded timesteps.
    return 0.5 * (jnp.tanh(0.5 * x) + 1.0)


def _decoder_kernel(
    # inputs
    g0_ref,             # (T_blk, Bp, 4H) f32  precomputed cell-0 x-side gates (+const)
    h0_ref,             # (Bp, H)  f32   initial hidden/cell state (learned param, bcast)
    whh0_ref,           # (H, 4H)  bf16
    w1_ref, b1_ref,     # (2H, 4H) bf16, (1, 4H) f32   fused [wih1; whh1]
    w2_ref, b2_ref,     # (2H, 4H) bf16, (1, 4H) f32   fused [wih2; whh2]
    wps_ref,            # (H, Vpad) bf16  projection folded into scoring (query half)
    scoreconst_ref,     # (Bp, Vpad) f32  ctx-half of scoring + biases (time-invariant)
    # outputs
    out_ref,            # (T_blk, Bp, Vpad) f32
    # scratch (persists across grid blocks)
    h3hist_s,           # (T_blk, Bp, H) f32
    h1_s, c1_s, h2_s, c2_s, h3_s, c3_s,   # (Bp, H) f32 each
    *, hidden_size, t_blk, unroll,
):
    H = hidden_size

    @pl.when(pl.program_id(0) == 0)
    def _init():
        h0 = h0_ref[...]
        for s in (h1_s, c1_s, h2_s, c2_s, h3_s, c3_s):
            s[...] = h0

    # Hoist all loop-invariant weight loads out of the recurrence.
    whh0 = whh0_ref[...]
    w1 = w1_ref[...]
    b1 = b1_ref[...]
    w2 = w2_ref[...]
    b2 = b2_ref[...]

    def lstm_gates(gates, c_prev):
        # Full-vreg nonlinearities, then static lane slices (PyTorch order i,f,g,o).
        sig = _sigmoid(gates)
        tnh = jnp.tanh(gates)
        i_g = sig[:, 0 * H:1 * H]
        f_g = sig[:, 1 * H:2 * H]
        g_g = tnh[:, 2 * H:3 * H]
        o_g = sig[:, 3 * H:4 * H]
        c_new = f_g * c_prev + i_g * g_g
        h_new = o_g * jnp.tanh(c_new)
        return h_new, c_new

    def step(t, carry):
        h1, c1, h2, c2, h3, c3 = carry
        # cell 0: x-side gates + ctx contribution + biases precomputed in g0.
        gates0 = g0_ref[t] + jnp.dot(h1.astype(whh0.dtype), whh0,
                                     preferred_element_type=jnp.float32)
        h1, c1 = lstm_gates(gates0, c1)
        # cell 1: single fused contraction over concat([h1_new, h2_prev]).
        x1 = jnp.concatenate([h1, h2], axis=-1).astype(w1.dtype)
        gates1 = jnp.dot(x1, w1, preferred_element_type=jnp.float32) + b1
        h2, c2 = lstm_gates(gates1, c2)
        # cell 2
        x2 = jnp.concatenate([h2, h3], axis=-1).astype(w2.dtype)
        gates2 = jnp.dot(x2, w2, preferred_element_type=jnp.float32) + b2
        h3, c3 = lstm_gates(gates2, c3)
        # Only h3 leaves the serial chain; scoring happens in the block epilogue.
        h3hist_s[t] = h3
        return (h1, c1, h2, c2, h3, c3)

    carry = (h1_s[...], c1_s[...], h2_s[...], c2_s[...], h3_s[...], c3_s[...])
    carry = jax.lax.fori_loop(0, t_blk, step, carry, unroll=unroll)
    h1, c1, h2, c2, h3, c3 = carry
    h1_s[...] = h1
    c1_s[...] = c1
    h2_s[...] = h2
    c2_s[...] = c2
    h3_s[...] = h3
    c3_s[...] = c3

    # Block epilogue: scoring off the recurrence's critical path.  Independent
    # per-t matmuls + lane-dense (Bp, Vpad) stores; unrolled so the scheduler
    # overlaps MXU pushes with stores.
    wps = wps_ref[...]
    score_c = scoreconst_ref[...]

    def score_step(t, _):
        h3t = h3hist_s[t]
        s = jnp.dot(h3t.astype(wps.dtype), wps,
                    preferred_element_type=jnp.float32) + score_c
        out_ref[t] = s.astype(out_ref.dtype)
        return 0

    jax.lax.fori_loop(0, t_blk, score_step, 0, unroll=unroll)


def decoder_forward_pallas(padded_embeddings_btE, params,
                           *, hidden_size, key_size, vocab_size, t_block=None):
    """padded_embeddings_btE: (B, T, E) float32 (already -100 padded)."""
    B, T, E = padded_embeddings_btE.shape
    H, K, V = hidden_size, key_size, vocab_size
    FourH = 4 * H
    Vpad = ((V + 127) // 128) * 128        # lane-dense scoring / output
    Bpad = ((B + 7) // 8) * 8              # sublane-dense batch tiles / stores
    f32, bf16 = jnp.float32, jnp.bfloat16

    # ---- weight prep (pre-transposed so the kernel computes x @ W) ----
    wih0 = params["wih0"].astype(f32)      # (4H, E+K)
    wih0_x = wih0[:, :E].T                 # (E, 4H)   embedding half (cat order: emb, ctx)
    wih0_c = wih0[:, E:].T                 # (K, 4H)   ctx half
    whh0 = params["whh0"].astype(f32).T    # (H, 4H)
    wih1 = params["wih1"].astype(f32).T
    whh1 = params["whh1"].astype(f32).T
    wih2 = params["wih2"].astype(f32).T
    whh2 = params["whh2"].astype(f32).T
    wproj = params["wproj"].astype(f32).T  # (H, K)
    bproj = params["bproj"].astype(f32).reshape(1, K)
    wscore = params["wscore"].astype(f32)  # (V, 2K)
    wscore_q = wscore[:, :K].T             # (K, V)    query half (cat order: query, ctx)
    wscore_c = wscore[:, K:].T             # (K, V)    ctx half
    bscore = params["bscore"].astype(f32).reshape(1, V)

    b0 = (params["bih0"] + params["bhh0"]).astype(f32).reshape(1, FourH)
    b1 = (params["bih1"] + params["bhh1"]).astype(f32).reshape(1, FourH)
    b2 = (params["bih2"] + params["bhh2"]).astype(f32).reshape(1, FourH)

    # Fused per-cell weights: gates = concat([h_in, h_prev]) @ W + b
    w1 = jnp.concatenate([wih1, whh1], axis=0)          # (2H, 4H)
    w2 = jnp.concatenate([wih2, whh2], axis=0)          # (2H, 4H)

    # Fold projection into the scoring query-half: scores = h3 @ wps + score_const.
    wscore_q_p = jnp.pad(wscore_q, ((0, 0), (0, Vpad - V)))      # (K, Vpad)
    wps = jnp.dot(wproj, wscore_q_p)                             # (H, Vpad)

    # ---- time-invariant terms (parameter-only, computed once) ----
    h0 = jnp.broadcast_to(params["h"].astype(f32), (Bpad, H))    # (Bpad, H)
    ctx = jnp.dot(h0, wproj) + bproj                             # (Bpad, K) = projection(h)
    g0_const = jnp.dot(ctx, wih0_c) + b0                         # (Bpad, 4H)
    score_const = jnp.dot(ctx, wscore_c) + bscore                # (Bpad, V)
    score_const = jnp.pad(score_const, ((0, 0), (0, Vpad - V)))
    score_const = score_const + jnp.dot(bproj, wscore_q_p)       # fold bproj through scoring

    # ---- cell-0 input-side gate pre-activations for all T, one batched matmul ----
    emb_tbe = jnp.transpose(padded_embeddings_btE, (1, 0, 2)).astype(f32)  # (T, B, E)
    if Bpad != B:
        emb_tbe = jnp.pad(emb_tbe, ((0, 0), (0, Bpad - B), (0, 0)))
    g0 = jnp.einsum("tbe,ef->tbf", emb_tbe, wih0_x) + g0_const[None]       # (T, Bpad, 4H)

    # ---- T blocking ----
    if t_block is None:
        t_block = T if T <= 256 else 256
    n_blocks = pl.cdiv(T, t_block)
    Tpad = n_blocks * t_block
    if Tpad != T:
        g0 = jnp.pad(g0, ((0, Tpad - T), (0, 0), (0, 0)))
    unroll = True if t_block <= 32 else 8          # always unroll the inner recurrence

    # bf16 weights for the MXU; elementwise/gate math stays f32.
    whh0_b = whh0.astype(bf16)
    w1_b = w1.astype(bf16)
    w2_b = w2.astype(bf16)
    wps_b = wps.astype(bf16)

    def const2d(a):
        return pl.BlockSpec(a.shape, lambda i: (0, 0))

    in_specs = [
        pl.BlockSpec((t_block, Bpad, FourH), lambda i: (i, 0, 0)),   # g0, block i
        const2d(h0),
        const2d(whh0_b),
        const2d(w1_b), const2d(b1),
        const2d(w2_b), const2d(b2),
        const2d(wps_b), const2d(score_const),
    ]
    out_spec = pl.BlockSpec((t_block, Bpad, Vpad), lambda i: (i, 0, 0))

    scratch_shapes = (
        [pltpu.VMEM((t_block, Bpad, H), f32)]                     # h3 history (per block)
        + [pltpu.VMEM((Bpad, H), f32) for _ in range(6)]          # h1,c1,h2,c2,h3,c3
    )

    kernel = functools.partial(_decoder_kernel, hidden_size=H,
                               t_blk=t_block, unroll=unroll)

    out_tbv = pl.pallas_call(
        kernel,
        out_shape=jax.ShapeDtypeStruct((Tpad, Bpad, Vpad), f32),
        grid_spec=pltpu.PrefetchScalarGridSpec(
            num_scalar_prefetch=0,
            grid=(n_blocks,),
            in_specs=in_specs,
            out_specs=out_spec,
            scratch_shapes=scratch_shapes,
        ),
        compiler_params=pltpu.CompilerParams(
            dimension_semantics=("arbitrary",),   # sequential recurrence over T-blocks
        ),
    )(
        g0, h0, whh0_b,
        w1_b, b1,
        w2_b, b2,
        wps_b, score_const,
    )
    out = out_tbv[:T, :B, :V]                      # drop T / batch / vocab padding
    return jnp.transpose(out, (1, 0, 2))           # (B, T, V) — matches PyTorch


def init_params(key, input_size, hidden_size, key_size, vocab_size):
    """Deterministic synthetic parameters matching the PyTorch module's shapes."""
    H, E, K, V = hidden_size, input_size, key_size, vocab_size
    ks = jax.random.split(key, 20)
    u = lambda k, shape, s=0.1: jax.random.uniform(k, shape, jnp.float32, -s, s)
    params = {
        "embedding": u(ks[0], (V, E)),
        # LSTM cell 0: input = E + K
        "wih0": u(ks[1], (4 * H, E + K)), "whh0": u(ks[2], (4 * H, H)),
        "bih0": u(ks[3], (4 * H,)), "bhh0": u(ks[4], (4 * H,)),
        # LSTM cell 1: input = H
        "wih1": u(ks[5], (4 * H, H)), "whh1": u(ks[6], (4 * H, H)),
        "bih1": u(ks[7], (4 * H,)), "bhh1": u(ks[8], (4 * H,)),
        # LSTM cell 2: input = H
        "wih2": u(ks[9], (4 * H, H)), "whh2": u(ks[10], (4 * H, H)),
        "bih2": u(ks[11], (4 * H,)), "bhh2": u(ks[12], (4 * H,)),
        # projection: Linear(H, K)
        "wproj": u(ks[13], (K, H)), "bproj": u(ks[14], (K,)),
        # scoring: Linear(2K, V)
        "wscore": u(ks[15], (V, 2 * K)), "bscore": u(ks[16], (V,)),
        # learned initial hidden (initialized to zeros, as in the module)
        "h": jnp.zeros((1, H), jnp.float32),
    }
    return params


if __name__ == "__main__":
    # Small shapes consistent with the module.
    input_size, hidden_size, key_size, vocab_size = 32, 32, 16, 34
    B, T = 2, 8

    key = jax.random.PRNGKey(0)
    pkey, lkey = jax.random.split(key)
    params = init_params(pkey, input_size, hidden_size, key_size, vocab_size)

    # Variable-length integer label sequences (the module takes a list of 1-D
    # LongTensors).  Glue: embed, then pad with -100 (matching F.pad(value=-100)).
    label_lengths = [T, 5]  # max length T
    labels_padded = jax.random.randint(lkey, (B, T), 0, vocab_size)      # (B, T)
    embedded = params["embedding"][labels_padded]                        # (B, T, E)
    t_idx = jnp.arange(T)[None, :, None]                                 # (1, T, 1)
    lens = jnp.array(label_lengths)[:, None, None]                       # (B, 1, 1)
    padded_embeddings = jnp.where(t_idx < lens, embedded, -100.0).astype(jnp.float32)

    out = decoder_forward_pallas(
        padded_embeddings, params,
        hidden_size=hidden_size, key_size=key_size, vocab_size=vocab_size,
    )
    out = jax.block_until_ready(out)
    assert out.shape == (B, T, vocab_size)
    assert bool(jnp.all(jnp.isfinite(out)))
    print("KERNEL_OK")
</pallas_src>

<mosaic_0001>
module attributes {stable_mosaic.version = 11 : i64} {
  func.func @_decoder_kernel(%arg0: i32, %arg1: memref<8x8x128xf32, #tpu.memory_space<vmem>>, %arg2: memref<8x32xf32, #tpu.memory_space<vmem>>, %arg3: memref<32x128xbf16, #tpu.memory_space<vmem>>, %arg4: memref<64x128xbf16, #tpu.memory_space<vmem>>, %arg5: memref<1x128xf32, #tpu.memory_space<vmem>>, %arg6: memref<64x128xbf16, #tpu.memory_space<vmem>>, %arg7: memref<1x128xf32, #tpu.memory_space<vmem>>, %arg8: memref<32x128xbf16, #tpu.memory_space<vmem>>, %arg9: memref<8x128xf32, #tpu.memory_space<vmem>>, %arg10: memref<8x8x128xf32, #tpu.memory_space<vmem>>, %arg11: memref<8x8x32xf32, #tpu.memory_space<vmem>>, %arg12: memref<8x32xf32, #tpu.memory_space<vmem>>, %arg13: memref<8x32xf32, #tpu.memory_space<vmem>>, %arg14: memref<8x32xf32, #tpu.memory_space<vmem>>, %arg15: memref<8x32xf32, #tpu.memory_space<vmem>>, %arg16: memref<8x32xf32, #tpu.memory_space<vmem>>, %arg17: memref<8x32xf32, #tpu.memory_space<vmem>>) attributes {dimension_semantics = [#tpu.dimension_semantics<arbitrary>], iteration_bounds = array<i64: 1>, scalar_prefetch = 0 : i64, scratch_operands = 7 : i64, tpu.core_type = #tpu.core_type<tc>, window_params = [{transform_indices = @transform_0, window_bounds = array<i64: 8, 8, 128>}, {pipeline_mode = #tpu.pipeline_mode<synchronous>, transform_indices = @transform_1, window_bounds = array<i64: 8, 32>}, {pipeline_mode = #tpu.pipeline_mode<synchronous>, transform_indices = @transform_2, window_bounds = array<i64: 32, 128>}, {pipeline_mode = #tpu.pipeline_mode<synchronous>, transform_indices = @transform_3, window_bounds = array<i64: 64, 128>}, {pipeline_mode = #tpu.pipeline_mode<synchronous>, transform_indices = @transform_4, window_bounds = array<i64: 1, 128>}, {pipeline_mode = #tpu.pipeline_mode<synchronous>, transform_indices = @transform_5, window_bounds = array<i64: 64, 128>}, {pipeline_mode = #tpu.pipeline_mode<synchronous>, transform_indices = @transform_6, window_bounds = array<i64: 1, 128>}, {pipeline_mode = #tpu.pipeline_mode<synchronous>, transform_indices = @transform_7, window_bounds = array<i64: 32, 128>}, {pipeline_mode = #tpu.pipeline_mode<synchronous>, transform_indices = @transform_8, window_bounds = array<i64: 8, 128>}, {transform_indices = @transform_9, window_bounds = array<i64: 8, 8, 128>}]} {
    %c0_i32 = arith.constant 0 : i32
    %0 = arith.cmpi eq, %arg0, %c0_i32 : i32
    %1 = arith.extui %0 : i1 to i32
    %c0_i32_0 = arith.constant 0 : i32
    %2 = arith.cmpi ne, %1, %c0_i32_0 : i32
    scf.if %2 {
      %c0_215 = arith.constant 0 : index
      %c0_216 = arith.constant 0 : index
      %670 = vector.load %arg2[%c0_215, %c0_216] : memref<8x32xf32, #tpu.memory_space<vmem>>, vector<8x32xf32>
      %c0_217 = arith.constant 0 : index
      %c0_218 = arith.constant 0 : index
      %671 = vector.load %arg12[%c0_217, %c0_218] : memref<8x32xf32, #tpu.memory_space<vmem>>, vector<8x32xf32>
      tpu.vector_store %arg12[%c0_217, %c0_218], %670 {strides = array<i32>} : memref<8x32xf32, #tpu.memory_space<vmem>>, vector<8x32xf32>,
      %c0_219 = arith.constant 0 : index
      %c0_220 = arith.constant 0 : index
      %672 = vector.load %arg13[%c0_219, %c0_220] : memref<8x32xf32, #tpu.memory_space<vmem>>, vector<8x32xf32>
      tpu.vector_store %arg13[%c0_219, %c0_220], %670 {strides = array<i32>} : memref<8x32xf32, #tpu.memory_space<vmem>>, vector<8x32xf32>,
      %c0_221 = arith.constant 0 : index
      %c0_222 = arith.constant 0 : index
      %673 = vector.load %arg14[%c0_221, %c0_222] : memref<8x32xf32, #tpu.memory_space<vmem>>, vector<8x32xf32>
      tpu.vector_store %arg14[%c0_221, %c0_222], %670 {strides = array<i32>} : memref<8x32xf32, #tpu.memory_space<vmem>>, vector<8x32xf32>,
      %c0_223 = arith.constant 0 : index
      %c0_224 = arith.constant 0 : index
      %674 = vector.load %arg15[%c0_223, %c0_224] : memref<8x32xf32, #tpu.memory_space<vmem>>, vector<8x32xf32>
      tpu.vector_store %arg15[%c0_223, %c0_224], %670 {strides = array<i32>} : memref<8x32xf32, #tpu.memory_space<vmem>>, vector<8x32xf32>,
      %c0_225 = arith.constant 0 : index
      %c0_226 = arith.constant 0 : index
      %675 = vector.load %arg16[%c0_225, %c0_226] : memref<8x32xf32, #tpu.memory_space<vmem>>, vector<8x32xf32>
      tpu.vector_store %arg16[%c0_225, %c0_226], %670 {strides = array<i32>} : memref<8x32xf32, #tpu.memory_space<vmem>>, vector<8x32xf32>,
      %c0_227 = arith.constant 0 : index
      %c0_228 = arith.constant 0 : index
      %676 = vector.load %arg17[%c0_227, %c0_228] : memref<8x32xf32, #tpu.memory_space<vmem>>, vector<8x32xf32>
      tpu.vector_store %arg17[%c0_227, %c0_228], %670 {strides = array<i32>} : memref<8x32xf32, #tpu.memory_space<vmem>>, vector<8x32xf32>,
    } else {
    }
    %c0 = arith.constant 0 : index
    %c0_1 = arith.constant 0 : index
    %3 = vector.load %arg3[%c0, %c0_1] : memref<32x128xbf16, #tpu.memory_space<vmem>>, vector<32x128xbf16>
    %c0_2 = arith.constant 0 : index
    %c0_3 = arith.constant 0 : index
    %4 = vector.load %arg4[%c0_2, %c0_3] : memref<64x128xbf16, #tpu.memory_space<vmem>>, vector<64x128xbf16>
    %c0_4 = arith.constant 0 : index
    %c0_5 = arith.constant 0 : index
    %5 = vector.load %arg5[%c0_4, %c0_5] : memref<1x128xf32, #tpu.memory_space<vmem>>, vector<1x128xf32>
    %c0_6 = arith.constant 0 : index
    %c0_7 = arith.constant 0 : index
    %6 = vector.load %arg6[%c0_6, %c0_7] : memref<64x128xbf16, #tpu.memory_space<vmem>>, vector<64x128xbf16>
    %c0_8 = arith.constant 0 : index
    %c0_9 = arith.constant 0 : index
    %7 = vector.load %arg7[%c0_8, %c0_9] : memref<1x128xf32, #tpu.memory_space<vmem>>, vector<1x128xf32>
    %c0_10 = arith.constant 0 : index
    %c0_11 = arith.constant 0 : index
    %8 = vector.load %arg12[%c0_10, %c0_11] : memref<8x32xf32, #tpu.memory_space<vmem>>, vector<8x32xf32>
    %c0_12 = arith.constant 0 : index
    %c0_13 = arith.constant 0 : index
    %9 = vector.load %arg13[%c0_12, %c0_13] : memref<8x32xf32, #tpu.memory_space<vmem>>, vector<8x32xf32>
    %c0_14 = arith.constant 0 : index
    %c0_15 = arith.constant 0 : index
    %10 = vector.load %arg14[%c0_14, %c0_15] : memref<8x32xf32, #tpu.memory_space<vmem>>, vector<8x32xf32>
    %c0_16 = arith.constant 0 : index
    %c0_17 = arith.constant 0 : index
    %11 = vector.load %arg15[%c0_16, %c0_17] : memref<8x32xf32, #tpu.memory_space<vmem>>, vector<8x32xf32>
    %c0_18 = arith.constant 0 : index
    %c0_19 = arith.constant 0 : index
    %12 = vector.load %arg16[%c0_18, %c0_19] : memref<8x32xf32, #tpu.memory_space<vmem>>, vector<8x32xf32>
    %c0_20 = arith.constant 0 : index
    %c0_21 = arith.constant 0 : index
    %13 = vector.load %arg17[%c0_20, %c0_21] : memref<8x32xf32, #tpu.memory_space<vmem>>, vector<8x32xf32>
    %c0_i32_22 = arith.constant 0 : i32
    %14 = arith.index_cast %c0_i32_22 : i32 to index
    %c0_23 = arith.constant 0 : index
    %c0_24 = arith.constant 0 : index
    %15 = vector.load %arg1[%14, %c0_23, %c0_24] : memref<8x8x128xf32, #tpu.memory_space<vmem>>, vector<1x8x128xf32>
    %16 = vector.shape_cast %15 : vector<1x8x128xf32> to vector<8x128xf32>
    %17 = arith.truncf %8 : vector<8x32xf32> to vector<8x32xbf16>
    %cst = arith.constant dense<0.000000e+00> : vector<8x128xf32>
    %18 = tpu.matmul %17, %3, %cst {dimension_numbers = #tpu.dot_dimension_numbers<[1], [0], [0], [1], [0, 0, 1, 1], [], []>} : vector<8x32xbf16>, vector<32x128xbf16>, vector<8x128xf32> -> vector<8x128xf32>
    %19 = arith.addf %16, %18 : vector<8x128xf32>
    %cst_25 = arith.constant 5.000000e-01 : f32
    %20 = vector.broadcast %cst_25 : f32 to vector<8x128xf32>
    %21 = arith.mulf %20, %19 : vector<8x128xf32>
    %22 = math.tanh %21 : vector<8x128xf32>
    %cst_26 = arith.constant 1.000000e+00 : f32
    %23 = vector.broadcast %cst_26 : f32 to vector<8x128xf32>
    %24 = arith.addf %22, %23 : vector<8x128xf32>
    %cst_27 = arith.constant 5.000000e-01 : f32
    %25 = vector.broadcast %cst_27 : f32 to vector<8x128xf32>
    %26 = arith.mulf %25, %24 : vector<8x128xf32>
    %27 = math.tanh %19 : vector<8x128xf32>
    %28 = vector.extract_strided_slice %26 {offsets = [0, 0], sizes = [8, 32], strides = [1, 1]} : vector<8x128xf32> to vector<8x32xf32>
    %29 = vector.extract_strided_slice %26 {offsets = [0, 32], sizes = [8, 32], strides = [1, 1]} : vector<8x128xf32> to vector<8x32xf32>
    %30 = vector.extract_strided_slice %27 {offsets = [0, 64], sizes = [8, 32], strides = [1, 1]} : vector<8x128xf32> to vector<8x32xf32>
    %31 = vector.extract_strided_slice %26 {offsets = [0, 96], sizes = [8, 32], strides = [1, 1]} : vector<8x128xf32> to vector<8x32xf32>
    %32 = arith.mulf %29, %9 : vector<8x32xf32>
    %33 = arith.mulf %28, %30 : vector<8x32xf32>
    %34 = arith.addf %32, %33 : vector<8x32xf32>
    %35 = math.tanh %34 : vector<8x32xf32>
    %36 = arith.mulf %31, %35 : vector<8x32xf32>
    %37 = tpu.concatenate %36, %10 in 1 : vector<8x32xf32>, vector<8x32xf32> -> vector<8x64xf32>
    %38 = arith.truncf %37 : vector<8x64xf32> to vector<8x64xbf16>
    %cst_28 = arith.constant dense<0.000000e+00> : vector<8x128xf32>
    %39 = tpu.matmul %38, %4, %cst_28 {dimension_numbers = #tpu.dot_dimension_numbers<[1], [0], [0], [1], [0, 0, 1, 1], [], []>} : vector<8x64xbf16>, vector<64x128xbf16>, vector<8x128xf32> -> vector<8x128xf32>
    %40 = vector.broadcast %5 : vector<1x128xf32> to vector<8x128xf32>
    %41 = arith.addf %39, %40 : vector<8x128xf32>
    %cst_29 = arith.constant 5.000000e-01 : f32
    %42 = vector.broadcast %cst_29 : f32 to vector<8x128xf32>
    %43 = arith.mulf %42, %41 : vector<8x128xf32>
    %44 = math.tanh %43 : vector<8x128xf32>
    %cst_30 = arith.constant 1.000000e+00 : f32
    %45 = vector.broadcast %cst_30 : f32 to vector<8x128xf32>
    %46 = arith.addf %44, %45 : vector<8x128xf32>
    %cst_31 = arith.constant 5.000000e-01 : f32
    %47 = vector.broadcast %cst_31 : f32 to vector<8x128xf32>
    %48 = arith.mulf %47, %46 : vector<8x128xf32>
    %49 = math.tanh %41 : vector<8x128xf32>
    %50 = vector.extract_strided_slice %48 {offsets = [0, 0], sizes = [8, 32], strides = [1, 1]} : vector<8x128xf32> to vector<8x32xf32>
    %51 = vector.extract_strided_slice %48 {offsets = [0, 32], sizes = [8, 32], strides = [1, 1]} : vector<8x128xf32> to vector<8x32xf32>
    %52 = vector.extract_strided_slice %49 {offsets = [0, 64], sizes = [8, 32], strides = [1, 1]} : vector<8x128xf32> to vector<8x32xf32>
    %53 = vector.extract_strided_slice %48 {offsets = [0, 96], sizes = [8, 32], strides = [1, 1]} : vector<8x128xf32> to vector<8x32xf32>
    %54 = arith.mulf %51, %11 : vector<8x32xf32>
    %55 = arith.mulf %50, %52 : vector<8x32xf32>
    %56 = arith.addf %54, %55 : vector<8x32xf32>
    %57 = math.tanh %56 : vector<8x32xf32>
    %58 = arith.mulf %53, %57 : vector<8x32xf32>
    %59 = tpu.concatenate %58, %12 in 1 : vector<8x32xf32>, vector<8x32xf32> -> vector<8x64xf32>
    %60 = arith.truncf %59 : vector<8x64xf32> to vector<8x64xbf16>
    %cst_32 = arith.constant dense<0.000000e+00> : vector<8x128xf32>
    %61 = tpu.matmul %60, %6, %cst_32 {dimension_numbers = #tpu.dot_dimension_numbers<[1], [0], [0], [1], [0, 0, 1, 1], [], []>} : vector<8x64xbf16>, vector<64x128xbf16>, vector<8x128xf32> -> vector<8x128xf32>
    %62 = vector.broadcast %7 : vector<1x128xf32> to vector<8x128xf32>
    %63 = arith.addf %61, %62 : vector<8x128xf32>
    %cst_33 = arith.constant 5.000000e-01 : f32
    %64 = vector.broadcast %cst_33 : f32 to vector<8x128xf32>
    %65 = arith.mulf %64, %63 : vector<8x128xf32>
    %66 = math.tanh %65 : vector<8x128xf32>
    %cst_34 = arith.constant 1.000000e+00 : f32
    %67 = vector.broadcast %cst_34 : f32 to vector<8x128xf32>
    %68 = arith.addf %66, %67 : vector<8x128xf32>
    %cst_35 = arith.constant 5.000000e-01 : f32
    %69 = vector.broadcast %cst_35 : f32 to vector<8x128xf32>
    %70 = arith.mulf %69, %68 : vector<8x128xf32>
    %71 = math.tanh %63 : vector<8x128xf32>
    %72 = vector.extract_strided_slice %70 {offsets = [0, 0], sizes = [8, 32], strides = [1, 1]} : vector<8x128xf32> to vector<8x32xf32>
    %73 = vector.extract_strided_slice %70 {offsets = [0, 32], sizes = [8, 32], strides = [1, 1]} : vector<8x128xf32> to vector<8x32xf32>
    %74 = vector.extract_strided_slice %71 {offsets = [0, 64], sizes = [8, 32], strides = [1, 1]} : vector<8x128xf32> to vector<8x32xf32>
    %75 = vector.extract_strided_slice %70 {offsets = [0, 96], sizes = [8, 32], strides = [1, 1]} : vector<8x128xf32> to vector<8x32xf32>
    %76 = arith.mulf %73, %13 : vector<8x32xf32>
    %77 = arith.mulf %72, %74 : vector<8x32xf32>
    %78 = arith.addf %76, %77 : vector<8x32xf32>
    %79 = math.tanh %78 : vector<8x32xf32>
    %80 = arith.mulf %75, %79 : vector<8x32xf32>
    %81 = arith.index_cast %c0_i32_22 : i32 to index
    %c0_36 = arith.constant 0 : index
    %c0_37 = arith.constant 0 : index
    %82 = vector.load %arg11[%81, %c0_36, %c0_37] : memref<8x8x32xf32, #tpu.memory_space<vmem>>, vector<1x8x32xf32>
    %83 = vector.shape_cast %82 : vector<1x8x32xf32> to vector<8x32xf32>
    %84 = vector.shape_cast %80 : vector<8x32xf32> to vector<1x8x32xf32>
    tpu.vector_store %arg11[%81, %c0_36, %c0_37], %84 {strides = array<i32>} : memref<8x8x32xf32, #tpu.memory_space<vmem>>, vector<1x8x32xf32>,
    %c1_i32 = arith.constant 1 : i32
    %85 = arith.index_cast %c1_i32 : i32 to index
    %c0_38 = arith.constant 0 : index
    %c0_39 = arith.constant 0 : index
    %86 = vector.load %arg1[%85, %c0_38, %c0_39] : memref<8x8x128xf32, #tpu.memory_space<vmem>>, vector<1x8x128xf32>
    %87 = vector.shape_cast %86 : vector<1x8x128xf32> to vector<8x128xf32>
    %88 = arith.truncf %36 : vector<8x32xf32> to vector<8x32xbf16>
    %cst_40 = arith.constant dense<0.000000e+00> : vector<8x128xf32>
    %89 = tpu.matmul %88, %3, %cst_40 {dimension_numbers = #tpu.dot_dimension_numbers<[1], [0], [0], [1], [0, 0, 1, 1], [], []>} : vector<8x32xbf16>, vector<32x128xbf16>, vector<8x128xf32> -> vector<8x128xf32>
    %90 = arith.addf %87, %89 : vector<8x128xf32>
    %cst_41 = arith.constant 5.000000e-01 : f32
    %91 = vector.broadcast %cst_41 : f32 to vector<8x128xf32>
    %92 = arith.mulf %91, %90 : vector<8x128xf32>
    %93 = math.tanh %92 : vector<8x128xf32>
    %cst_42 = arith.constant 1.000000e+00 : f32
    %94 = vector.broadcast %cst_42 : f32 to vector<8x128xf32>
    %95 = arith.addf %93, %94 : vector<8x128xf32>
    %cst_43 = arith.constant 5.000000e-01 : f32
    %96 = vector.broadcast %cst_43 : f32 to vector<8x128xf32>
    %97 = arith.mulf %96, %95 : vector<8x128xf32>
    %98 = math.tanh %90 : vector<8x128xf32>
    %99 = vector.extract_strided_slice %97 {offsets = [0, 0], sizes = [8, 32], strides = [1, 1]} : vector<8x128xf32> to vector<8x32xf32>
    %100 = vector.extract_strided_slice %97 {offsets = [0, 32], sizes = [8, 32], strides = [1, 1]} : vector<8x128xf32> to vector<8x32xf32>
    %101 = vector.extract_strided_slice %98 {offsets = [0, 64], sizes = [8, 32], strides = [1, 1]} : vector<8x128xf32> to vector<8x32xf32>
    %102 = vector.extract_strided_slice %97 {offsets = [0, 96], sizes = [8, 32], strides = [1, 1]} : vector<8x128xf32> to vector<8x32xf32>
    %103 = arith.mulf %100, %34 : vector<8x32xf32>
    %104 = arith.mulf %99, %101 : vector<8x32xf32>
    %105 = arith.addf %103, %104 : vector<8x32xf32>
    %106 = math.tanh %105 : vector<8x32xf32>
    %107 = arith.mulf %102, %106 : vector<8x32xf32>
    %108 = tpu.concatenate %107, %58 in 1 : vector<8x32xf32>, vector<8x32xf32> -> vector<8x64xf32>
    %109 = arith.truncf %108 : vector<8x64xf32> to vector<8x64xbf16>
    %cst_44 = arith.constant dense<0.000000e+00> : vector<8x128xf32>
    %110 = tpu.matmul %109, %4, %cst_44 {dimension_numbers = #tpu.dot_dimension_numbers<[1], [0], [0], [1], [0, 0, 1, 1], [], []>} : vector<8x64xbf16>, vector<64x128xbf16>, vector<8x128xf32> -> vector<8x128xf32>
    %111 = vector.broadcast %5 : vector<1x128xf32> to vector<8x128xf32>
    %112 = arith.addf %110, %111 : vector<8x128xf32>
    %cst_45 = arith.constant 5.000000e-01 : f32
    %113 = vector.broadcast %cst_45 : f32 to vector<8x128xf32>
    %114 = arith.mulf %113, %112 : vector<8x128xf32>
    %115 = math.tanh %114 : vector<8x128xf32>
    %cst_46 = arith.constant 1.000000e+00 : f32
    %116 = vector.broadcast %cst_46 : f32 to vector<8x128xf32>
    %117 = arith.addf %115, %116 : vector<8x128xf32>
    %cst_47 = arith.constant 5.000000e-01 : f32
    %118 = vector.broadcast %cst_47 : f32 to vector<8x128xf32>
    %119 = arith.mulf %118, %117 : vector<8x128xf32>
    %120 = math.tanh %112 : vector<8x128xf32>
    %121 = vector.extract_strided_slice %119 {offsets = [0, 0], sizes = [8, 32], strides = [1, 1]} : vector<8x128xf32> to vector<8x32xf32>
    %122 = vector.extract_strided_slice %119 {offsets = [0, 32], sizes = [8, 32], strides = [1, 1]} : vector<8x128xf32> to vector<8x32xf32>
    %123 = vector.extract_strided_slice %120 {offsets = [0, 64], sizes = [8, 32], strides = [1, 1]} : vector<8x128xf32> to vector<8x32xf32>
    %124 = vector.extract_strided_slice %119 {offsets = [0, 96], sizes = [8, 32], strides = [1, 1]} : vector<8x128xf32> to vector<8x32xf32>
    %125 = arith.mulf %122, %56 : vector<8x32xf32>
    %126 = arith.mulf %121, %123 : vector<8x32xf32>
    %127 = arith.addf %125, %126 : vector<8x32xf32>
    %128 = math.tanh %127 : vector<8x32xf32>
    %129 = arith.mulf %124, %128 : vector<8x32xf32>
    %130 = tpu.concatenate %129, %80 in 1 : vector<8x32xf32>, vector<8x32xf32> -> vector<8x64xf32>
    %131 = arith.truncf %130 : vector<8x64xf32> to vector<8x64xbf16>
    %cst_48 = arith.constant dense<0.000000e+00> : vector<8x128xf32>
    %132 = tpu.matmul %131, %6, %cst_48 {dimension_numbers = #tpu.dot_dimension_numbers<[1], [0], [0], [1], [0, 0, 1, 1], [], []>} : vector<8x64xbf16>, vector<64x128xbf16>, vector<8x128xf32> -> vector<8x128xf32>
    %133 = vector.broadcast %7 : vector<1x128xf32> to vector<8x128xf32>
    %134 = arith.addf %132, %133 : vector<8x128xf32>
    %cst_49 = arith.constant 5.000000e-01 : f32
    %135 = vector.broadcast %cst_49 : f32 to vector<8x128xf32>
    %136 = arith.mulf %135, %134 : vector<8x128xf32>
    %137 = math.tanh %136 : vector<8x128xf32>
    %cst_50 = arith.constant 1.000000e+00 : f32
    %138 = vector.broadcast %cst_50 : f32 to vector<8x128xf32>
    %139 = arith.addf %137, %138 : vector<8x128xf32>
    %cst_51 = arith.constant 5.000000e-01 : f32
    %140 = vector.broadcast %cst_51 : f32 to vector<8x128xf32>
    %141 = arith.mulf %140, %139 : vector<8x128xf32>
    %142 = math.tanh %134 : vector<8x128xf32>
    %143 = vector.extract_strided_slice %141 {offsets = [0, 0], sizes = [8, 32], strides = [1, 1]} : vector<8x128xf32> to vector<8x32xf32>
    %144 = vector.extract_strided_slice %141 {offsets = [0, 32], sizes = [8, 32], strides = [1, 1]} : vector<8x128xf32> to vector<8x32xf32>
    %145 = vector.extract_strided_slice %142 {offsets = [0, 64], sizes = [8, 32], strides = [1, 1]} : vector<8x128xf32> to vector<8x32xf32>
    %146 = vector.extract_strided_slice %141 {offsets = [0, 96], sizes = [8, 32], strides = [1, 1]} : vector<8x128xf32> to vector<8x32xf32>
    %147 = arith.mulf %144, %78 : vector<8x32xf32>
    %148 = arith.mulf %143, %145 : vector<8x32xf32>
    %149 = arith.addf %147, %148 : vector<8x32xf32>
    %150 = math.tanh %149 : vector<8x32xf32>
    %151 = arith.mulf %146, %150 : vector<8x32xf32>
    %152 = arith.index_cast %c1_i32 : i32 to index
    %c0_52 = arith.constant 0 : index
    %c0_53 = arith.constant 0 : index
    %153 = vector.load %arg11[%152, %c0_52, %c0_53] : memref<8x8x32xf32, #tpu.memory_space<vmem>>, vector<1x8x32xf32>
    %154 = vector.shape_cast %153 : vector<1x8x32xf32> to vector<8x32xf32>
    %155 = vector.shape_cast %151 : vector<8x32xf32> to vector<1x8x32xf32>
    tpu.vector_store %arg11[%152, %c0_52, %c0_53], %155 {strides = array<i32>} : memref<8x8x32xf32, #tpu.memory_space<vmem>>, vector<1x8x32xf32>,
    %c2_i32 = arith.constant 2 : i32
    %156 = arith.index_cast %c2_i32 : i32 to index
    %c0_54 = arith.constant 0 : index
    %c0_55 = arith.constant 0 : index
    %157 = vector.load %arg1[%156, %c0_54, %c0_55] : memref<8x8x128xf32, #tpu.memory_space<vmem>>, vector<1x8x128xf32>
    %158 = vector.shape_cast %157 : vector<1x8x128xf32> to vector<8x128xf32>
    %159 = arith.truncf %107 : vector<8x32xf32> to vector<8x32xbf16>
    %cst_56 = arith.constant dense<0.000000e+00> : vector<8x128xf32>
    %160 = tpu.matmul %159, %3, %cst_56 {dimension_numbers = #tpu.dot_dimension_numbers<[1], [0], [0], [1], [0, 0, 1, 1], [], []>} : vector<8x32xbf16>, vector<32x128xbf16>, vector<8x128xf32> -> vector<8x128xf32>
    %161 = arith.addf %158, %160 : vector<8x128xf32>
    %cst_57 = arith.constant 5.000000e-01 : f32
    %162 = vector.broadcast %cst_57 : f32 to vector<8x128xf32>
    %163 = arith.mulf %162, %161 : vector<8x128xf32>
    %164 = math.tanh %163 : vector<8x128xf32>
    %cst_58 = arith.constant 1.000000e+00 : f32
    %165 = vector.broadcast %cst_58 : f32 to vector<8x128xf32>
    %166 = arith.addf %164, %165 : vector<8x128xf32>
    %cst_59 = arith.constant 5.000000e-01 : f32
    %167 = vector.broadcast %cst_59 : f32 to vector<8x128xf32>
    %168 = arith.mulf %167, %166 : vector<8x128xf32>
    %169 = math.tanh %161 : vector<8x128xf32>
    %170 = vector.extract_strided_slice %168 {offsets = [0, 0], sizes = [8, 32], strides = [1, 1]} : vector<8x128xf32> to vector<8x32xf32>
    %171 = vector.extract_strided_slice %168 {offsets = [0, 32], sizes = [8, 32], strides = [1, 1]} : vector<8x128xf32> to vector<8x32xf32>
    %172 = vector.extract_strided_slice %169 {offsets = [0, 64], sizes = [8, 32], strides = [1, 1]} : vector<8x128xf32> to vector<8x32xf32>
    %173 = vector.extract_strided_slice %168 {offsets = [0, 96], sizes = [8, 32], strides = [1, 1]} : vector<8x128xf32> to vector<8x32xf32>
    %174 = arith.mulf %171, %105 : vector<8x32xf32>
    %175 = arith.mulf %170, %172 : vector<8x32xf32>
    %176 = arith.addf %174, %175 : vector<8x32xf32>
    %177 = math.tanh %176 : vector<8x32xf32>
    %178 = arith.mulf %173, %177 : vector<8x32xf32>
    %179 = tpu.concatenate %178, %129 in 1 : vector<8x32xf32>, vector<8x32xf32> -> vector<8x64xf32>
    %180 = arith.truncf %179 : vector<8x64xf32> to vector<8x64xbf16>
    %cst_60 = arith.constant dense<0.000000e+00> : vector<8x128xf32>
    %181 = tpu.matmul %180, %4, %cst_60 {dimension_numbers = #tpu.dot_dimension_numbers<[1], [0], [0], [1], [0, 0, 1, 1], [], []>} : vector<8x64xbf16>, vector<64x128xbf16>, vector<8x128xf32> -> vector<8x128xf32>
    %182 = vector.broadcast %5 : vector<1x128xf32> to vector<8x128xf32>
    %183 = arith.addf %181, %182 : vector<8x128xf32>
    %cst_61 = arith.constant 5.000000e-01 : f32
    %184 = vector.broadcast %cst_61 : f32 to vector<8x128xf32>
    %185 = arith.mulf %184, %183 : vector<8x128xf32>
    %186 = math.tanh %185 : vector<8x128xf32>
    %cst_62 = arith.constant 1.000000e+00 : f32
    %187 = vector.broadcast %cst_62 : f32 to vector<8x128xf32>
    %188 = arith.addf %186, %187 : vector<8x128xf32>
    %cst_63 = arith.constant 5.000000e-01 : f32
    %189 = vector.broadcast %cst_63 : f32 to vector<8x128xf32>
    %190 = arith.mulf %189, %188 : vector<8x128xf32>
    %191 = math.tanh %183 : vector<8x128xf32>
    %192 = vector.extract_strided_slice %190 {offsets = [0, 0], sizes = [8, 32], strides = [1, 1]} : vector<8x128xf32> to vector<8x32xf32>
    %193 = vector.extract_strided_slice %190 {offsets = [0, 32], sizes = [8, 32], strides = [1, 1]} : vector<8x128xf32> to vector<8x32xf32>
    %194 = vector.extract_strided_slice %191 {offsets = [0, 64], sizes = [8, 32], strides = [1, 1]} : vector<8x128xf32> to vector<8x32xf32>
    %195 = vector.extract_strided_slice %190 {offsets = [0, 96], sizes = [8, 32], strides = [1, 1]} : vector<8x128xf32> to vector<8x32xf32>
    %196 = arith.mulf %193, %127 : vector<8x32xf32>
    %197 = arith.mulf %192, %194 : vector<8x32xf32>
    %198 = arith.addf %196, %197 : vector<8x32xf32>
    %199 = math.tanh %198 : vector<8x32xf32>
    %200 = arith.mulf %195, %199 : vector<8x32xf32>
    %201 = tpu.concatenate %200, %151 in 1 : vector<8x32xf32>, vector<8x32xf32> -> vector<8x64xf32>
    %202 = arith.truncf %201 : vector<8x64xf32> to vector<8x64xbf16>
    %cst_64 = arith.constant dense<0.000000e+00> : vector<8x128xf32>
    %203 = tpu.matmul %202, %6, %cst_64 {dimension_numbers = #tpu.dot_dimension_numbers<[1], [0], [0], [1], [0, 0, 1, 1], [], []>} : vector<8x64xbf16>, vector<64x128xbf16>, vector<8x128xf32> -> vector<8x128xf32>
    %204 = vector.broadcast %7 : vector<1x128xf32> to vector<8x128xf32>
    %205 = arith.addf %203, %204 : vector<8x128xf32>
    %cst_65 = arith.constant 5.000000e-01 : f32
    %206 = vector.broadcast %cst_65 : f32 to vector<8x128xf32>
    %207 = arith.mulf %206, %205 : vector<8x128xf32>
    %208 = math.tanh %207 : vector<8x128xf32>
    %cst_66 = arith.constant 1.000000e+00 : f32
    %209 = vector.broadcast %cst_66 : f32 to vector<8x128xf32>
    %210 = arith.addf %208, %209 : vector<8x128xf32>
    %cst_67 = arith.constant 5.000000e-01 : f32
    %211 = vector.broadcast %cst_67 : f32 to vector<8x128xf32>
    %212 = arith.mulf %211, %210 : vector<8x128xf32>
    %213 = math.tanh %205 : vector<8x128xf32>
    %214 = vector.extract_strided_slice %212 {offsets = [0, 0], sizes = [8, 32], strides = [1, 1]} : vector<8x128xf32> to vector<8x32xf32>
    %215 = vector.extract_strided_slice %212 {offsets = [0, 32], sizes = [8, 32], strides = [1, 1]} : vector<8x128xf32> to vector<8x32xf32>
    %216 = vector.extract_strided_slice %213 {offsets = [0, 64], sizes = [8, 32], strides = [1, 1]} : vector<8x128xf32> to vector<8x32xf32>
    %217 = vector.extract_strided_slice %212 {offsets = [0, 96], sizes = [8, 32], strides = [1, 1]} : vector<8x128xf32> to vector<8x32xf32>
    %218 = arith.mulf %215, %149 : vector<8x32xf32>
    %219 = arith.mulf %214, %216 : vector<8x32xf32>
    %220 = arith.addf %218, %219 : vector<8x32xf32>
    %221 = math.tanh %220 : vector<8x32xf32>
    %222 = arith.mulf %217, %221 : vector<8x32xf32>
    %223 = arith.index_cast %c2_i32 : i32 to index
    %c0_68 = arith.constant 0 : index
    %c0_69 = arith.constant 0 : index
    %224 = vector.load %arg11[%223, %c0_68, %c0_69] : memref<8x8x32xf32, #tpu.memory_space<vmem>>, vector<1x8x32xf32>
    %225 = vector.shape_cast %224 : vector<1x8x32xf32> to vector<8x32xf32>
    %226 = vector.shape_cast %222 : vector<8x32xf32> to vector<1x8x32xf32>
    tpu.vector_store %arg11[%223, %c0_68, %c0_69], %226 {strides = array<i32>} : memref<8x8x32xf32, #tpu.memory_space<vmem>>, vector<1x8x32xf32>,
    %c3_i32 = arith.constant 3 : i32
    %227 = arith.index_cast %c3_i32 : i32 to index
    %c0_70 = arith.constant 0 : index
    %c0_71 = arith.constant 0 : index
    %228 = vector.load %arg1[%227, %c0_70, %c0_71] : memref<8x8x128xf32, #tpu.memory_space<vmem>>, vector<1x8x128xf32>
    %229 = vector.shape_cast %228 : vector<1x8x128xf32> to vector<8x128xf32>
    %230 = arith.truncf %178 : vector<8x32xf32> to vector<8x32xbf16>
    %cst_72 = arith.constant dense<0.000000e+00> : vector<8x128xf32>
    %231 = tpu.matmul %230, %3, %cst_72 {dimension_numbers = #tpu.dot_dimension_numbers<[1], [0], [0], [1], [0, 0, 1, 1], [], []>} : vector<8x32xbf16>, vector<32x128xbf16>, vector<8x128xf32> -> vector<8x128xf32>
    %232 = arith.addf %229, %231 : vector<8x128xf32>
    %cst_73 = arith.constant 5.000000e-01 : f32
    %233 = vector.broadcast %cst_73 : f32 to vector<8x128xf32>
    %234 = arith.mulf %233, %232 : vector<8x128xf32>
    %235 = math.tanh %234 : vector<8x128xf32>
    %cst_74 = arith.constant 1.000000e+00 : f32
    %236 = vector.broadcast %cst_74 : f32 to vector<8x128xf32>
    %237 = arith.addf %235, %236 : vector<8x128xf32>
    %cst_75 = arith.constant 5.000000e-01 : f32
    %238 = vector.broadcast %cst_75 : f32 to vector<8x128xf32>
    %239 = arith.mulf %238, %237 : vector<8x128xf32>
    %240 = math.tanh %232 : vector<8x128xf32>
    %241 = vector.extract_strided_slice %239 {offsets = [0, 0], sizes = [8, 32], strides = [1, 1]} : vector<8x128xf32> to vector<8x32xf32>
    %242 = vector.extract_strided_slice %239 {offsets = [0, 32], sizes = [8, 32], strides = [1, 1]} : vector<8x128xf32> to vector<8x32xf32>
    %243 = vector.extract_strided_slice %240 {offsets = [0, 64], sizes = [8, 32], strides = [1, 1]} : vector<8x128xf32> to vector<8x32xf32>
    %244 = vector.extract_strided_slice %239 {offsets = [0, 96], sizes = [8, 32], strides = [1, 1]} : vector<8x128xf32> to vector<8x32xf32>
    %245 = arith.mulf %242, %176 : vector<8x32xf32>
    %246 = arith.mulf %241, %243 : vector<8x32xf32>
    %247 = arith.addf %245, %246 : vector<8x32xf32>
    %248 = math.tanh %247 : vector<8x32xf32>
    %249 = arith.mulf %244, %248 : vector<8x32xf32>
    %250 = tpu.concatenate %249, %200 in 1 : vector<8x32xf32>, vector<8x32xf32> -> vector<8x64xf32>
    %251 = arith.truncf %250 : vector<8x64xf32> to vector<8x64xbf16>
    %cst_76 = arith.constant dense<0.000000e+00> : vector<8x128xf32>
    %252 = tpu.matmul %251, %4, %cst_76 {dimension_numbers = #tpu.dot_dimension_numbers<[1], [0], [0], [1], [0, 0, 1, 1], [], []>} : vector<8x64xbf16>, vector<64x128xbf16>, vector<8x128xf32> -> vector<8x128xf32>
    %253 = vector.broadcast %5 : vector<1x128xf32> to vector<8x128xf32>
    %254 = arith.addf %252, %253 : vector<8x128xf32>
    %cst_77 = arith.constant 5.000000e-01 : f32
    %255 = vector.broadcast %cst_77 : f32 to vector<8x128xf32>
    %256 = arith.mulf %255, %254 : vector<8x128xf32>
    %257 = math.tanh %256 : vector<8x128xf32>
    %cst_78 = arith.constant 1.000000e+00 : f32
    %258 = vector.broadcast %cst_78 : f32 to vector<8x128xf32>
    %259 = arith.addf %257, %258 : vector<8x128xf32>
    %cst_79 = arith.constant 5.000000e-01 : f32
    %260 = vector.broadcast %cst_79 : f32 to vector<8x128xf32>
    %261 = arith.mulf %260, %259 : vector<8x128xf32>
    %262 = math.tanh %254 : vector<8x128xf32>
    %263 = vector.extract_strided_slice %261 {offsets = [0, 0], sizes = [8, 32], strides = [1, 1]} : vector<8x128xf32> to vector<8x32xf32>
    %264 = vector.extract_strided_slice %261 {offsets = [0, 32], sizes = [8, 32], strides = [1, 1]} : vector<8x128xf32> to vector<8x32xf32>
    %265 = vector.extract_strided_slice %262 {offsets = [0, 64], sizes = [8, 32], strides = [1, 1]} : vector<8x128xf32> to vector<8x32xf32>
    %266 = vector.extract_strided_slice %261 {offsets = [0, 96], sizes = [8, 32], strides = [1, 1]} : vector<8x128xf32> to vector<8x32xf32>
    %267 = arith.mulf %264, %198 : vector<8x32xf32>
    %268 = arith.mulf %263, %265 : vector<8x32xf32>
    %269 = arith.addf %267, %268 : vector<8x32xf32>
    %270 = math.tanh %269 : vector<8x32xf32>
    %271 = arith.mulf %266, %270 : vector<8x32xf32>
    %272 = tpu.concatenate %271, %222 in 1 : vector<8x32xf32>, vector<8x32xf32> -> vector<8x64xf32>
    %273 = arith.truncf %272 : vector<8x64xf32> to vector<8x64xbf16>
    %cst_80 = arith.constant dense<0.000000e+00> : vector<8x128xf32>
    %274 = tpu.matmul %273, %6, %cst_80 {dimension_numbers = #tpu.dot_dimension_numbers<[1], [0], [0], [1], [0, 0, 1, 1], [], []>} : vector<8x64xbf16>, vector<64x128xbf16>, vector<8x128xf32> -> vector<8x128xf32>
    %275 = vector.broadcast %7 : vector<1x128xf32> to vector<8x128xf32>
    %276 = arith.addf %274, %275 : vector<8x128xf32>
    %cst_81 = arith.constant 5.000000e-01 : f32
    %277 = vector.broadcast %cst_81 : f32 to vector<8x128xf32>
    %278 = arith.mulf %277, %276 : vector<8x128xf32>
    %279 = math.tanh %278 : vector<8x128xf32>
    %cst_82 = arith.constant 1.000000e+00 : f32
    %280 = vector.broadcast %cst_82 : f32 to vector<8x128xf32>
    %281 = arith.addf %279, %280 : vector<8x128xf32>
    %cst_83 = arith.constant 5.000000e-01 : f32
    %282 = vector.broadcast %cst_83 : f32 to vector<8x128xf32>
    %283 = arith.mulf %282, %281 : vector<8x128xf32>
    %284 = math.tanh %276 : vector<8x128xf32>
    %285 = vector.extract_strided_slice %283 {offsets = [0, 0], sizes = [8, 32], strides = [1, 1]} : vector<8x128xf32> to vector<8x32xf32>
    %286 = vector.extract_strided_slice %283 {offsets = [0, 32], sizes = [8, 32], strides = [1, 1]} : vector<8x128xf32> to vector<8x32xf32>
    %287 = vector.extract_strided_slice %284 {offsets = [0, 64], sizes = [8, 32], strides = [1, 1]} : vector<8x128xf32> to vector<8x32xf32>
    %288 = vector.extract_strided_slice %283 {offsets = [0, 96], sizes = [8, 32], strides = [1, 1]} : vector<8x128xf32> to vector<8x32xf32>
    %289 = arith.mulf %286, %220 : vector<8x32xf32>
    %290 = arith.mulf %285, %287 : vector<8x32xf32>
    %291 = arith.addf %289, %290 : vector<8x32xf32>
    %292 = math.tanh %291 : vector<8x32xf32>
    %293 = arith.mulf %288, %292 : vector<8x32xf32>
    %294 = arith.index_cast %c3_i32 : i32 to index
    %c0_84 = arith.constant 0 : index
    %c0_85 = arith.constant 0 : index
    %295 = vector.load %arg11[%294, %c0_84, %c0_85] : memref<8x8x32xf32, #tpu.memory_space<vmem>>, vector<1x8x32xf32>
    %296 = vector.shape_cast %295 : vector<1x8x32xf32> to vector<8x32xf32>
    %297 = vector.shape_cast %293 : vector<8x32xf32> to vector<1x8x32xf32>
    tpu.vector_store %arg11[%294, %c0_84, %c0_85], %297 {strides = array<i32>} : memref<8x8x32xf32, #tpu.memory_space<vmem>>, vector<1x8x32xf32>,
    %c4_i32 = arith.constant 4 : i32
    %298 = arith.index_cast %c4_i32 : i32 to index
    %c0_86 = arith.constant 0 : index
    %c0_87 = arith.constant 0 : index
    %299 = vector.load %arg1[%298, %c0_86, %c0_87] : memref<8x8x128xf32, #tpu.memory_space<vmem>>, vector<1x8x128xf32>
    %300 = vector.shape_cast %299 : vector<1x8x128xf32> to vector<8x128xf32>
    %301 = arith.truncf %249 : vector<8x32xf32> to vector<8x32xbf16>
    %cst_88 = arith.constant dense<0.000000e+00> : vector<8x128xf32>
    %302 = tpu.matmul %301, %3, %cst_88 {dimension_numbers = #tpu.dot_dimension_numbers<[1], [0], [0], [1], [0, 0, 1, 1], [], []>} : vector<8x32xbf16>, vector<32x128xbf16>, vector<8x128xf32> -> vector<8x128xf32>
    %303 = arith.addf %300, %302 : vector<8x128xf32>
    %cst_89 = arith.constant 5.000000e-01 : f32
    %304 = vector.broadcast %cst_89 : f32 to vector<8x128xf32>
    %305 = arith.mulf %304, %303 : vector<8x128xf32>
    %306 = math.tanh %305 : vector<8x128xf32>
    %cst_90 = arith.constant 1.000000e+00 : f32
    %307 = vector.broadcast %cst_90 : f32 to vector<8x128xf32>
    %308 = arith.addf %306, %307 : vector<8x128xf32>
    %cst_91 = arith.constant 5.000000e-01 : f32
    %309 = vector.broadcast %cst_91 : f32 to vector<8x128xf32>
    %310 = arith.mulf %309, %308 : vector<8x128xf32>
    %311 = math.tanh %303 : vector<8x128xf32>
    %312 = vector.extract_strided_slice %310 {offsets = [0, 0], sizes = [8, 32], strides = [1, 1]} : vector<8x128xf32> to vector<8x32xf32>
    %313 = vector.extract_strided_slice %310 {offsets = [0, 32], sizes = [8, 32], strides = [1, 1]} : vector<8x128xf32> to vector<8x32xf32>
    %314 = vector.extract_strided_slice %311 {offsets = [0, 64], sizes = [8, 32], strides = [1, 1]} : vector<8x128xf32> to vector<8x32xf32>
    %315 = vector.extract_strided_slice %310 {offsets = [0, 96], sizes = [8, 32], strides = [1, 1]} : vector<8x128xf32> to vector<8x32xf32>
    %316 = arith.mulf %313, %247 : vector<8x32xf32>
    %317 = arith.mulf %312, %314 : vector<8x32xf32>
    %318 = arith.addf %316, %317 : vector<8x32xf32>
    %319 = math.tanh %318 : vector<8x32xf32>
    %320 = arith.mulf %315, %319 : vector<8x32xf32>
    %321 = tpu.concatenate %320, %271 in 1 : vector<8x32xf32>, vector<8x32xf32> -> vector<8x64xf32>
    %322 = arith.truncf %321 : vector<8x64xf32> to vector<8x64xbf16>
    %cst_92 = arith.constant dense<0.000000e+00> : vector<8x128xf32>
    %323 = tpu.matmul %322, %4, %cst_92 {dimension_numbers = #tpu.dot_dimension_numbers<[1], [0], [0], [1], [0, 0, 1, 1], [], []>} : vector<8x64xbf16>, vector<64x128xbf16>, vector<8x128xf32> -> vector<8x128xf32>
    %324 = vector.broadcast %5 : vector<1x128xf32> to vector<8x128xf32>
    %325 = arith.addf %323, %324 : vector<8x128xf32>
    %cst_93 = arith.constant 5.000000e-01 : f32
    %326 = vector.broadcast %cst_93 : f32 to vector<8x128xf32>
    %327 = arith.mulf %326, %325 : vector<8x128xf32>
    %328 = math.tanh %327 : vector<8x128xf32>
    %cst_94 = arith.constant 1.000000e+00 : f32
    %329 = vector.broadcast %cst_94 : f32 to vector<8x128xf32>
    %330 = arith.addf %328, %329 : vector<8x128xf32>
    %cst_95 = arith.constant 5.000000e-01 : f32
    %331 = vector.broadcast %cst_95 : f32 to vector<8x128xf32>
    %332 = arith.mulf %331, %330 : vector<8x128xf32>
    %333 = math.tanh %325 : vector<8x128xf32>
    %334 = vector.extract_strided_slice %332 {offsets = [0, 0], sizes = [8, 32], strides = [1, 1]} : vector<8x128xf32> to vector<8x32xf32>
    %335 = vector.extract_strided_slice %332 {offsets = [0, 32], sizes = [8, 32], strides = [1, 1]} : vector<8x128xf32> to vector<8x32xf32>
    %336 = vector.extract_strided_slice %333 {offsets = [0, 64], sizes = [8, 32], strides = [1, 1]} : vector<8x128xf32> to vector<8x32xf32>
    %337 = vector.extract_strided_slice %332 {offsets = [0, 96], sizes = [8, 32], strides = [1, 1]} : vector<8x128xf32> to vector<8x32xf32>
    %338 = arith.mulf %335, %269 : vector<8x32xf32>
    %339 = arith.mulf %334, %336 : vector<8x32xf32>
    %340 = arith.addf %338, %339 : vector<8x32xf32>
    %341 = math.tanh %340 : vector<8x32xf32>
    %342 = arith.mulf %337, %341 : vector<8x32xf32>
    %343 = tpu.concatenate %342, %293 in 1 : vector<8x32xf32>, vector<8x32xf32> -> vector<8x64xf32>
    %344 = arith.truncf %343 : vector<8x64xf32> to vector<8x64xbf16>
    %cst_96 = arith.constant dense<0.000000e+00> : vector<8x128xf32>
    %345 = tpu.matmul %344, %6, %cst_96 {dimension_numbers = #tpu.dot_dimension_numbers<[1], [0], [0], [1], [0, 0, 1, 1], [], []>} : vector<8x64xbf16>, vector<64x128xbf16>, vector<8x128xf32> -> vector<8x128xf32>
    %346 = vector.broadcast %7 : vector<1x128xf32> to vector<8x128xf32>
    %347 = arith.addf %345, %346 : vector<8x128xf32>
    %cst_97 = arith.constant 5.000000e-01 : f32
    %348 = vector.broadcast %cst_97 : f32 to vector<8x128xf32>
    %349 = arith.mulf %348, %347 : vector<8x128xf32>
    %350 = math.tanh %349 : vector<8x128xf32>
    %cst_98 = arith.constant 1.000000e+00 : f32
    %351 = vector.broadcast %cst_98 : f32 to vector<8x128xf32>
    %352 = arith.addf %350, %351 : vector<8x128xf32>
    %cst_99 = arith.constant 5.000000e-01 : f32
    %353 = vector.broadcast %cst_99 : f32 to vector<8x128xf32>
    %354 = arith.mulf %353, %352 : vector<8x128xf32>
    %355 = math.tanh %347 : vector<8x128xf32>
    %356 = vector.extract_strided_slice %354 {offsets = [0, 0], sizes = [8, 32], strides = [1, 1]} : vector<8x128xf32> to vector<8x32xf32>
    %357 = vector.extract_strided_slice %354 {offsets = [0, 32], sizes = [8, 32], strides = [1, 1]} : vector<8x128xf32> to vector<8x32xf32>
    %358 = vector.extract_strided_slice %355 {offsets = [0, 64], sizes = [8, 32], strides = [1, 1]} : vector<8x128xf32> to vector<8x32xf32>
    %359 = vector.extract_strided_slice %354 {offsets = [0, 96], sizes = [8, 32], strides = [1, 1]} : vector<8x128xf32> to vector<8x32xf32>
    %360 = arith.mulf %357, %291 : vector<8x32xf32>
    %361 = arith.mulf %356, %358 : vector<8x32xf32>
    %362 = arith.addf %360, %361 : vector<8x32xf32>
    %363 = math.tanh %362 : vector<8x32xf32>
    %364 = arith.mulf %359, %363 : vector<8x32xf32>
    %365 = arith.index_cast %c4_i32 : i32 to index
    %c0_100 = arith.constant 0 : index
    %c0_101 = arith.constant 0 : index
    %366 = vector.load %arg11[%365, %c0_100, %c0_101] : memref<8x8x32xf32, #tpu.memory_space<vmem>>, vector<1x8x32xf32>
    %367 = vector.shape_cast %366 : vector<1x8x32xf32> to vector<8x32xf32>
    %368 = vector.shape_cast %364 : vector<8x32xf32> to vector<1x8x32xf32>
    tpu.vector_store %arg11[%365, %c0_100, %c0_101], %368 {strides = array<i32>} : memref<8x8x32xf32, #tpu.memory_space<vmem>>, vector<1x8x32xf32>,
    %c5_i32 = arith.constant 5 : i32
    %369 = arith.index_cast %c5_i32 : i32 to index
    %c0_102 = arith.constant 0 : index
    %c0_103 = arith.constant 0 : index
    %370 = vector.load %arg1[%369, %c0_102, %c0_103] : memref<8x8x128xf32, #tpu.memory_space<vmem>>, vector<1x8x128xf32>
    %371 = vector.shape_cast %370 : vector<1x8x128xf32> to vector<8x128xf32>
    %372 = arith.truncf %320 : vector<8x32xf32> to vector<8x32xbf16>
    %cst_104 = arith.constant dense<0.000000e+00> : vector<8x128xf32>
    %373 = tpu.matmul %372, %3, %cst_104 {dimension_numbers = #tpu.dot_dimension_numbers<[1], [0], [0], [1], [0, 0, 1, 1], [], []>} : vector<8x32xbf16>, vector<32x128xbf16>, vector<8x128xf32> -> vector<8x128xf32>
    %374 = arith.addf %371, %373 : vector<8x128xf32>
    %cst_105 = arith.constant 5.000000e-01 : f32
    %375 = vector.broadcast %cst_105 : f32 to vector<8x128xf32>
    %376 = arith.mulf %375, %374 : vector<8x128xf32>
    %377 = math.tanh %376 : vector<8x128xf32>
    %cst_106 = arith.constant 1.000000e+00 : f32
    %378 = vector.broadcast %cst_106 : f32 to vector<8x128xf32>
    %379 = arith.addf %377, %378 : vector<8x128xf32>
    %cst_107 = arith.constant 5.000000e-01 : f32
    %380 = vector.broadcast %cst_107 : f32 to vector<8x128xf32>
    %381 = arith.mulf %380, %379 : vector<8x128xf32>
    %382 = math.tanh %374 : vector<8x128xf32>
    %383 = vector.extract_strided_slice %381 {offsets = [0, 0], sizes = [8, 32], strides = [1, 1]} : vector<8x128xf32> to vector<8x32xf32>
    %384 = vector.extract_strided_slice %381 {offsets = [0, 32], sizes = [8, 32], strides = [1, 1]} : vector<8x128xf32> to vector<8x32xf32>
    %385 = vector.extract_strided_slice %382 {offsets = [0, 64], sizes = [8, 32], strides = [1, 1]} : vector<8x128xf32> to vector<8x32xf32>
    %386 = vector.extract_strided_slice %381 {offsets = [0, 96], sizes = [8, 32], strides = [1, 1]} : vector<8x128xf32> to vector<8x32xf32>
    %387 = arith.mulf %384, %318 : vector<8x32xf32>
    %388 = arith.mulf %383, %385 : vector<8x32xf32>
    %389 = arith.addf %387, %388 : vector<8x32xf32>
    %390 = math.tanh %389 : vector<8x32xf32>
    %391 = arith.mulf %386, %390 : vector<8x32xf32>
    %392 = tpu.concatenate %391, %342 in 1 : vector<8x32xf32>, vector<8x32xf32> -> vector<8x64xf32>
    %393 = arith.truncf %392 : vector<8x64xf32> to vector<8x64xbf16>
    %cst_108 = arith.constant dense<0.000000e+00> : vector<8x128xf32>
    %394 = tpu.matmul %393, %4, %cst_108 {dimension_numbers = #tpu.dot_dimension_numbers<[1], [0], [0], [1], [0, 0, 1, 1], [], []>} : vector<8x64xbf16>, vector<64x128xbf16>, vector<8x128xf32> -> vector<8x128xf32>
    %395 = vector.broadcast %5 : vector<1x128xf32> to vector<8x128xf32>
    %396 = arith.addf %394, %395 : vector<8x128xf32>
    %cst_109 = arith.constant 5.000000e-01 : f32
    %397 = vector.broadcast %cst_109 : f32 to vector<8x128xf32>
    %398 = arith.mulf %397, %396 : vector<8x128xf32>
    %399 = math.tanh %398 : vector<8x128xf32>
    %cst_110 = arith.constant 1.000000e+00 : f32
    %400 = vector.broadcast %cst_110 : f32 to vector<8x128xf32>
    %401 = arith.addf %399, %400 : vector<8x128xf32>
    %cst_111 = arith.constant 5.000000e-01 : f32
    %402 = vector.broadcast %cst_111 : f32 to vector<8x128xf32>
    %403 = arith.mulf %402, %401 : vector<8x128xf32>
    %404 = math.tanh %396 : vector<8x128xf32>
    %405 = vector.extract_strided_slice %403 {offsets = [0, 0], sizes = [8, 32], strides = [1, 1]} : vector<8x128xf32> to vector<8x32xf32>
    %406 = vector.extract_strided_slice %403 {offsets = [0, 32], sizes = [8, 32], strides = [1, 1]} : vector<8x128xf32> to vector<8x32xf32>
    %407 = vector.extract_strided_slice %404 {offsets = [0, 64], sizes = [8, 32], strides = [1, 1]} : vector<8x128xf32> to vector<8x32xf32>
    %408 = vector.extract_strided_slice %403 {offsets = [0, 96], sizes = [8, 32], strides = [1, 1]} : vector<8x128xf32> to vector<8x32xf32>
    %409 = arith.mulf %406, %340 : vector<8x32xf32>
    %410 = arith.mulf %405, %407 : vector<8x32xf32>
    %411 = arith.addf %409, %410 : vector<8x32xf32>
    %412 = math.tanh %411 : vector<8x32xf32>
    %413 = arith.mulf %408, %412 : vector<8x32xf32>
    %414 = tpu.concatenate %413, %364 in 1 : vector<8x32xf32>, vector<8x32xf32> -> vector<8x64xf32>
    %415 = arith.truncf %414 : vector<8x64xf32> to vector<8x64xbf16>
    %cst_112 = arith.constant dense<0.000000e+00> : vector<8x128xf32>
    %416 = tpu.matmul %415, %6, %cst_112 {dimension_numbers = #tpu.dot_dimension_numbers<[1], [0], [0], [1], [0, 0, 1, 1], [], []>} : vector<8x64xbf16>, vector<64x128xbf16>, vector<8x128xf32> -> vector<8x128xf32>
    %417 = vector.broadcast %7 : vector<1x128xf32> to vector<8x128xf32>
    %418 = arith.addf %416, %417 : vector<8x128xf32>
    %cst_113 = arith.constant 5.000000e-01 : f32
    %419 = vector.broadcast %cst_113 : f32 to vector<8x128xf32>
    %420 = arith.mulf %419, %418 : vector<8x128xf32>
    %421 = math.tanh %420 : vector<8x128xf32>
    %cst_114 = arith.constant 1.000000e+00 : f32
    %422 = vector.broadcast %cst_114 : f32 to vector<8x128xf32>
    %423 = arith.addf %421, %422 : vector<8x128xf32>
    %cst_115 = arith.constant 5.000000e-01 : f32
    %424 = vector.broadcast %cst_115 : f32 to vector<8x128xf32>
    %425 = arith.mulf %424, %423 : vector<8x128xf32>
    %426 = math.tanh %418 : vector<8x128xf32>
    %427 = vector.extract_strided_slice %425 {offsets = [0, 0], sizes = [8, 32], strides = [1, 1]} : vector<8x128xf32> to vector<8x32xf32>
    %428 = vector.extract_strided_slice %425 {offsets = [0, 32], sizes = [8, 32], strides = [1, 1]} : vector<8x128xf32> to vector<8x32xf32>
    %429 = vector.extract_strided_slice %426 {offsets = [0, 64], sizes = [8, 32], strides = [1, 1]} : vector<8x128xf32> to vector<8x32xf32>
    %430 = vector.extract_strided_slice %425 {offsets = [0, 96], sizes = [8, 32], strides = [1, 1]} : vector<8x128xf32> to vector<8x32xf32>
    %431 = arith.mulf %428, %362 : vector<8x32xf32>
    %432 = arith.mulf %427, %429 : vector<8x32xf32>
    %433 = arith.addf %431, %432 : vector<8x32xf32>
    %434 = math.tanh %433 : vector<8x32xf32>
    %435 = arith.mulf %430, %434 : vector<8x32xf32>
    %436 = arith.index_cast %c5_i32 : i32 to index
    %c0_116 = arith.constant 0 : index
    %c0_117 = arith.constant 0 : index
    %437 = vector.load %arg11[%436, %c0_116, %c0_117] : memref<8x8x32xf32, #tpu.memory_space<vmem>>, vector<1x8x32xf32>
    %438 = vector.shape_cast %437 : vector<1x8x32xf32> to vector<8x32xf32>
    %439 = vector.shape_cast %435 : vector<8x32xf32> to vector<1x8x32xf32>
    tpu.vector_store %arg11[%436, %c0_116, %c0_117], %439 {strides = array<i32>} : memref<8x8x32xf32, #tpu.memory_space<vmem>>, vector<1x8x32xf32>,
    %c6_i32 = arith.constant 6 : i32
    %440 = arith.index_cast %c6_i32 : i32 to index
    %c0_118 = arith.constant 0 : index
    %c0_119 = arith.constant 0 : index
    %441 = vector.load %arg1[%440, %c0_118, %c0_119] : memref<8x8x128xf32, #tpu.memory_space<vmem>>, vector<1x8x128xf32>
    %442 = vector.shape_cast %441 : vector<1x8x128xf32> to vector<8x128xf32>
    %443 = arith.truncf %391 : vector<8x32xf32> to vector<8x32xbf16>
    %cst_120 = arith.constant dense<0.000000e+00> : vector<8x128xf32>
    %444 = tpu.matmul %443, %3, %cst_120 {dimension_numbers = #tpu.dot_dimension_numbers<[1], [0], [0], [1], [0, 0, 1, 1], [], []>} : vector<8x32xbf16>, vector<32x128xbf16>, vector<8x128xf32> -> vector<8x128xf32>
    %445 = arith.addf %442, %444 : vector<8x128xf32>
    %cst_121 = arith.constant 5.000000e-01 : f32
    %446 = vector.broadcast %cst_121 : f32 to vector<8x128xf32>
    %447 = arith.mulf %446, %445 : vector<8x128xf32>
    %448 = math.tanh %447 : vector<8x128xf32>
    %cst_122 = arith.constant 1.000000e+00 : f32
    %449 = vector.broadcast %cst_122 : f32 to vector<8x128xf32>
    %450 = arith.addf %448, %449 : vector<8x128xf32>
    %cst_123 = arith.constant 5.000000e-01 : f32
    %451 = vector.broadcast %cst_123 : f32 to vector<8x128xf32>
    %452 = arith.mulf %451, %450 : vector<8x128xf32>
    %453 = math.tanh %445 : vector<8x128xf32>
    %454 = vector.extract_strided_slice %452 {offsets = [0, 0], sizes = [8, 32], strides = [1, 1]} : vector<8x128xf32> to vector<8x32xf32>
    %455 = vector.extract_strided_slice %452 {offsets = [0, 32], sizes = [8, 32], strides = [1, 1]} : vector<8x128xf32> to vector<8x32xf32>
    %456 = vector.extract_strided_slice %453 {offsets = [0, 64], sizes = [8, 32], strides = [1, 1]} : vector<8x128xf32> to vector<8x32xf32>
    %457 = vector.extract_strided_slice %452 {offsets = [0, 96], sizes = [8, 32], strides = [1, 1]} : vector<8x128xf32> to vector<8x32xf32>
    %458 = arith.mulf %455, %389 : vector<8x32xf32>
    %459 = arith.mulf %454, %456 : vector<8x32xf32>
    %460 = arith.addf %458, %459 : vector<8x32xf32>
    %461 = math.tanh %460 : vector<8x32xf32>
    %462 = arith.mulf %457, %461 : vector<8x32xf32>
    %463 = tpu.concatenate %462, %413 in 1 : vector<8x32xf32>, vector<8x32xf32> -> vector<8x64xf32>
    %464 = arith.truncf %463 : vector<8x64xf32> to vector<8x64xbf16>
    %cst_124 = arith.constant dense<0.000000e+00> : vector<8x128xf32>
    %465 = tpu.matmul %464, %4, %cst_124 {dimension_numbers = #tpu.dot_dimension_numbers<[1], [0], [0], [1], [0, 0, 1, 1], [], []>} : vector<8x64xbf16>, vector<64x128xbf16>, vector<8x128xf32> -> vector<8x128xf32>
    %466 = vector.broadcast %5 : vector<1x128xf32> to vector<8x128xf32>
    %467 = arith.addf %465, %466 : vector<8x128xf32>
    %cst_125 = arith.constant 5.000000e-01 : f32
    %468 = vector.broadcast %cst_125 : f32 to vector<8x128xf32>
    %469 = arith.mulf %468, %467 : vector<8x128xf32>
    %470 = math.tanh %469 : vector<8x128xf32>
    %cst_126 = arith.constant 1.000000e+00 : f32
    %471 = vector.broadcast %cst_126 : f32 to vector<8x128xf32>
    %472 = arith.addf %470, %471 : vector<8x128xf32>
    %cst_127 = arith.constant 5.000000e-01 : f32
    %473 = vector.broadcast %cst_127 : f32 to vector<8x128xf32>
    %474 = arith.mulf %473, %472 : vector<8x128xf32>
    %475 = math.tanh %467 : vector<8x128xf32>
    %476 = vector.extract_strided_slice %474 {offsets = [0, 0], sizes = [8, 32], strides = [1, 1]} : vector<8x128xf32> to vector<8x32xf32>
    %477 = vector.extract_strided_slice %474 {offsets = [0, 32], sizes = [8, 32], strides = [1, 1]} : vector<8x128xf32> to vector<8x32xf32>
    %478 = vector.extract_strided_slice %475 {offsets = [0, 64], sizes = [8, 32], strides = [1, 1]} : vector<8x128xf32> to vector<8x32xf32>
    %479 = vector.extract_strided_slice %474 {offsets = [0, 96], sizes = [8, 32], strides = [1, 1]} : vector<8x128xf32> to vector<8x32xf32>
    %480 = arith.mulf %477, %411 : vector<8x32xf32>
    %481 = arith.mulf %476, %478 : vector<8x32xf32>
    %482 = arith.addf %480, %481 : vector<8x32xf32>
    %483 = math.tanh %482 : vector<8x32xf32>
    %484 = arith.mulf %479, %483 : vector<8x32xf32>
    %485 = tpu.concatenate %484, %435 in 1 : vector<8x32xf32>, vector<8x32xf32> -> vector<8x64xf32>
    %486 = arith.truncf %485 : vector<8x64xf32> to vector<8x64xbf16>
    %cst_128 = arith.constant dense<0.000000e+00> : vector<8x128xf32>
    %487 = tpu.matmul %486, %6, %cst_128 {dimension_numbers = #tpu.dot_dimension_numbers<[1], [0], [0], [1], [0, 0, 1, 1], [], []>} : vector<8x64xbf16>, vector<64x128xbf16>, vector<8x128xf32> -> vector<8x128xf32>
    %488 = vector.broadcast %7 : vector<1x128xf32> to vector<8x128xf32>
    %489 = arith.addf %487, %488 : vector<8x128xf32>
    %cst_129 = arith.constant 5.000000e-01 : f32
    %490 = vector.broadcast %cst_129 : f32 to vector<8x128xf32>
    %491 = arith.mulf %490, %489 : vector<8x128xf32>
    %492 = math.tanh %491 : vector<8x128xf32>
    %cst_130 = arith.constant 1.000000e+00 : f32
    %493 = vector.broadcast %cst_130 : f32 to vector<8x128xf32>
    %494 = arith.addf %492, %493 : vector<8x128xf32>
    %cst_131 = arith.constant 5.000000e-01 : f32
    %495 = vector.broadcast %cst_131 : f32 to vector<8x128xf32>
    %496 = arith.mulf %495, %494 : vector<8x128xf32>
    %497 = math.tanh %489 : vector<8x128xf32>
    %498 = vector.extract_strided_slice %496 {offsets = [0, 0], sizes = [8, 32], strides = [1, 1]} : vector<8x128xf32> to vector<8x32xf32>
    %499 = vector.extract_strided_slice %496 {offsets = [0, 32], sizes = [8, 32], strides = [1, 1]} : vector<8x128xf32> to vector<8x32xf32>
    %500 = vector.extract_strided_slice %497 {offsets = [0, 64], sizes = [8, 32], strides = [1, 1]} : vector<8x128xf32> to vector<8x32xf32>
    %501 = vector.extract_strided_slice %496 {offsets = [0, 96], sizes = [8, 32], strides = [1, 1]} : vector<8x128xf32> to vector<8x32xf32>
    %502 = arith.mulf %499, %433 : vector<8x32xf32>
    %503 = arith.mulf %498, %500 : vector<8x32xf32>
    %504 = arith.addf %502, %503 : vector<8x32xf32>
    %505 = math.tanh %504 : vector<8x32xf32>
    %506 = arith.mulf %501, %505 : vector<8x32xf32>
    %507 = arith.index_cast %c6_i32 : i32 to index
    %c0_132 = arith.constant 0 : index
    %c0_133 = arith.constant 0 : index
    %508 = vector.load %arg11[%507, %c0_132, %c0_133] : memref<8x8x32xf32, #tpu.memory_space<vmem>>, vector<1x8x32xf32>
    %509 = vector.shape_cast %508 : vector<1x8x32xf32> to vector<8x32xf32>
    %510 = vector.shape_cast %506 : vector<8x32xf32> to vector<1x8x32xf32>
    tpu.vector_store %arg11[%507, %c0_132, %c0_133], %510 {strides = array<i32>} : memref<8x8x32xf32, #tpu.memory_space<vmem>>, vector<1x8x32xf32>,
    %c7_i32 = arith.constant 7 : i32
    %511 = arith.index_cast %c7_i32 : i32 to index
    %c0_134 = arith.constant 0 : index
    %c0_135 = arith.constant 0 : index
    %512 = vector.load %arg1[%511, %c0_134, %c0_135] : memref<8x8x128xf32, #tpu.memory_space<vmem>>, vector<1x8x128xf32>
    %513 = vector.shape_cast %512 : vector<1x8x128xf32> to vector<8x128xf32>
    %514 = arith.truncf %462 : vector<8x32xf32> to vector<8x32xbf16>
    %cst_136 = arith.constant dense<0.000000e+00> : vector<8x128xf32>
    %515 = tpu.matmul %514, %3, %cst_136 {dimension_numbers = #tpu.dot_dimension_numbers<[1], [0], [0], [1], [0, 0, 1, 1], [], []>} : vector<8x32xbf16>, vector<32x128xbf16>, vector<8x128xf32> -> vector<8x128xf32>
    %516 = arith.addf %513, %515 : vector<8x128xf32>
    %cst_137 = arith.constant 5.000000e-01 : f32
    %517 = vector.broadcast %cst_137 : f32 to vector<8x128xf32>
    %518 = arith.mulf %517, %516 : vector<8x128xf32>
    %519 = math.tanh %518 : vector<8x128xf32>
    %cst_138 = arith.constant 1.000000e+00 : f32
    %520 = vector.broadcast %cst_138 : f32 to vector<8x128xf32>
    %521 = arith.addf %519, %520 : vector<8x128xf32>
    %cst_139 = arith.constant 5.000000e-01 : f32
    %522 = vector.broadcast %cst_139 : f32 to vector<8x128xf32>
    %523 = arith.mulf %522, %521 : vector<8x128xf32>
    %524 = math.tanh %516 : vector<8x128xf32>
    %525 = vector.extract_strided_slice %523 {offsets = [0, 0], sizes = [8, 32], strides = [1, 1]} : vector<8x128xf32> to vector<8x32xf32>
    %526 = vector.extract_strided_slice %523 {offsets = [0, 32], sizes = [8, 32], strides = [1, 1]} : vector<8x128xf32> to vector<8x32xf32>
    %527 = vector.extract_strided_slice %524 {offsets = [0, 64], sizes = [8, 32], strides = [1, 1]} : vector<8x128xf32> to vector<8x32xf32>
    %528 = vector.extract_strided_slice %523 {offsets = [0, 96], sizes = [8, 32], strides = [1, 1]} : vector<8x128xf32> to vector<8x32xf32>
    %529 = arith.mulf %526, %460 : vector<8x32xf32>
    %530 = arith.mulf %525, %527 : vector<8x32xf32>
    %531 = arith.addf %529, %530 : vector<8x32xf32>
    %532 = math.tanh %531 : vector<8x32xf32>
    %533 = arith.mulf %528, %532 : vector<8x32xf32>
    %534 = tpu.concatenate %533, %484 in 1 : vector<8x32xf32>, vector<8x32xf32> -> vector<8x64xf32>
    %535 = arith.truncf %534 : vector<8x64xf32> to vector<8x64xbf16>
    %cst_140 = arith.constant dense<0.000000e+00> : vector<8x128xf32>
    %536 = tpu.matmul %535, %4, %cst_140 {dimension_numbers = #tpu.dot_dimension_numbers<[1], [0], [0], [1], [0, 0, 1, 1], [], []>} : vector<8x64xbf16>, vector<64x128xbf16>, vector<8x128xf32> -> vector<8x128xf32>
    %537 = vector.broadcast %5 : vector<1x128xf32> to vector<8x128xf32>
    %538 = arith.addf %536, %537 : vector<8x128xf32>
    %cst_141 = arith.constant 5.000000e-01 : f32
    %539 = vector.broadcast %cst_141 : f32 to vector<8x128xf32>
    %540 = arith.mulf %539, %538 : vector<8x128xf32>
    %541 = math.tanh %540 : vector<8x128xf32>
    %cst_142 = arith.constant 1.000000e+00 : f32
    %542 = vector.broadcast %cst_142 : f32 to vector<8x128xf32>
    %543 = arith.addf %541, %542 : vector<8x128xf32>
    %cst_143 = arith.constant 5.000000e-01 : f32
    %544 = vector.broadcast %cst_143 : f32 to vector<8x128xf32>
    %545 = arith.mulf %544, %543 : vector<8x128xf32>
    %546 = math.tanh %538 : vector<8x128xf32>
    %547 = vector.extract_strided_slice %545 {offsets = [0, 0], sizes = [8, 32], strides = [1, 1]} : vector<8x128xf32> to vector<8x32xf32>
    %548 = vector.extract_strided_slice %545 {offsets = [0, 32], sizes = [8, 32], strides = [1, 1]} : vector<8x128xf32> to vector<8x32xf32>
    %549 = vector.extract_strided_slice %546 {offsets = [0, 64], sizes = [8, 32], strides = [1, 1]} : vector<8x128xf32> to vector<8x32xf32>
    %550 = vector.extract_strided_slice %545 {offsets = [0, 96], sizes = [8, 32], strides = [1, 1]} : vector<8x128xf32> to vector<8x32xf32>
    %551 = arith.mulf %548, %482 : vector<8x32xf32>
    %552 = arith.mulf %547, %549 : vector<8x32xf32>
    %553 = arith.addf %551, %552 : vector<8x32xf32>
    %554 = math.tanh %553 : vector<8x32xf32>
    %555 = arith.mulf %550, %554 : vector<8x32xf32>
    %556 = tpu.concatenate %555, %506 in 1 : vector<8x32xf32>, vector<8x32xf32> -> vector<8x64xf32>
    %557 = arith.truncf %556 : vector<8x64xf32> to vector<8x64xbf16>
    %cst_144 = arith.constant dense<0.000000e+00> : vector<8x128xf32>
    %558 = tpu.matmul %557, %6, %cst_144 {dimension_numbers = #tpu.dot_dimension_numbers<[1], [0], [0], [1], [0, 0, 1, 1], [], []>} : vector<8x64xbf16>, vector<64x128xbf16>, vector<8x128xf32> -> vector<8x128xf32>
    %559 = vector.broadcast %7 : vector<1x128xf32> to vector<8x128xf32>
    %560 = arith.addf %558, %559 : vector<8x128xf32>
    %cst_145 = arith.constant 5.000000e-01 : f32
    %561 = vector.broadcast %cst_145 : f32 to vector<8x128xf32>
    %562 = arith.mulf %561, %560 : vector<8x128xf32>
    %563 = math.tanh %562 : vector<8x128xf32>
    %cst_146 = arith.constant 1.000000e+00 : f32
    %564 = vector.broadcast %cst_146 : f32 to vector<8x128xf32>
    %565 = arith.addf %563, %564 : vector<8x128xf32>
    %cst_147 = arith.constant 5.000000e-01 : f32
    %566 = vector.broadcast %cst_147 : f32 to vector<8x128xf32>
    %567 = arith.mulf %566, %565 : vector<8x128xf32>
    %568 = math.tanh %560 : vector<8x128xf32>
    %569 = vector.extract_strided_slice %567 {offsets = [0, 0], sizes = [8, 32], strides = [1, 1]} : vector<8x128xf32> to vector<8x32xf32>
    %570 = vector.extract_strided_slice %567 {offsets = [0, 32], sizes = [8, 32], strides = [1, 1]} : vector<8x128xf32> to vector<8x32xf32>
    %571 = vector.extract_strided_slice %568 {offsets = [0, 64], sizes = [8, 32], strides = [1, 1]} : vector<8x128xf32> to vector<8x32xf32>
    %572 = vector.extract_strided_slice %567 {offsets = [0, 96], sizes = [8, 32], strides = [1, 1]} : vector<8x128xf32> to vector<8x32xf32>
    %573 = arith.mulf %570, %504 : vector<8x32xf32>
    %574 = arith.mulf %569, %571 : vector<8x32xf32>
    %575 = arith.addf %573, %574 : vector<8x32xf32>
    %576 = math.tanh %575 : vector<8x32xf32>
    %577 = arith.mulf %572, %576 : vector<8x32xf32>
    %578 = arith.index_cast %c7_i32 : i32 to index
    %c0_148 = arith.constant 0 : index
    %c0_149 = arith.constant 0 : index
    %579 = vector.load %arg11[%578, %c0_148, %c0_149] : memref<8x8x32xf32, #tpu.memory_space<vmem>>, vector<1x8x32xf32>
    %580 = vector.shape_cast %579 : vector<1x8x32xf32> to vector<8x32xf32>
    %581 = vector.shape_cast %577 : vector<8x32xf32> to vector<1x8x32xf32>
    tpu.vector_store %arg11[%578, %c0_148, %c0_149], %581 {strides = array<i32>} : memref<8x8x32xf32, #tpu.memory_space<vmem>>, vector<1x8x32xf32>,
    %c8_i32 = arith.constant 8 : i32
    %c0_150 = arith.constant 0 : index
    %c0_151 = arith.constant 0 : index
    %582 = vector.load %arg12[%c0_150, %c0_151] : memref<8x32xf32, #tpu.memory_space<vmem>>, vector<8x32xf32>
    tpu.vector_store %arg12[%c0_150, %c0_151], %533 {strides = array<i32>} : memref<8x32xf32, #tpu.memory_space<vmem>>, vector<8x32xf32>,
    %c0_152 = arith.constant 0 : index
    %c0_153 = arith.constant 0 : index
    %583 = vector.load %arg13[%c0_152, %c0_153] : memref<8x32xf32, #tpu.memory_space<vmem>>, vector<8x32xf32>
    tpu.vector_store %arg13[%c0_152, %c0_153], %531 {strides = array<i32>} : memref<8x32xf32, #tpu.memory_space<vmem>>, vector<8x32xf32>,
    %c0_154 = arith.constant 0 : index
    %c0_155 = arith.constant 0 : index
    %584 = vector.load %arg14[%c0_154, %c0_155] : memref<8x32xf32, #tpu.memory_space<vmem>>, vector<8x32xf32>
    tpu.vector_store %arg14[%c0_154, %c0_155], %555 {strides = array<i32>} : memref<8x32xf32, #tpu.memory_space<vmem>>, vector<8x32xf32>,
    %c0_156 = arith.constant 0 : index
    %c0_157 = arith.constant 0 : index
    %585 = vector.load %arg15[%c0_156, %c0_157] : memref<8x32xf32, #tpu.memory_space<vmem>>, vector<8x32xf32>
    tpu.vector_store %arg15[%c0_156, %c0_157], %553 {strides = array<i32>} : memref<8x32xf32, #tpu.memory_space<vmem>>, vector<8x32xf32>,
    %c0_158 = arith.constant 0 : index
    %c0_159 = arith.constant 0 : index
    %586 = vector.load %arg16[%c0_158, %c0_159] : memref<8x32xf32, #tpu.memory_space<vmem>>, vector<8x32xf32>
    tpu.vector_store %arg16[%c0_158, %c0_159], %577 {strides = array<i32>} : memref<8x32xf32, #tpu.memory_space<vmem>>, vector<8x32xf32>,
    %c0_160 = arith.constant 0 : index
    %c0_161 = arith.constant 0 : index
    %587 = vector.load %arg17[%c0_160, %c0_161] : memref<8x32xf32, #tpu.memory_space<vmem>>, vector<8x32xf32>
    tpu.vector_store %arg17[%c0_160, %c0_161], %575 {strides = array<i32>} : memref<8x32xf32, #tpu.memory_space<vmem>>, vector<8x32xf32>,
    %c0_162 = arith.constant 0 : index
    %c0_163 = arith.constant 0 : index
    %588 = vector.load %arg8[%c0_162, %c0_163] : memref<32x128xbf16, #tpu.memory_space<vmem>>, vector<32x128xbf16>
    %c0_164 = arith.constant 0 : index
    %c0_165 = arith.constant 0 : index
    %589 = vector.load %arg9[%c0_164, %c0_165] : memref<8x128xf32, #tpu.memory_space<vmem>>, vector<8x128xf32>
    %c0_i32_166 = arith.constant 0 : i32
    %590 = arith.index_cast %c0_i32_166 : i32 to index
    %c0_167 = arith.constant 0 : index
    %c0_168 = arith.constant 0 : index
    %591 = vector.load %arg11[%590, %c0_167, %c0_168] : memref<8x8x32xf32, #tpu.memory_space<vmem>>, vector<1x8x32xf32>
    %592 = vector.shape_cast %591 : vector<1x8x32xf32> to vector<8x32xf32>
    %593 = arith.truncf %592 : vector<8x32xf32> to vector<8x32xbf16>
    %cst_169 = arith.constant dense<0.000000e+00> : vector<8x128xf32>
    %594 = tpu.matmul %593, %588, %cst_169 {dimension_numbers = #tpu.dot_dimension_numbers<[1], [0], [0], [1], [0, 0, 1, 1], [], []>} : vector<8x32xbf16>, vector<32x128xbf16>, vector<8x128xf32> -> vector<8x128xf32>
    %595 = arith.addf %594, %589 : vector<8x128xf32>
    %596 = arith.index_cast %c0_i32_166 : i32 to index
    %c0_170 = arith.constant 0 : index
    %c0_171 = arith.constant 0 : index
    %597 = vector.load %arg10[%596, %c0_170, %c0_171] : memref<8x8x128xf32, #tpu.memory_space<vmem>>, vector<1x8x128xf32>
    %598 = vector.shape_cast %597 : vector<1x8x128xf32> to vector<8x128xf32>
    %599 = vector.shape_cast %595 : vector<8x128xf32> to vector<1x8x128xf32>
    tpu.vector_store %arg10[%596, %c0_170, %c0_171], %599 {strides = array<i32>} : memref<8x8x128xf32, #tpu.memory_space<vmem>>, vector<1x8x128xf32>,
    %c1_i32_172 = arith.constant 1 : i32
    %600 = arith.index_cast %c1_i32_172 : i32 to index
    %c0_173 = arith.constant 0 : index
    %c0_174 = arith.constant 0 : index
    %601 = vector.load %arg11[%600, %c0_173, %c0_174] : memref<8x8x32xf32, #tpu.memory_space<vmem>>, vector<1x8x32xf32>
    %602 = vector.shape_cast %601 : vector<1x8x32xf32> to vector<8x32xf32>
    %603 = arith.truncf %602 : vector<8x32xf32> to vector<8x32xbf16>
    %cst_175 = arith.constant dense<0.000000e+00> : vector<8x128xf32>
    %604 = tpu.matmul %603, %588, %cst_175 {dimension_numbers = #tpu.dot_dimension_numbers<[1], [0], [0], [1], [0, 0, 1, 1], [], []>} : vector<8x32xbf16>, vector<32x128xbf16>, vector<8x128xf32> -> vector<8x128xf32>
    %605 = arith.addf %604, %589 : vector<8x128xf32>
    %606 = arith.index_cast %c1_i32_172 : i32 to index
    %c0_176 = arith.constant 0 : index
    %c0_177 = arith.constant 0 : index
    %607 = vector.load %arg10[%606, %c0_176, %c0_177] : memref<8x8x128xf32, #tpu.memory_space<vmem>>, vector<1x8x128xf32>
    %608 = vector.shape_cast %607 : vector<1x8x128xf32> to vector<8x128xf32>
    %609 = vector.shape_cast %605 : vector<8x128xf32> to vector<1x8x128xf32>
    tpu.vector_store %arg10[%606, %c0_176, %c0_177], %609 {strides = array<i32>} : memref<8x8x128xf32, #tpu.memory_space<vmem>>, vector<1x8x128xf32>,
    %c2_i32_178 = arith.constant 2 : i32
    %610 = arith.index_cast %c2_i32_178 : i32 to index
    %c0_179 = arith.constant 0 : index
    %c0_180 = arith.constant 0 : index
    %611 = vector.load %arg11[%610, %c0_179, %c0_180] : memref<8x8x32xf32, #tpu.memory_space<vmem>>, vector<1x8x32xf32>
    %612 = vector.shape_cast %611 : vector<1x8x32xf32> to vector<8x32xf32>
    %613 = arith.truncf %612 : vector<8x32xf32> to vector<8x32xbf16>
    %cst_181 = arith.constant dense<0.000000e+00> : vector<8x128xf32>
    %614 = tpu.matmul %613, %588, %cst_181 {dimension_numbers = #tpu.dot_dimension_numbers<[1], [0], [0], [1], [0, 0, 1, 1], [], []>} : vector<8x32xbf16>, vector<32x128xbf16>, vector<8x128xf32> -> vector<8x128xf32>
    %615 = arith.addf %614, %589 : vector<8x128xf32>
    %616 = arith.index_cast %c2_i32_178 : i32 to index
    %c0_182 = arith.constant 0 : index
    %c0_183 = arith.constant 0 : index
    %617 = vector.load %arg10[%616, %c0_182, %c0_183] : memref<8x8x128xf32, #tpu.memory_space<vmem>>, vector<1x8x128xf32>
    %618 = vector.shape_cast %617 : vector<1x8x128xf32> to vector<8x128xf32>
    %619 = vector.shape_cast %615 : vector<8x128xf32> to vector<1x8x128xf32>
    tpu.vector_store %arg10[%616, %c0_182, %c0_183], %619 {strides = array<i32>} : memref<8x8x128xf32, #tpu.memory_space<vmem>>, vector<1x8x128xf32>,
    %c3_i32_184 = arith.constant 3 : i32
    %620 = arith.index_cast %c3_i32_184 : i32 to index
    %c0_185 = arith.constant 0 : index
    %c0_186 = arith.constant 0 : index
    %621 = vector.load %arg11[%620, %c0_185, %c0_186] : memref<8x8x32xf32, #tpu.memory_space<vmem>>, vector<1x8x32xf32>
    %622 = vector.shape_cast %621 : vector<1x8x32xf32> to vector<8x32xf32>
    %623 = arith.truncf %622 : vector<8x32xf32> to vector<8x32xbf16>
    %cst_187 = arith.constant dense<0.000000e+00> : vector<8x128xf32>
    %624 = tpu.matmul %623, %588, %cst_187 {dimension_numbers = #tpu.dot_dimension_numbers<[1], [0], [0], [1], [0, 0, 1, 1], [], []>} : vector<8x32xbf16>, vector<32x128xbf16>, vector<8x128xf32> -> vector<8x128xf32>
    %625 = arith.addf %624, %589 : vector<8x128xf32>
    %626 = arith.index_cast %c3_i32_184 : i32 to index
    %c0_188 = arith.constant 0 : index
    %c0_189 = arith.constant 0 : index
    %627 = vector.load %arg10[%626, %c0_188, %c0_189] : memref<8x8x128xf32, #tpu.memory_space<vmem>>, vector<1x8x128xf32>
    %628 = vector.shape_cast %627 : vector<1x8x128xf32> to vector<8x128xf32>
    %629 = vector.shape_cast %625 : vector<8x128xf32> to vector<1x8x128xf32>
    tpu.vector_store %arg10[%626, %c0_188, %c0_189], %629 {strides = array<i32>} : memref<8x8x128xf32, #tpu.memory_space<vmem>>, vector<1x8x128xf32>,
    %c4_i32_190 = arith.constant 4 : i32
    %630 = arith.index_cast %c4_i32_190 : i32 to index
    %c0_191 = arith.constant 0 : index
    %c0_192 = arith.constant 0 : index
    %631 = vector.load %arg11[%630, %c0_191, %c0_192] : memref<8x8x32xf32, #tpu.memory_space<vmem>>, vector<1x8x32xf32>
    %632 = vector.shape_cast %631 : vector<1x8x32xf32> to vector<8x32xf32>
    %633 = arith.truncf %632 : vector<8x32xf32> to vector<8x32xbf16>
    %cst_193 = arith.constant dense<0.000000e+00> : vector<8x128xf32>
    %634 = tpu.matmul %633, %588, %cst_193 {dimension_numbers = #tpu.dot_dimension_numbers<[1], [0], [0], [1], [0, 0, 1, 1], [], []>} : vector<8x32xbf16>, vector<32x128xbf16>, vector<8x128xf32> -> vector<8x128xf32>
    %635 = arith.addf %634, %589 : vector<8x128xf32>
    %636 = arith.index_cast %c4_i32_190 : i32 to index
    %c0_194 = arith.constant 0 : index
    %c0_195 = arith.constant 0 : index
    %637 = vector.load %arg10[%636, %c0_194, %c0_195] : memref<8x8x128xf32, #tpu.memory_space<vmem>>, vector<1x8x128xf32>
    %638 = vector.shape_cast %637 : vector<1x8x128xf32> to vector<8x128xf32>
    %639 = vector.shape_cast %635 : vector<8x128xf32> to vector<1x8x128xf32>
    tpu.vector_store %arg10[%636, %c0_194, %c0_195], %639 {strides = array<i32>} : memref<8x8x128xf32, #tpu.memory_space<vmem>>, vector<1x8x128xf32>,
    %c5_i32_196 = arith.constant 5 : i32
    %640 = arith.index_cast %c5_i32_196 : i32 to index
    %c0_197 = arith.constant 0 : index
    %c0_198 = arith.constant 0 : index
    %641 = vector.load %arg11[%640, %c0_197, %c0_198] : memref<8x8x32xf32, #tpu.memory_space<vmem>>, vector<1x8x32xf32>
    %642 = vector.shape_cast %641 : vector<1x8x32xf32> to vector<8x32xf32>
    %643 = arith.truncf %642 : vector<8x32xf32> to vector<8x32xbf16>
    %cst_199 = arith.constant dense<0.000000e+00> : vector<8x128xf32>
    %644 = tpu.matmul %643, %588, %cst_199 {dimension_numbers = #tpu.dot_dimension_numbers<[1], [0], [0], [1], [0, 0, 1, 1], [], []>} : vector<8x32xbf16>, vector<32x128xbf16>, vector<8x128xf32> -> vector<8x128xf32>
    %645 = arith.addf %644, %589 : vector<8x128xf32>
    %646 = arith.index_cast %c5_i32_196 : i32 to index
    %c0_200 = arith.constant 0 : index
    %c0_201 = arith.constant 0 : index
    %647 = vector.load %arg10[%646, %c0_200, %c0_201] : memref<8x8x128xf32, #tpu.memory_space<vmem>>, vector<1x8x128xf32>
    %648 = vector.shape_cast %647 : vector<1x8x128xf32> to vector<8x128xf32>
    %649 = vector.shape_cast %645 : vector<8x128xf32> to vector<1x8x128xf32>
    tpu.vector_store %arg10[%646, %c0_200, %c0_201], %649 {strides = array<i32>} : memref<8x8x128xf32, #tpu.memory_space<vmem>>, vector<1x8x128xf32>,
    %c6_i32_202 = arith.constant 6 : i32
    %650 = arith.index_cast %c6_i32_202 : i32 to index
    %c0_203 = arith.constant 0 : index
    %c0_204 = arith.constant 0 : index
    %651 = vector.load %arg11[%650, %c0_203, %c0_204] : memref<8x8x32xf32, #tpu.memory_space<vmem>>, vector<1x8x32xf32>
    %652 = vector.shape_cast %651 : vector<1x8x32xf32> to vector<8x32xf32>
    %653 = arith.truncf %652 : vector<8x32xf32> to vector<8x32xbf16>
    %cst_205 = arith.constant dense<0.000000e+00> : vector<8x128xf32>
    %654 = tpu.matmul %653, %588, %cst_205 {dimension_numbers = #tpu.dot_dimension_numbers<[1], [0], [0], [1], [0, 0, 1, 1], [], []>} : vector<8x32xbf16>, vector<32x128xbf16>, vector<8x128xf32> -> vector<8x128xf32>
    %655 = arith.addf %654, %589 : vector<8x128xf32>
    %656 = arith.index_cast %c6_i32_202 : i32 to index
    %c0_206 = arith.constant 0 : index
    %c0_207 = arith.constant 0 : index
    %657 = vector.load %arg10[%656, %c0_206, %c0_207] : memref<8x8x128xf32, #tpu.memory_space<vmem>>, vector<1x8x128xf32>
    %658 = vector.shape_cast %657 : vector<1x8x128xf32> to vector<8x128xf32>
    %659 = vector.shape_cast %655 : vector<8x128xf32> to vector<1x8x128xf32>
    tpu.vector_store %arg10[%656, %c0_206, %c0_207], %659 {strides = array<i32>} : memref<8x8x128xf32, #tpu.memory_space<vmem>>, vector<1x8x128xf32>,
    %c7_i32_208 = arith.constant 7 : i32
    %660 = arith.index_cast %c7_i32_208 : i32 to index
    %c0_209 = arith.constant 0 : index
    %c0_210 = arith.constant 0 : index
    %661 = vector.load %arg11[%660, %c0_209, %c0_210] : memref<8x8x32xf32, #tpu.memory_space<vmem>>, vector<1x8x32xf32>
    %662 = vector.shape_cast %661 : vector<1x8x32xf32> to vector<8x32xf32>
    %663 = arith.truncf %662 : vector<8x32xf32> to vector<8x32xbf16>
    %cst_211 = arith.constant dense<0.000000e+00> : vector<8x128xf32>
    %664 = tpu.matmul %663, %588, %cst_211 {dimension_numbers = #tpu.dot_dimension_numbers<[1], [0], [0], [1], [0, 0, 1, 1], [], []>} : vector<8x32xbf16>, vector<32x128xbf16>, vector<8x128xf32> -> vector<8x128xf32>
    %665 = arith.addf %664, %589 : vector<8x128xf32>
    %666 = arith.index_cast %c7_i32_208 : i32 to index
    %c0_212 = arith.constant 0 : index
    %c0_213 = arith.constant 0 : index
    %667 = vector.load %arg10[%666, %c0_212, %c0_213] : memref<8x8x128xf32, #tpu.memory_space<vmem>>, vector<1x8x128xf32>
    %668 = vector.shape_cast %667 : vector<1x8x128xf32> to vector<8x128xf32>
    %669 = vector.shape_cast %665 : vector<8x128xf32> to vector<1x8x128xf32>
    tpu.vector_store %arg10[%666, %c0_212, %c0_213], %669 {strides = array<i32>} : memref<8x8x128xf32, #tpu.memory_space<vmem>>, vector<1x8x128xf32>,
    %c8_i32_214 = arith.constant 8 : i32
    return
  }
  func.func @transform_0(%arg0: i32) -> (i32, i32, i32) {
    %c0_i32 = arith.constant 0 : i32
    %c0_i32_0 = arith.constant 0 : i32
    %c0_i32_1 = arith.constant 0 : i32
    return %arg0, %c0_i32, %c0_i32_0 : i32, i32, i32
  }
  func.func @transform_1(%arg0: i32) -> (i32, i32) {
    %c0_i32 = arith.constant 0 : i32
    %c0_i32_0 = arith.constant 0 : i32
    %c0_i32_1 = arith.constant 0 : i32
    return %c0_i32, %c0_i32_0 : i32, i32
  }
  func.func @transform_2(%arg0: i32) -> (i32, i32) {
    %c0_i32 = arith.constant 0 : i32
    %c0_i32_0 = arith.constant 0 : i32
    %c0_i32_1 = arith.constant 0 : i32
    return %c0_i32, %c0_i32_0 : i32, i32
  }
  func.func @transform_3(%arg0: i32) -> (i32, i32) {
    %c0_i32 = arith.constant 0 : i32
    %c0_i32_0 = arith.constant 0 : i32
    %c0_i32_1 = arith.constant 0 : i32
    return %c0_i32, %c0_i32_0 : i32, i32
  }
  func.func @transform_4(%arg0: i32) -> (i32, i32) {
    %c0_i32 = arith.constant 0 : i32
    %c0_i32_0 = arith.constant 0 : i32
    %c0_i32_1 = arith.constant 0 : i32
    return %c0_i32, %c0_i32_0 : i32, i32
  }
  func.func @transform_5(%arg0: i32) -> (i32, i32) {
    %c0_i32 = arith.constant 0 : i32
    %c0_i32_0 = arith.constant 0 : i32
    %c0_i32_1 = arith.constant 0 : i32
    return %c0_i32, %c0_i32_0 : i32, i32
  }
  func.func @transform_6(%arg0: i32) -> (i32, i32) {
    %c0_i32 = arith.constant 0 : i32
    %c0_i32_0 = arith.constant 0 : i32
    %c0_i32_1 = arith.constant 0 : i32
    return %c0_i32, %c0_i32_0 : i32, i32
  }
  func.func @transform_7(%arg0: i32) -> (i32, i32) {
    %c0_i32 = arith.constant 0 : i32
    %c0_i32_0 = arith.constant 0 : i32
    %c0_i32_1 = arith.constant 0 : i32
    return %c0_i32, %c0_i32_0 : i32, i32
  }
  func.func @transform_8(%arg0: i32) -> (i32, i32) {
    %c0_i32 = arith.constant 0 : i32
    %c0_i32_0 = arith.constant 0 : i32
    %c0_i32_1 = arith.constant 0 : i32
    return %c0_i32, %c0_i32_0 : i32, i32
  }
  func.func @transform_9(%arg0: i32) -> (i32, i32, i32) {
    %c0_i32 = arith.constant 0 : i32
    %c0_i32_0 = arith.constant 0 : i32
    %c0_i32_1 = arith.constant 0 : i32
    return %arg0, %c0_i32, %c0_i32_0 : i32, i32, i32
  }
}

</mosaic_0001>

<bundles_post_ra>
// kernel: tpu_custom_call.1
= control target key start
LH: loop header
LB: loop body
LE: loop exit
PB: predicated region body
PF: predicated region fallthrough
CT: control target
= control target key end

     0   :  { %14 = vsyncpa [#allocation10], 0  ;;  %s4087_s0 = inlined_call_operand.hbm [shape: f32[8,8,128], index: 0, kind: input, shape index: {}]   ;;  %s4088_s1 = inlined_call_operand.hbm [shape: f32[8,32], index: 1, kind: input, shape index: {}]   ;;  %s4089_s2 = inlined_call_operand.hbm [shape: bf16[32,128], index: 2, kind: input, shape index: {}]   ;;  %s4090_s3 = inlined_call_operand.hbm [shape: bf16[64,128], index: 3, kind: input, shape index: {}]   ;;  %s4091_s4 = inlined_call_operand.vmem [shape: f32[1,128], index: 4, kind: input, shape index: {}]   ;;  %s4092_s5 = inlined_call_operand.hbm [shape: bf16[64,128], index: 5, kind: input, shape index: {}]   ;;  %s4093_s6 = inlined_call_operand.vmem [shape: f32[1,128], index: 6, kind: input, shape index: {}]   ;;  %s4094_s7 = inlined_call_operand.vmem [shape: bf16[32,128], index: 7, kind: input, shape index: {}]   ;;  %s4095_s8 = inlined_call_operand.vmem [shape: f32[8,128], index: 8, kind: input, shape index: {}]   ;;  %s4096_s9 = inlined_call_operand.hbm [shape: f32[8,8,128], index: 9, kind: output, shape index: {}]  }
   0x1   :  { %15 = vsyncpa [#allocation13], 0 }
   0x2   :  { %16 = vsyncpa [#allocation16], 0 }
   0x3   :  { %17 = vsyncpa [#allocation11], 0  ;;  %s3286_s30 = smov [#allocation12]   ;;  %s3146_s13 = scalar_lea.hbm %s4088_s1, 128 }
   0x4   :  { %s36_s10 = sshll.u32 %s3286_s30, 4  ;;  %p3147_p0 = scmp.ne.s32.totalorder %s4088_s1, %s3146_s13  ;;  %s37_s10 = int_to_ptr.vmem [resolvable:$true] %s36_s10 }
   0x5   :  { %p3150_p1 = scmp.lt.u32.totalorder %s3146_s13, %s4088_s1 }
   0x7   :  { %p3152_p2 = pnand %p3150_p1, %p3147_p0 }
   0x9   :  { %3155 = shalt.err (!%p3152_p2)
}
   0xa   :  { %s3156_s18 = scalar_lea.vmem %s37_s10, 128  ;;  %p3161_p4 = scmp.lt.s32.totalorder %s37_s10, %s37_s10 }
   0xb   :  { %p3157_p3 = scmp.ne.s32.totalorder %s37_s10, %s3156_s18  ;;  %p3162_p5 = scmp.lt.s32.totalorder %s3156_s18, %s3156_s18 }
   0xd   :  { %p3163_p6 = por %p3162_p5, %p3161_p4 }
   0xf   :  { %p3164_p7 = pnand %p3163_p6, %p3157_p3 }
  0x11   :  { %3167 = shalt.err (!%p3164_p7)
}
  0x12   :  { %39 = dma.hbm_to_vmem [thread:$0]  %s4088_s1, 128, %s37_s10, [#allocation13]  }
  0x13   :  { %s3287_s21 = smov [#allocation15]   ;;  %s3288_s23 = smov [#allocation9]  }
  0x14   :  { %s57_s22 = sshll.u32 %s3287_s21, 4  ;;  %s23_s24 = sshll.u32 %s3288_s23, 4  ;;  %s58_s22 = int_to_ptr.vmem [resolvable:$true] %s57_s22  ;;  %s24_s24 = int_to_ptr.vmem [resolvable:$true] %s23_s24 }
  0x15   :  { %s3168_s27 = scalar_lea.hbm %s4090_s3, 512 }
  0x16   :  { %p3169_p8 = scmp.ne.s32.totalorder %s4090_s3, %s3168_s27  ;;  %p3172_p9 = scmp.lt.u32.totalorder %s3168_s27, %s4090_s3 }
  0x18   :  { %p3174_p10 = pnand %p3172_p9, %p3169_p8 }
  0x1a   :  { %3177 = shalt.err (!%p3174_p10)
}
  0x1b   :  { %s3178_s1 = scalar_lea.vmem %s58_s22, 512  ;;  %p3183_p12 = scmp.lt.s32.totalorder %s58_s22, %s58_s22 }
  0x1c   :  { %p3179_p11 = scmp.ne.s32.totalorder %s58_s22, %s3178_s1  ;;  %p3184_p13 = scmp.lt.s32.totalorder %s3178_s1, %s3178_s1 }
  0x1e   :  { %p3185_p0 = por %p3184_p13, %p3183_p12 }
  0x20   :  { %p3186_p1 = pnand %p3185_p0, %p3179_p11 }
  0x22   :  { %3189 = shalt.err (!%p3186_p1)
}
  0x23   :  { %s3289_s10 = smov 64   ;;  %s3290_s12 = smov 4  }
  0x24   :  { %63 = dma.hbm_to_vmem [thread:$0]  %s4090_s3, 512, %s58_s22, [#allocation16], %s3289_s10, %s3289_s10, %s3290_s12  }
  0x25   :  { %s3190_s17 = scalar_lea.hbm %s4087_s0, 1024 }
  0x26   :  { %p3191_p2 = scmp.ne.s32.totalorder %s4087_s0, %s3190_s17  ;;  %p3194_p3 = scmp.lt.u32.totalorder %s3190_s17, %s4087_s0 }
  0x28   :  { %p3196_p4 = pnand %p3194_p3, %p3191_p2 }
  0x2a   :  { %3199 = shalt.err (!%p3196_p4)
}
  0x2b   :  { %s3200_s23 = scalar_lea.vmem %s24_s24, 1024  ;;  %p3205_p6 = scmp.lt.s32.totalorder %s24_s24, %s24_s24 }
  0x2c   :  { %p3201_p5 = scmp.ne.s32.totalorder %s24_s24, %s3200_s23  ;;  %p3206_p7 = scmp.lt.s32.totalorder %s3200_s23, %s3200_s23 }
  0x2e   :  { %p3207_p8 = por %p3206_p7, %p3205_p6 }
  0x30   :  { %p3208_p9 = pnand %p3207_p8, %p3201_p5 }
  0x32   :  { %3211 = shalt.err (!%p3208_p9)
}
  0x33   :  { %s3291_s3 = smov 128   ;;  %s3292_s22 = smov 8  }
  0x34   :  { %29 = dma.hbm_to_vmem [thread:$0]  %s4087_s0, 1024, %s24_s24, [#allocation10], %s3291_s3, %s3291_s3, %s3292_s22  }
  0x35   :  { %s3293_s27 = smov [#allocation14]   ;;  %s3294_s29 = smov [#allocation17]  }
  0x36   :  { %s45_s28 = sshll.u32 %s3293_s27, 4  ;;  %s71_s30 = sshll.u32 %s3294_s29, 4  ;;  %s46_s28 = int_to_ptr.vmem [resolvable:$true] %s45_s28  ;;  %s72_s30 = int_to_ptr.vmem [resolvable:$true] %s71_s30 }
  0x37   :  { %s3212_s13 = scalar_lea.hbm %s4089_s2, 256 }
  0x38   :  { %p3213_p10 = scmp.ne.s32.totalorder %s4089_s2, %s3212_s13  ;;  %p3216_p11 = scmp.lt.u32.totalorder %s3212_s13, %s4089_s2 }
  0x3a   :  { %p3218_p12 = pnand %p3216_p11, %p3213_p10 }
  0x3c   :  { %3221 = shalt.err (!%p3218_p12)
}
  0x3d   :  { %s3222_s0 = scalar_lea.vmem %s46_s28, 256  ;;  %p3227_p0 = scmp.lt.s32.totalorder %s46_s28, %s46_s28 }
  0x3e   :  { %p3223_p13 = scmp.ne.s32.totalorder %s46_s28, %s3222_s0  ;;  %p3228_p1 = scmp.lt.s32.totalorder %s3222_s0, %s3222_s0 }
  0x40   :  { %p3229_p2 = por %p3228_p1, %p3227_p0 }
  0x42   :  { %p3230_p3 = pnand %p3229_p2, %p3223_p13 }
  0x44   :  { %3233 = shalt.err (!%p3230_p3)
}
  0x45   :  { %51 = dma.hbm_to_vmem [thread:$0]  %s4089_s2, 256, %s46_s28, [#allocation13], %s3289_s10, %s3289_s10, %s3290_s12  }
  0x46   :  { %s3234_s21 = scalar_lea.hbm %s4092_s5, 512 }
  0x47   :  { %p3235_p4 = scmp.ne.s32.totalorder %s4092_s5, %s3234_s21  ;;  %p3238_p5 = scmp.lt.u32.totalorder %s3234_s21, %s4092_s5 }
  0x49   :  { %p3240_p6 = pnand %p3238_p5, %p3235_p4 }
  0x4b   :  { %3243 = shalt.err (!%p3240_p6)
}
  0x4c   :  { %s3244_s29 = scalar_lea.vmem %s72_s30, 512  ;;  %p3249_p8 = scmp.lt.s32.totalorder %s72_s30, %s72_s30 }
  0x4d   :  { %p3245_p7 = scmp.ne.s32.totalorder %s72_s30, %s3244_s29  ;;  %p3250_p9 = scmp.lt.s32.totalorder %s3244_s29, %s3244_s29 }
  0x4f   :  { %p3251_p10 = por %p3250_p9, %p3249_p8 }
  0x51   :  { %p3252_p11 = pnand %p3251_p10, %p3245_p7 }
  0x53   :  { %3255 = shalt.err (!%p3252_p11)
}
  0x54   :  { %77 = dma.hbm_to_vmem [thread:$0]  %s4092_s5, 512, %s72_s30, [#allocation16], %s3289_s10, %s3289_s10, %s3290_s12  }
  0x55   :  { %3278 = dma.done.wait [#allocation10], 1024  }
  0x56   :  { %3279 = vsyncadd [#allocation10], 4294966272 }
  0x57   :  { %3280 = dma.done.wait [#allocation13], 384  }
  0x58   :  { %3281 = vsyncadd [#allocation13], 4294966912 }
  0x59   :  { %3282 = dma.done.wait [#allocation16], 1024  }
  0x5a   :  { %3283 = vsyncadd [#allocation16], 4294966272  ;;  %v3295_v0 = vmov 0.0   ;;  %vm3296_vm0 = vmmov 0   ;;  %v3428_v1 = vld [vmem:[#allocation14] sm:$0xff]   ;;  %vm105_vm1 = vcmask 261120  }
  0x5b   :  { %2634 = vmatprep.subr.bf16.mxu0 %v3295_v0  ;;  %2638 = vmatprep.mubr.msk.bf16.mxu0 %vm3296_vm0, %v3295_v0  ;;  %v3431_v2 = vld [vmem:[#allocation14 + $0x8] sm:$0xff]   ;;  %v104_v3 = vld [vmem:[#allocation12] sm:$0xff]  ;;  %s3297_s5 = smov 32   ;;  %v3451_v24 = vld [vmem:[#allocation15] sm:$0xff]   ;;  %vm265_vm2 = vcmask 523264  }
  0x5c   :  { %2642 = vmatprep.subr.bf16.mxu1 %v3295_v0  ;;  %2650 = vmatprep.mubr.msk.bf16.mxu1 %vm3296_vm0, %v3295_v0  ;;  %106 = vst.msk [vmem:[#allocation3] sm:$0xff] %vm105_vm1, %v104_v3  ;;  %107 = vst.msk [vmem:[#allocation4] sm:$0xff] %vm105_vm1, %v104_v3  ;;  %v140_v6 = vld [vmem:[#allocation9] sm:$0xff]  ;;  %v3458_v26 = vld [vmem:[#allocation15 + $0x10] sm:$0xff]  }
  0x5d   :  { %2635 = vmatpush3.bf16.msra.mxu0 %v3428_v1  ;;  %108 = vst.msk [vmem:[#allocation5] sm:$0xff] %vm105_vm1, %v104_v3  ;;  %109 = vst.msk [vmem:[#allocation6] sm:$0xff] %vm105_vm1, %v104_v3  ;;  %2643 = vmatpush3.bf16.msra.mxu1 %v3451_v24  ;;  %v3454_v25 = vld [vmem:[#allocation15 + $0x8] sm:$0xff]   ;;  %v3464_v28 = vld [vmem:[#allocation15 + $0x18] sm:$0xff]  }
  0x5e   :  { %2636 = vmatprep.subr.bf16.mxu0 %v3295_v0  ;;  %110 = vst.msk [vmem:[#allocation7] sm:$0xff] %vm105_vm1, %v104_v3  ;;  %111 = vst.msk [vmem:[#allocation8] sm:$0xff] %vm105_vm1, %v104_v3  ;;  %2644 = vmatprep.subr.bf16.mxu1 %v3295_v0  ;;  %v3484_v40 = vld [vmem:[%s4091_s4] ss:$0 sm:$0xff]  ;;  %v450_v46 = vld [vmem:[#allocation9 + $0x8] sm:$0xff] }
  0x61   :  { %2637 = vmatpush3.bf16.msra.mxu0 %v3431_v2  ;;  %2645 = vmatpush3.bf16.msra.mxu1 %v3454_v25 }
  0x62   :  { %2654 = vmatprep.subr.bf16.mxu0 %v3295_v0  ;;  %2646 = vmatprep.subr.bf16.mxu1 %v3295_v0 }
  0x63   :  { %v134_v4 = vld [vmem:[#allocation3] sm:$0xff]  ;;  %v135_v13 = vld [vmem:[#allocation4] sm:$0xff] }
  0x64   :  { %v141_v5 = vpack.c.bf16 %v134_v4, %v134_v4  ;;  %v136_v29 = vld [vmem:[#allocation5] sm:$0xff]  ;;  %v137_v53 = vld [vmem:[#allocation6] sm:$0xff] }
  0x65   :  { %2647 = vmatpush3.bf16.msra.mxu1 %v3458_v26 }
  0x66   :  { %2639 = vmatmul.mubr.msk.bf16.vlgmr.msra.gmra.mrb[0].mxu0 %vm105_vm1, %v141_v5  ;;  %2648 = vmatprep.subr.bf16.mxu1 %v3295_v0 }
  0x67   :  { %2662 = vmatprep.mubr.msk.bf16.mxu0 %vm3296_vm0, %v3295_v0 }
  0x69   :  { %2649 = vmatpush3.bf16.msra.mxu1 %v3464_v28 }
  0x6a   :  { %2666 = vmatprep.subr.bf16.mxu1 %v3295_v0 }
 0x139   :  { %v192_v7 = vpop.f32.mrb[0].mxu0 }
 0x13a   :  { %v198_v8 = vadd.f32 %v192_v7, %v140_v6  ;;  %v2640_v9 = vpop.f32.mrb[1].mxu0 }
 0x13b   :  { %v195_v10 = vpop.f32.mrb[2].mxu0 }
 0x13c   :  { %v2641_v11 = vpop.f32.mrb[3].mxu0  ;;  %2990 = vtanh.f32 %v198_v8  ;;  %v199_v14 = vmul.f32 0.5, %v198_v8 }
 0x13e   :  { %2992 = vtanh.f32 %v199_v14  ;;  %v3500_v14 = vld [vmem:[#allocation17] sm:$0xff]  }
 0x13f   :  { %2655 = vmatpush3.bf16.msra.mxu0 %v3500_v14 }
 0x140   :  { %2656 = vmatprep.subr.bf16.mxu0 %v3295_v0 }
 0x146   :  { %v2991_v12 = vpop.eup %2990 }
 0x147   :  { %210 = vrot.lane.b32.xlu0 %v2991_v12, %s3289_s10 }
 0x148   :  { %v2993_v15 = vpop.eup %2992 }
 0x149   :  { %v201_v16 = vadd.f32 1.0, %v2993_v15  ;;  %v3503_v15 = vld [vmem:[#allocation17 + $0x8] sm:$0xff]  }
 0x14a   :  { %2657 = vmatpush3.bf16.msra.mxu0 %v3503_v15 }
 0x14b   :  { %205 = vrot.lane.b32.xlu0 %v135_v13, %s3297_s5  ;;  %v202_v17 = vmul.f32 0.5, %v201_v16  ;;  %2658 = vmatprep.subr.bf16.mxu0 %v3295_v0 }
 0x1b9   :  { %v211_v18 = vpop.permute.xlu0 %210 }
 0x1ba   :  { %v213_v19 = vmul.f32 %v211_v18, %v202_v17  ;;  %v3519_v18 = vld [vmem:[#allocation17 + $0x18] sm:$0xff]  }
 0x1bc   :  { %215 = vrot.lane.b32.xlu1 %v213_v19, %s3297_s5  ;;  %v138_v19 = vld [vmem:[#allocation7] sm:$0xff] }
 0x1bd   :  { %v206_v20 = vpop.permute.xlu0 %205 }
 0x1be   :  { %v208_v21 = vmul.f32 %v206_v20, %v202_v17 }
 0x22e   :  { %v216_v22 = vpop.permute.xlu1 %215 }
 0x22f   :  { %v3448_v23 = vadd.f32 %v216_v22, %v208_v21 }
 0x231   :  { %2994 = vtanh.f32 %v3448_v23 }
 0x23b   :  { %v2995_v27 = vpop.eup %2994 }
 0x23c   :  { %221 = vrot.lane.b32.xlu1 %v2995_v27, %s3289_s10 }
 0x2ae   :  { %v222_v30 = vpop.permute.xlu1 %221 }
 0x2af   :  { %v224_v31 = vmul.f32 %v222_v30, %v202_v17  ;;  %v3509_v17 = vld [vmem:[#allocation17 + $0x10] sm:$0xff]  }
 0x2b0   :  { %2659 = vmatpush3.bf16.msra.mxu0 %v3509_v17 }
 0x2b1   :  { %v2968_v32 = vpack.i.bf16 %v136_v29, %v224_v31  ;;  %v451_v33 = vpack.c.bf16 %v224_v31, %v224_v31  ;;  %2660 = vmatprep.subr.bf16.mxu0 %v3295_v0 }
 0x2b3   :  { %2969 = vrot.lane.b32.xlu0 %v2968_v32, %s3297_s5  ;;  %453 = vrot.lane.b32.xlu1 %v451_v33, %s3297_s5 }
 0x2b4   :  { %2661 = vmatpush3.bf16.msra.mxu0 %v3519_v18 }
 0x2b5   :  { %2674 = vmatprep.subr.bf16.mxu0 %v3295_v0 }
 0x325   :  { %v2970_v34 = vpop.permute.xlu0 %2969  ;;  %v454_v39 = vpop.permute.xlu1 %453 }
 0x326   :  { %v2972_v35 = vunpack.i.h.bf16 %v2970_v34  ;;  %v2971_v36 = vunpack.i.l.bf16 %v2970_v34 }
 0x328   :  { %v233_v37 = vsel %vm105_vm1, %v2971_v36, %v2972_v35 }
 0x329   :  { %v234_v38 = vpack.c.bf16 %v233_v37, %v233_v37 }
 0x32b   :  { %2651 = vmatmul.mubr.msk.bf16.vlgmr.msra.gmra.mrb[0].mxu1 %vm265_vm2, %v234_v38 }
 0x32c   :  { %2667 = vmatpush3.bf16.msra.mxu1 %v3428_v1  ;;  %2670 = vmatprep.mubr.msk.bf16.mxu1 %vm3296_vm0, %v3295_v0 }
 0x32d   :  { %2668 = vmatprep.subr.bf16.mxu1 %v3295_v0 }
 0x330   :  { %2669 = vmatpush3.bf16.msra.mxu1 %v3431_v2 }
 0x331   :  { %2686 = vmatprep.subr.bf16.mxu1 %v3295_v0 }
 0x333   :  { %2671 = vmatmul.mubr.msk.bf16.vlgmr.msra.gmra.mrb[4].mxu1 %vm105_vm1, %v454_v39 }
 0x334   :  { %2694 = vmatprep.mubr.msk.bf16.mxu1 %vm3296_vm0, %v3295_v0  ;;  %2687 = vmatpush3.bf16.msra.mxu1 %v3500_v14 }
 0x335   :  { %2688 = vmatprep.subr.bf16.mxu1 %v3295_v0 }
 0x338   :  { %2689 = vmatpush3.bf16.msra.mxu1 %v3503_v15 }
 0x339   :  { %2690 = vmatprep.subr.bf16.mxu1 %v3295_v0 }
 0x33c   :  { %2691 = vmatpush3.bf16.msra.mxu1 %v3509_v17 }
 0x33d   :  { %2692 = vmatprep.subr.bf16.mxu1 %v3295_v0 }
 0x340   :  { %2693 = vmatpush3.bf16.msra.mxu1 %v3519_v18 }
 0x341   :  { %2706 = vmatprep.subr.bf16.mxu1 %v3295_v0 }
 0x3fe   :  { %v303_v41 = vpop.f32.mrb[0].mxu1 }
 0x3ff   :  { %v304_v42 = vadd.f32 %v3484_v40, %v303_v41  ;;  %v2652_v43 = vpop.f32.mrb[1].mxu1  ;;  %v3563_v41 = vld [vmem:[%s4093_s6] ss:$0 sm:$0xff] }
 0x400   :  { %v306_v44 = vpop.f32.mrb[2].mxu1 }
 0x401   :  { %2996 = vtanh.f32 %v304_v42  ;;  %v2653_v45 = vpop.f32.mrb[3].mxu1  ;;  %v309_v55 = vmul.f32 0.5, %v304_v42 }
 0x406   :  { %v492_v47 = vpop.f32.mrb[4].mxu1 }
 0x407   :  { %v498_v48 = vadd.f32 %v492_v47, %v450_v46  ;;  %v2672_v49 = vpop.f32.mrb[5].mxu1 }
 0x408   :  { %v495_v50 = vpop.f32.mrb[6].mxu1 }
 0x409   :  { %2998 = vtanh.f32 %v498_v48  ;;  %v2673_v51 = vpop.f32.mrb[7].mxu1  ;;  %v499_v56 = vmul.f32 0.5, %v498_v48 }
 0x40a   :  { %3000 = vtanh.f32 %v309_v55 }
 0x40b   :  { %v2997_v52 = vpop.eup %2996  ;;  %3002 = vtanh.f32 %v499_v56 }
 0x40c   :  { %320 = vrot.lane.b32.xlu0 %v2997_v52, %s3289_s10 }
 0x410   :  { %315 = vrot.lane.b32.xlu0 %v137_v53, %s3297_s5  ;;  %v676_v53 = vld [vmem:[#allocation9 + $0x10] sm:$0xff] }
 0x413   :  { %v2999_v54 = vpop.eup %2998 }
 0x414   :  { %506 = vrot.lane.b32.xlu1 %v2999_v54, %s3289_s10  ;;  %v3001_v57 = vpop.eup %3000 }
 0x415   :  { %v311_v58 = vadd.f32 1.0, %v3001_v57  ;;  %v3003_v60 = vpop.eup %3002 }
 0x416   :  { %v501_v63 = vadd.f32 1.0, %v3003_v60  ;;  %v139_v60 = vld [vmem:[#allocation8] sm:$0xff] }
 0x417   :  { %v312_v59 = vmul.f32 0.5, %v311_v58 }
 0x418   :  { %v502_v3 = vmul.f32 0.5, %v501_v63 }
 0x41a   :  { %v504_v10 = vmul.f32 %v502_v3, %v3448_v23 }
 0x47e   :  { %v321_v61 = vpop.permute.xlu0 %320 }
 0x47f   :  { %v323_v62 = vmul.f32 %v321_v61, %v312_v59 }
 0x481   :  { %325 = vrot.lane.b32.xlu1 %v323_v62, %s3297_s5 }
 0x482   :  { %v316_v6 = vpop.permute.xlu0 %315 }
 0x483   :  { %v318_v7 = vmul.f32 %v316_v6, %v312_v59 }
 0x486   :  { %v507_v4 = vpop.permute.xlu1 %506 }
 0x487   :  { %v509_v5 = vmul.f32 %v507_v4, %v502_v3 }
 0x489   :  { %511 = vrot.lane.b32.xlu0 %v509_v5, %s3297_s5 }
 0x4f3   :  { %v326_v8 = vpop.permute.xlu1 %325 }
 0x4f4   :  { %v3492_v9 = vadd.f32 %v326_v8, %v318_v7 }
 0x4f6   :  { %3004 = vtanh.f32 %v3492_v9 }
 0x4fb   :  { %v512_v11 = vpop.permute.xlu0 %511 }
 0x4fc   :  { %v3496_v12 = vadd.f32 %v512_v11, %v504_v10 }
 0x4fe   :  { %3006 = vtanh.f32 %v3496_v12 }
 0x500   :  { %v3005_v13 = vpop.eup %3004 }
 0x501   :  { %331 = vrot.lane.b32.xlu1 %v3005_v13, %s3289_s10 }
 0x508   :  { %v3007_v16 = vpop.eup %3006 }
 0x509   :  { %517 = vrot.lane.b32.xlu0 %v3007_v16, %s3289_s10 }
 0x573   :  { %v332_v20 = vpop.permute.xlu1 %331 }
 0x574   :  { %v334_v21 = vmul.f32 %v332_v20, %v312_v59 }
 0x576   :  { %v2973_v22 = vpack.i.bf16 %v138_v19, %v334_v21 }
 0x578   :  { %2974 = vrot.lane.b32.xlu1 %v2973_v22, %s3297_s5 }
 0x57b   :  { %v518_v23 = vpop.permute.xlu0 %517 }
 0x57c   :  { %v520_v27 = vmul.f32 %v518_v23, %v502_v3  ;;  %525 = vrot.lane.b32.xlu1 %v334_v21, %s3289_s10 }
 0x57e   :  { %522 = vrot.lane.b32.xlu0 %v520_v27, %s3297_s5  ;;  %v677_v29 = vpack.c.bf16 %v520_v27, %v520_v27 }
 0x582   :  { %679 = vrot.lane.b32.xlu0 %v677_v29, %s3297_s5 }
 0x5ea   :  { %v2975_v30 = vpop.permute.xlu1 %2974 }
 0x5eb   :  { %v2977_v31 = vunpack.i.h.bf16 %v2975_v30  ;;  %v2976_v32 = vunpack.i.l.bf16 %v2975_v30 }
 0x5ed   :  { %v343_v33 = vsel %vm105_vm1, %v2976_v32, %v2977_v31 }
 0x5ee   :  { %v344_v34 = vpack.c.bf16 %v343_v33, %v343_v33  ;;  %v526_v36 = vpop.permute.xlu1 %525 }
 0x5f0   :  { %2663 = vmatmul.mubr.msk.bf16.vlgmr.msra.gmra.mrb[4].mxu0 %vm265_vm2, %v344_v34  ;;  %v523_v35 = vpop.permute.xlu0 %522 }
 0x5f1   :  { %2675 = vmatpush3.bf16.msra.mxu0 %v3451_v24  ;;  %2682 = vmatprep.mubr.msk.bf16.mxu0 %vm3296_vm0, %v3295_v0  ;;  %v528_v37 = vsel %vm105_vm1, %v523_v35, %v526_v36 }
 0x5f2   :  { %2676 = vmatprep.subr.bf16.mxu0 %v3295_v0  ;;  %v529_v38 = vpack.c.bf16 %v528_v37, %v528_v37 }
 0x5f4   :  { %v680_v39 = vpop.permute.xlu0 %679 }
 0x5f5   :  { %2677 = vmatpush3.bf16.msra.mxu0 %v3454_v25 }
 0x5f6   :  { %2678 = vmatprep.subr.bf16.mxu0 %v3295_v0 }
 0x5f9   :  { %2679 = vmatpush3.bf16.msra.mxu0 %v3458_v26 }
 0x5fa   :  { %2680 = vmatprep.subr.bf16.mxu0 %v3295_v0 }
 0x5fd   :  { %2681 = vmatpush3.bf16.msra.mxu0 %v3464_v28 }
 0x5fe   :  { %2698 = vmatprep.subr.bf16.mxu0 %v3295_v0 }
 0x600   :  { %2683 = vmatmul.mubr.msk.bf16.vlgmr.msra.gmra.mrb[8].mxu0 %vm265_vm2, %v529_v38 }
 0x601   :  { %2699 = vmatpush3.bf16.msra.mxu0 %v3428_v1  ;;  %2702 = vmatprep.mubr.msk.bf16.mxu0 %vm3296_vm0, %v3295_v0 }
 0x602   :  { %2700 = vmatprep.subr.bf16.mxu0 %v3295_v0 }
 0x605   :  { %2701 = vmatpush3.bf16.msra.mxu0 %v3431_v2 }
 0x606   :  { %2718 = vmatprep.subr.bf16.mxu0 %v3295_v0 }
 0x608   :  { %2703 = vmatmul.mubr.msk.bf16.vlgmr.msra.gmra.mrb[12].mxu0 %vm105_vm1, %v680_v39 }
 0x609   :  { %2719 = vmatpush3.bf16.msra.mxu0 %v3500_v14  ;;  %2726 = vmatprep.mubr.msk.bf16.mxu0 %vm3296_vm0, %v3295_v0 }
 0x60a   :  { %2720 = vmatprep.subr.bf16.mxu0 %v3295_v0 }
 0x60d   :  { %2721 = vmatpush3.bf16.msra.mxu0 %v3503_v15 }
 0x60e   :  { %2722 = vmatprep.subr.bf16.mxu0 %v3295_v0 }
 0x611   :  { %2723 = vmatpush3.bf16.msra.mxu0 %v3509_v17 }
 0x612   :  { %2724 = vmatprep.subr.bf16.mxu0 %v3295_v0 }
 0x615   :  { %2725 = vmatpush3.bf16.msra.mxu0 %v3519_v18 }
 0x616   :  { %2738 = vmatprep.subr.bf16.mxu0 %v3295_v0 }
 0x6c3   :  { %v412_v42 = vpop.f32.mrb[4].mxu0 }
 0x6c4   :  { %v413_v43 = vadd.f32 %v3563_v41, %v412_v42  ;;  %v2664_v44 = vpop.f32.mrb[5].mxu0 }
 0x6c5   :  { %v415_v45 = vpop.f32.mrb[6].mxu0 }
 0x6c6   :  { %3008 = vtanh.f32 %v413_v43  ;;  %v2665_v46 = vpop.f32.mrb[7].mxu0  ;;  %v418_v62 = vmul.f32 0.5, %v413_v43 }
 0x6d0   :  { %v3009_v47 = vpop.eup %3008 }
 0x6d1   :  { %429 = vrot.lane.b32.xlu1 %v3009_v47, %s3289_s10 }
 0x6d3   :  { %v567_v48 = vpop.f32.mrb[8].mxu0 }
 0x6d4   :  { %v568_v49 = vadd.f32 %v3484_v40, %v567_v48  ;;  %v2684_v50 = vpop.f32.mrb[9].mxu0 }
 0x6d5   :  { %v570_v51 = vpop.f32.mrb[10].mxu0 }
 0x6d6   :  { %3010 = vtanh.f32 %v568_v49  ;;  %v2685_v52 = vpop.f32.mrb[11].mxu0  ;;  %v573_v3 = vmul.f32 0.5, %v568_v49 }
 0x6db   :  { %v718_v54 = vpop.f32.mrb[12].mxu0 }
 0x6dc   :  { %v724_v55 = vadd.f32 %v718_v54, %v676_v53  ;;  %v2704_v56 = vpop.f32.mrb[13].mxu0 }
 0x6dd   :  { %v721_v57 = vpop.f32.mrb[14].mxu0 }
 0x6de   :  { %3012 = vtanh.f32 %v724_v55  ;;  %v2705_v58 = vpop.f32.mrb[15].mxu0  ;;  %v725_v8 = vmul.f32 0.5, %v724_v55 }
 0x6df   :  { %3014 = vtanh.f32 %v418_v62 }
 0x6e0   :  { %v3011_v59 = vpop.eup %3010  ;;  %3016 = vtanh.f32 %v573_v3 }
 0x6e1   :  { %580 = vrot.lane.b32.xlu0 %v3011_v59, %s3289_s10  ;;  %3018 = vtanh.f32 %v725_v8  ;;  %v902_v8 = vld [vmem:[#allocation9 + $0x18] sm:$0xff] }
 0x6e5   :  { %424 = vrot.lane.b32.xlu0 %v139_v60, %s3297_s5 }
 0x6e8   :  { %v3013_v61 = vpop.eup %3012 }
 0x6e9   :  { %732 = vrot.lane.b32.xlu1 %v3013_v61, %s3289_s10  ;;  %v3015_v63 = vpop.eup %3014 }
 0x6ea   :  { %v420_v4 = vadd.f32 1.0, %v3015_v63  ;;  %v3017_v10 = vpop.eup %3016 }
 0x6eb   :  { %v575_v11 = vadd.f32 1.0, %v3017_v10  ;;  %v3019_v16 = vpop.eup %3018 }
 0x6ec   :  { %v421_v5 = vmul.f32 0.5, %v420_v4  ;;  %v727_v21 = vadd.f32 1.0, %v3019_v16 }
 0x6ed   :  { %v576_v13 = vmul.f32 0.5, %v575_v11 }
 0x6ee   :  { %v728_v22 = vmul.f32 0.5, %v727_v21 }
 0x6ef   :  { %v578_v34 = vmul.f32 %v576_v13, %v3492_v9 }
 0x6f0   :  { %v730_v37 = vmul.f32 %v728_v22, %v3496_v12 }
 0x743   :  { %v430_v6 = vpop.permute.xlu1 %429 }
 0x744   :  { %v432_v7 = vmul.f32 %v430_v6, %v421_v5 }
 0x746   :  { %434 = vrot.lane.b32.xlu1 %v432_v7, %s3297_s5 }
 0x753   :  { %v581_v19 = vpop.permute.xlu0 %580 }
 0x754   :  { %v583_v20 = vmul.f32 %v581_v19, %v576_v13 }
 0x756   :  { %585 = vrot.lane.b32.xlu0 %v583_v20, %s3297_s5 }
 0x757   :  { %v425_v29 = vpop.permute.xlu0 %424 }
 0x758   :  { %v427_v30 = vmul.f32 %v425_v29, %v421_v5 }
 0x75b   :  { %v733_v23 = vpop.permute.xlu1 %732 }
 0x75c   :  { %v735_v27 = vmul.f32 %v733_v23, %v728_v22 }
 0x75e   :  { %737 = vrot.lane.b32.xlu1 %v735_v27, %s3297_s5 }
 0x7b8   :  { %v435_v31 = vpop.permute.xlu1 %434 }
 0x7b9   :  { %v3574_v32 = vadd.f32 %v435_v31, %v427_v30 }
 0x7bb   :  { %3020 = vtanh.f32 %v3574_v32 }
 0x7c5   :  { %v3021_v33 = vpop.eup %3020 }
 0x7c6   :  { %440 = vrot.lane.b32.xlu0 %v3021_v33, %s3289_s10 }
 0x7c8   :  { %v586_v35 = vpop.permute.xlu0 %585 }
 0x7c9   :  { %v3579_v36 = vadd.f32 %v586_v35, %v578_v34 }
 0x7cb   :  { %3022 = vtanh.f32 %v3579_v36 }
 0x7d0   :  { %v738_v38 = vpop.permute.xlu1 %737 }
 0x7d1   :  { %v3583_v39 = vadd.f32 %v738_v38, %v730_v37 }
 0x7d3   :  { %3024 = vtanh.f32 %v3583_v39 }
 0x7d5   :  { %v3023_v42 = vpop.eup %3022 }
 0x7d6   :  { %591 = vrot.lane.b32.xlu1 %v3023_v42, %s3289_s10 }
 0x7dd   :  { %v3025_v43 = vpop.eup %3024 }
 0x7de   :  { %743 = vrot.lane.b32.xlu0 %v3025_v43, %s3289_s10 }
 0x838   :  { %v441_v44 = vpop.permute.xlu0 %440 }
 0x839   :  { %v3588_v9 = vmul.f32 %v441_v44, %v421_v5 }
 0x83b   :  { %599 = vrot.lane.b32.xlu0 %v3588_v9, %s3289_s10 }
 0x848   :  { %v592_v45 = vpop.permute.xlu1 %591 }
 0x849   :  { %v594_v46 = vmul.f32 %v592_v45, %v576_v13 }
 0x84b   :  { %596 = vrot.lane.b32.xlu1 %v594_v46, %s3297_s5  ;;  %751 = vrot.lane.b32.xlu0 %v594_v46, %s3289_s10 }
 0x850   :  { %v744_v12 = vpop.permute.xlu0 %743 }
 0x851   :  { %v746_v47 = vmul.f32 %v744_v12, %v728_v22 }
 0x853   :  { %748 = vrot.lane.b32.xlu1 %v746_v47, %s3297_s5  ;;  %v903_v48 = vpack.c.bf16 %v746_v47, %v746_v47 }
 0x857   :  { %905 = vrot.lane.b32.xlu1 %v903_v48, %s3297_s5 }
 0x8ad   :  { %v600_v49 = vpop.permute.xlu0 %599 }
 0x8bd   :  { %v597_v50 = vpop.permute.xlu1 %596  ;;  %v752_v54 = vpop.permute.xlu0 %751 }
 0x8be   :  { %v602_v51 = vsel %vm105_vm1, %v597_v50, %v600_v49 }
 0x8bf   :  { %v603_v52 = vpack.c.bf16 %v602_v51, %v602_v51 }
 0x8c1   :  { %2695 = vmatmul.mubr.msk.bf16.vlgmr.msra.gmra.mrb[8].mxu1 %vm265_vm2, %v603_v52 }
 0x8c2   :  { %2707 = vmatpush3.bf16.msra.mxu1 %v3451_v24  ;;  %2714 = vmatprep.mubr.msk.bf16.mxu1 %vm3296_vm0, %v3295_v0 }
 0x8c3   :  { %2708 = vmatprep.subr.bf16.mxu1 %v3295_v0 }
 0x8c5   :  { %v749_v53 = vpop.permute.xlu1 %748 }
 0x8c6   :  { %2709 = vmatpush3.bf16.msra.mxu1 %v3454_v25  ;;  %v754_v55 = vsel %vm105_vm1, %v749_v53, %v752_v54 }
 0x8c7   :  { %2710 = vmatprep.subr.bf16.mxu1 %v3295_v0  ;;  %v755_v56 = vpack.c.bf16 %v754_v55, %v754_v55 }
 0x8c9   :  { %v906_v57 = vpop.permute.xlu1 %905 }
 0x8ca   :  { %2711 = vmatpush3.bf16.msra.mxu1 %v3458_v26 }
 0x8cb   :  { %2712 = vmatprep.subr.bf16.mxu1 %v3295_v0 }
 0x8ce   :  { %2713 = vmatpush3.bf16.msra.mxu1 %v3464_v28 }
 0x8cf   :  { %2730 = vmatprep.subr.bf16.mxu1 %v3295_v0 }
 0x8d1   :  { %2715 = vmatmul.mubr.msk.bf16.vlgmr.msra.gmra.mrb[12].mxu1 %vm265_vm2, %v755_v56 }
 0x8d2   :  { %2731 = vmatpush3.bf16.msra.mxu1 %v3428_v1  ;;  %2734 = vmatprep.mubr.msk.bf16.mxu1 %vm3296_vm0, %v3295_v0 }
 0x8d3   :  { %2732 = vmatprep.subr.bf16.mxu1 %v3295_v0 }
 0x8d6   :  { %2733 = vmatpush3.bf16.msra.mxu1 %v3431_v2 }
 0x8d7   :  { %2750 = vmatprep.subr.bf16.mxu1 %v3295_v0 }
 0x8d9   :  { %2735 = vmatmul.mubr.msk.bf16.vlgmr.msra.gmra.mrb[16].mxu1 %vm105_vm1, %v906_v57 }
 0x8da   :  { %2751 = vmatpush3.bf16.msra.mxu1 %v3500_v14  ;;  %2758 = vmatprep.mubr.msk.bf16.mxu1 %vm3296_vm0, %v3295_v0 }
 0x8db   :  { %2752 = vmatprep.subr.bf16.mxu1 %v3295_v0 }
 0x8de   :  { %2753 = vmatpush3.bf16.msra.mxu1 %v3503_v15 }
 0x8df   :  { %2754 = vmatprep.subr.bf16.mxu1 %v3295_v0 }
 0x8e2   :  { %2755 = vmatpush3.bf16.msra.mxu1 %v3509_v17 }
 0x8e3   :  { %2756 = vmatprep.subr.bf16.mxu1 %v3295_v0 }
 0x8e6   :  { %2757 = vmatpush3.bf16.msra.mxu1 %v3519_v18 }
 0x8e7   :  { %2770 = vmatprep.subr.bf16.mxu1 %v3295_v0 }
 0x994   :  { %v641_v58 = vpop.f32.mrb[8].mxu1 }
 0x995   :  { %v642_v59 = vadd.f32 %v3563_v41, %v641_v58  ;;  %v2696_v60 = vpop.f32.mrb[9].mxu1 }
 0x996   :  { %v644_v61 = vpop.f32.mrb[10].mxu1 }
 0x997   :  { %3026 = vtanh.f32 %v642_v59  ;;  %v2697_v62 = vpop.f32.mrb[11].mxu1  ;;  %v647_v22 = vmul.f32 0.5, %v642_v59 }
 0x9a1   :  { %v3027_v63 = vpop.eup %3026 }
 0x9a2   :  { %654 = vrot.lane.b32.xlu0 %v3027_v63, %s3289_s10 }
 0x9a4   :  { %v793_v3 = vpop.f32.mrb[12].mxu1 }
 0x9a5   :  { %v794_v4 = vadd.f32 %v3484_v40, %v793_v3  ;;  %v2716_v5 = vpop.f32.mrb[13].mxu1 }
 0x9a6   :  { %v796_v6 = vpop.f32.mrb[14].mxu1 }
 0x9a7   :  { %3028 = vtanh.f32 %v794_v4  ;;  %v2717_v7 = vpop.f32.mrb[15].mxu1  ;;  %v799_v27 = vmul.f32 0.5, %v794_v4 }
 0x9ac   :  { %v944_v10 = vpop.f32.mrb[16].mxu1 }
 0x9ad   :  { %v950_v11 = vadd.f32 %v944_v10, %v902_v8  ;;  %v2736_v13 = vpop.f32.mrb[17].mxu1 }
 0x9ae   :  { %v947_v16 = vpop.f32.mrb[18].mxu1 }
 0x9af   :  { %3030 = vtanh.f32 %v950_v11  ;;  %v2737_v19 = vpop.f32.mrb[19].mxu1  ;;  %v951_v34 = vmul.f32 0.5, %v950_v11 }
 0x9b0   :  { %3032 = vtanh.f32 %v647_v22 }
 0x9b1   :  { %v3029_v20 = vpop.eup %3028  ;;  %3034 = vtanh.f32 %v799_v27 }
 0x9b2   :  { %806 = vrot.lane.b32.xlu1 %v3029_v20, %s3289_s10  ;;  %3036 = vtanh.f32 %v951_v34 }
 0x9b9   :  { %v3031_v21 = vpop.eup %3030 }
 0x9ba   :  { %958 = vrot.lane.b32.xlu0 %v3031_v21, %s3289_s10  ;;  %v3033_v23 = vpop.eup %3032 }
 0x9bb   :  { %v649_v29 = vadd.f32 1.0, %v3033_v23  ;;  %v3035_v35 = vpop.eup %3034 }
 0x9bc   :  { %v801_v37 = vadd.f32 1.0, %v3035_v35  ;;  %v3037_v42 = vpop.eup %3036 }
 0x9bd   :  { %v650_v30 = vmul.f32 0.5, %v649_v29  ;;  %v953_v45 = vadd.f32 1.0, %v3037_v42 }
 0x9be   :  { %v802_v38 = vmul.f32 0.5, %v801_v37 }
 0x9bf   :  { %v954_v46 = vmul.f32 0.5, %v953_v45  ;;  %v652_v48 = vmul.f32 %v650_v30, %v3574_v32 }
 0x9c0   :  { %v804_v52 = vmul.f32 %v802_v38, %v3579_v36 }
 0x9c1   :  { %v956_v55 = vmul.f32 %v954_v46, %v3583_v39 }
 0xa14   :  { %v655_v31 = vpop.permute.xlu0 %654 }
 0xa15   :  { %v657_v33 = vmul.f32 %v655_v31, %v650_v30  ;;  %v1128_v31 = vld [vmem:[#allocation9 + $0x20] sm:$0xff] }
 0xa17   :  { %659 = vrot.lane.b32.xlu1 %v657_v33, %s3297_s5 }
 0xa24   :  { %v807_v43 = vpop.permute.xlu1 %806 }
 0xa25   :  { %v809_v44 = vmul.f32 %v807_v43, %v802_v38 }
 0xa27   :  { %811 = vrot.lane.b32.xlu0 %v809_v44, %s3297_s5 }
 0xa2c   :  { %v959_v12 = vpop.permute.xlu0 %958 }
 0xa2d   :  { %v961_v47 = vmul.f32 %v959_v12, %v954_v46 }
 0xa2f   :  { %963 = vrot.lane.b32.xlu1 %v961_v47, %s3297_s5 }
 0xa89   :  { %v660_v49 = vpop.permute.xlu1 %659 }
 0xa8a   :  { %v3636_v50 = vadd.f32 %v660_v49, %v652_v48 }
 0xa8c   :  { %3038 = vtanh.f32 %v3636_v50 }
 0xa96   :  { %v3039_v51 = vpop.eup %3038 }
 0xa97   :  { %665 = vrot.lane.b32.xlu0 %v3039_v51, %s3289_s10 }
 0xa99   :  { %v812_v53 = vpop.permute.xlu0 %811 }
 0xa9a   :  { %v3641_v54 = vadd.f32 %v812_v53, %v804_v52 }
 0xa9c   :  { %3040 = vtanh.f32 %v3641_v54 }
 0xaa1   :  { %v964_v56 = vpop.permute.xlu1 %963 }
 0xaa2   :  { %v3645_v57 = vadd.f32 %v964_v56, %v956_v55 }
 0xaa4   :  { %3042 = vtanh.f32 %v3645_v57 }
 0xaa6   :  { %v3041_v32 = vpop.eup %3040 }
 0xaa7   :  { %817 = vrot.lane.b32.xlu1 %v3041_v32, %s3289_s10 }
 0xaae   :  { %v3043_v58 = vpop.eup %3042 }
 0xaaf   :  { %969 = vrot.lane.b32.xlu0 %v3043_v58, %s3289_s10 }
 0xb09   :  { %v666_v59 = vpop.permute.xlu0 %665 }
 0xb0a   :  { %v3650_v36 = vmul.f32 %v666_v59, %v650_v30 }
 0xb0c   :  { %825 = vrot.lane.b32.xlu0 %v3650_v36, %s3289_s10 }
 0xb19   :  { %v818_v60 = vpop.permute.xlu1 %817 }
 0xb1a   :  { %v820_v61 = vmul.f32 %v818_v60, %v802_v38 }
 0xb1c   :  { %822 = vrot.lane.b32.xlu1 %v820_v61, %s3297_s5  ;;  %977 = vrot.lane.b32.xlu0 %v820_v61, %s3289_s10 }
 0xb21   :  { %v970_v39 = vpop.permute.xlu0 %969 }
 0xb22   :  { %v972_v62 = vmul.f32 %v970_v39, %v954_v46 }
 0xb24   :  { %974 = vrot.lane.b32.xlu1 %v972_v62, %s3297_s5  ;;  %v1129_v63 = vpack.c.bf16 %v972_v62, %v972_v62 }
 0xb28   :  { %1131 = vrot.lane.b32.xlu1 %v1129_v63, %s3297_s5 }
 0xb7e   :  { %v826_v3 = vpop.permute.xlu0 %825 }
 0xb8e   :  { %v823_v4 = vpop.permute.xlu1 %822  ;;  %v978_v8 = vpop.permute.xlu0 %977 }
 0xb8f   :  { %v828_v5 = vsel %vm105_vm1, %v823_v4, %v826_v3 }
 0xb90   :  { %v829_v6 = vpack.c.bf16 %v828_v5, %v828_v5 }
 0xb92   :  { %2727 = vmatmul.mubr.msk.bf16.vlgmr.msra.gmra.mrb[16].mxu0 %vm265_vm2, %v829_v6 }
 0xb93   :  { %2739 = vmatpush3.bf16.msra.mxu0 %v3451_v24  ;;  %2746 = vmatprep.mubr.msk.bf16.mxu0 %vm3296_vm0, %v3295_v0 }
 0xb94   :  { %2740 = vmatprep.subr.bf16.mxu0 %v3295_v0 }
 0xb96   :  { %v975_v7 = vpop.permute.xlu1 %974 }
 0xb97   :  { %2741 = vmatpush3.bf16.msra.mxu0 %v3454_v25  ;;  %v980_v10 = vsel %vm105_vm1, %v975_v7, %v978_v8 }
 0xb98   :  { %2742 = vmatprep.subr.bf16.mxu0 %v3295_v0  ;;  %v981_v11 = vpack.c.bf16 %v980_v10, %v980_v10 }
 0xb9a   :  { %v1132_v13 = vpop.permute.xlu1 %1131 }
 0xb9b   :  { %2743 = vmatpush3.bf16.msra.mxu0 %v3458_v26 }
 0xb9c   :  { %2744 = vmatprep.subr.bf16.mxu0 %v3295_v0 }
 0xb9f   :  { %2745 = vmatpush3.bf16.msra.mxu0 %v3464_v28 }
 0xba0   :  { %2762 = vmatprep.subr.bf16.mxu0 %v3295_v0 }
 0xba2   :  { %2747 = vmatmul.mubr.msk.bf16.vlgmr.msra.gmra.mrb[20].mxu0 %vm265_vm2, %v981_v11 }
 0xba3   :  { %2763 = vmatpush3.bf16.msra.mxu0 %v3428_v1  ;;  %2766 = vmatprep.mubr.msk.bf16.mxu0 %vm3296_vm0, %v3295_v0 }
 0xba4   :  { %2764 = vmatprep.subr.bf16.mxu0 %v3295_v0 }
 0xba7   :  { %2765 = vmatpush3.bf16.msra.mxu0 %v3431_v2 }
 0xba8   :  { %2782 = vmatprep.subr.bf16.mxu0 %v3295_v0 }
 0xbaa   :  { %2767 = vmatmul.mubr.msk.bf16.vlgmr.msra.gmra.mrb[24].mxu0 %vm105_vm1, %v1132_v13 }
 0xbab   :  { %2783 = vmatpush3.bf16.msra.mxu0 %v3500_v14  ;;  %2790 = vmatprep.mubr.msk.bf16.mxu0 %vm3296_vm0, %v3295_v0 }
 0xbac   :  { %2784 = vmatprep.subr.bf16.mxu0 %v3295_v0 }
 0xbaf   :  { %2785 = vmatpush3.bf16.msra.mxu0 %v3503_v15 }
 0xbb0   :  { %2786 = vmatprep.subr.bf16.mxu0 %v3295_v0 }
 0xbb3   :  { %2787 = vmatpush3.bf16.msra.mxu0 %v3509_v17 }
 0xbb4   :  { %2788 = vmatprep.subr.bf16.mxu0 %v3295_v0 }
 0xbb7   :  { %2789 = vmatpush3.bf16.msra.mxu0 %v3519_v18 }
 0xbb8   :  { %2802 = vmatprep.subr.bf16.mxu0 %v3295_v0 }
 0xc65   :  { %v867_v1 = vpop.f32.mrb[16].mxu0 }
 0xc66   :  { %v868_v2 = vadd.f32 %v3563_v41, %v867_v1  ;;  %v2728_v16 = vpop.f32.mrb[17].mxu0 }
 0xc67   :  { %v870_v19 = vpop.f32.mrb[18].mxu0 }
 0xc68   :  { %3044 = vtanh.f32 %v868_v2  ;;  %v2729_v20 = vpop.f32.mrb[19].mxu0  ;;  %v873_v44 = vmul.f32 0.5, %v868_v2 }
 0xc72   :  { %v3045_v21 = vpop.eup %3044 }
 0xc73   :  { %880 = vrot.lane.b32.xlu0 %v3045_v21, %s3289_s10 }
 0xc75   :  { %v1019_v22 = vpop.f32.mrb[20].mxu0 }
 0xc76   :  { %v1020_v23 = vadd.f32 %v3484_v40, %v1019_v22  ;;  %v2748_v27 = vpop.f32.mrb[21].mxu0 }
 0xc77   :  { %v1022_v29 = vpop.f32.mrb[22].mxu0 }
 0xc78   :  { %3046 = vtanh.f32 %v1020_v23  ;;  %v2749_v30 = vpop.f32.mrb[23].mxu0  ;;  %v1025_v46 = vmul.f32 0.5, %v1020_v23 }
 0xc7d   :  { %v1170_v33 = vpop.f32.mrb[24].mxu0 }
 0xc7e   :  { %v1176_v34 = vadd.f32 %v1170_v33, %v1128_v31  ;;  %v2768_v35 = vpop.f32.mrb[25].mxu0  ;;  %v3734_v33 = vld [vmem:[#allocation14] sm:$0xff]  }
 0xc7f   :  { %v1173_v37 = vpop.f32.mrb[26].mxu0 }
 0xc80   :  { %3048 = vtanh.f32 %v1176_v34  ;;  %v2769_v38 = vpop.f32.mrb[27].mxu0  ;;  %v1177_v51 = vmul.f32 0.5, %v1176_v34 }
 0xc81   :  { %3050 = vtanh.f32 %v873_v44 }
 0xc82   :  { %v3047_v42 = vpop.eup %3046  ;;  %3052 = vtanh.f32 %v1025_v46 }
 0xc83   :  { %1032 = vrot.lane.b32.xlu1 %v3047_v42, %s3289_s10  ;;  %3054 = vtanh.f32 %v1177_v51 }
 0xc8a   :  { %v3049_v43 = vpop.eup %3048 }
 0xc8b   :  { %1184 = vrot.lane.b32.xlu0 %v3049_v43, %s3289_s10  ;;  %v3051_v45 = vpop.eup %3050 }
 0xc8c   :  { %v875_v12 = vadd.f32 1.0, %v3051_v45  ;;  %v3053_v52 = vpop.eup %3052  ;;  %v1354_v45 = vld [vmem:[#allocation9 + $0x28] sm:$0xff] }
 0xc8d   :  { %v1027_v53 = vadd.f32 1.0, %v3053_v52  ;;  %v3055_v56 = vpop.eup %3054 }
 0xc8e   :  { %v876_v47 = vmul.f32 0.5, %v875_v12  ;;  %v1179_v59 = vadd.f32 1.0, %v3055_v56 }
 0xc8f   :  { %v1028_v55 = vmul.f32 0.5, %v1027_v53 }
 0xc90   :  { %v1180_v60 = vmul.f32 0.5, %v1179_v59  ;;  %v878_v62 = vmul.f32 %v876_v47, %v3636_v50 }
 0xc91   :  { %v1030_v5 = vmul.f32 %v1028_v55, %v3641_v54 }
 0xc92   :  { %v1182_v8 = vmul.f32 %v1180_v60, %v3645_v57 }
 0xce5   :  { %v881_v48 = vpop.permute.xlu0 %880 }
 0xce6   :  { %v883_v49 = vmul.f32 %v881_v48, %v876_v47 }
 0xce8   :  { %885 = vrot.lane.b32.xlu1 %v883_v49, %s3297_s5 }
 0xcf5   :  { %v1033_v32 = vpop.permute.xlu1 %1032 }
 0xcf6   :  { %v1035_v58 = vmul.f32 %v1033_v32, %v1028_v55 }
 0xcf8   :  { %1037 = vrot.lane.b32.xlu0 %v1035_v58, %s3297_s5 }
 0xcfd   :  { %v1185_v61 = vpop.permute.xlu0 %1184 }
 0xcfe   :  { %v1187_v39 = vmul.f32 %v1185_v61, %v1180_v60 }
 0xd00   :  { %1189 = vrot.lane.b32.xlu1 %v1187_v39, %s3297_s5 }
 0xd5a   :  { %v886_v63 = vpop.permute.xlu1 %885 }
 0xd5b   :  { %v3698_v3 = vadd.f32 %v886_v63, %v878_v62 }
 0xd5d   :  { %3056 = vtanh.f32 %v3698_v3 }
 0xd67   :  { %v3057_v4 = vpop.eup %3056 }
 0xd68   :  { %891 = vrot.lane.b32.xlu0 %v3057_v4, %s3289_s10 }
 0xd6a   :  { %v1038_v6 = vpop.permute.xlu0 %1037 }
 0xd6b   :  { %v3703_v7 = vadd.f32 %v1038_v6, %v1030_v5 }
 0xd6d   :  { %3058 = vtanh.f32 %v3703_v7 }
 0xd72   :  { %v1190_v10 = vpop.permute.xlu1 %1189 }
 0xd73   :  { %v3707_v11 = vadd.f32 %v1190_v10, %v1182_v8 }
 0xd75   :  { %3060 = vtanh.f32 %v3707_v11 }
 0xd77   :  { %v3059_v50 = vpop.eup %3058 }
 0xd78   :  { %1043 = vrot.lane.b32.xlu1 %v3059_v50, %s3289_s10 }
 0xd7f   :  { %v3061_v13 = vpop.eup %3060 }
 0xd80   :  { %1195 = vrot.lane.b32.xlu0 %v3061_v13, %s3289_s10 }
 0xdda   :  { %v892_v1 = vpop.permute.xlu0 %891 }
 0xddb   :  { %v3712_v54 = vmul.f32 %v892_v1, %v876_v47 }
 0xddd   :  { %1051 = vrot.lane.b32.xlu0 %v3712_v54, %s3289_s10 }
 0xdea   :  { %v1044_v2 = vpop.permute.xlu1 %1043 }
 0xdeb   :  { %v1046_v16 = vmul.f32 %v1044_v2, %v1028_v55 }
 0xded   :  { %1048 = vrot.lane.b32.xlu1 %v1046_v16, %s3297_s5  ;;  %1203 = vrot.lane.b32.xlu0 %v1046_v16, %s3289_s10 }
 0xdf2   :  { %v1196_v57 = vpop.permute.xlu0 %1195 }
 0xdf3   :  { %v1198_v19 = vmul.f32 %v1196_v57, %v1180_v60 }
 0xdf5   :  { %1200 = vrot.lane.b32.xlu1 %v1198_v19, %s3297_s5  ;;  %v1355_v20 = vpack.c.bf16 %v1198_v19, %v1198_v19 }
 0xdf9   :  { %1357 = vrot.lane.b32.xlu1 %v1355_v20, %s3297_s5 }
 0xe4f   :  { %v1052_v21 = vpop.permute.xlu0 %1051 }
 0xe5f   :  { %v1049_v22 = vpop.permute.xlu1 %1048  ;;  %v1204_v30 = vpop.permute.xlu0 %1203 }
 0xe60   :  { %v1054_v23 = vsel %vm105_vm1, %v1049_v22, %v1052_v21 }
 0xe61   :  { %v1055_v27 = vpack.c.bf16 %v1054_v23, %v1054_v23 }
 0xe63   :  { %2759 = vmatmul.mubr.msk.bf16.vlgmr.msra.gmra.mrb[20].mxu1 %vm265_vm2, %v1055_v27 }
 0xe64   :  { %2771 = vmatpush3.bf16.msra.mxu1 %v3451_v24  ;;  %2778 = vmatprep.mubr.msk.bf16.mxu1 %vm3296_vm0, %v3295_v0 }
 0xe65   :  { %2772 = vmatprep.subr.bf16.mxu1 %v3295_v0 }
 0xe67   :  { %v1201_v29 = vpop.permute.xlu1 %1200 }
 0xe68   :  { %2773 = vmatpush3.bf16.msra.mxu1 %v3454_v25  ;;  %v1206_v31 = vsel %vm105_vm1, %v1201_v29, %v1204_v30  ;;  %v3740_v25 = vld [vmem:[#allocation14 + $0x8] sm:$0xff]  }
 0xe69   :  { %2774 = vmatprep.subr.bf16.mxu1 %v3295_v0  ;;  %v1207_v24 = vpack.c.bf16 %v1206_v31, %v1206_v31 }
 0xe6c   :  { %2775 = vmatpush3.bf16.msra.mxu1 %v3458_v26  ;;  %v1358_v26 = vpop.permute.xlu1 %1357 }
 0xe6d   :  { %2776 = vmatprep.subr.bf16.mxu1 %v3295_v0 }
 0xe70   :  { %2777 = vmatpush3.bf16.msra.mxu1 %v3464_v28 }
 0xe71   :  { %2794 = vmatprep.subr.bf16.mxu1 %v3295_v0 }
 0xe73   :  { %2779 = vmatmul.mubr.msk.bf16.vlgmr.msra.gmra.mrb[24].mxu1 %vm265_vm2, %v1207_v24 }
 0xe74   :  { %2795 = vmatpush3.bf16.msra.mxu1 %v3734_v33  ;;  %2798 = vmatprep.mubr.msk.bf16.mxu1 %vm3296_vm0, %v3295_v0 }
 0xe75   :  { %2796 = vmatprep.subr.bf16.mxu1 %v3295_v0 }
 0xe78   :  { %2797 = vmatpush3.bf16.msra.mxu1 %v3740_v25 }
 0xe79   :  { %2814 = vmatprep.subr.bf16.mxu1 %v3295_v0 }
 0xe7b   :  { %2799 = vmatmul.mubr.msk.bf16.vlgmr.msra.gmra.mrb[28].mxu1 %vm105_vm1, %v1358_v26 }
 0xe7c   :  { %2815 = vmatpush3.bf16.msra.mxu1 %v3500_v14  ;;  %2822 = vmatprep.mubr.msk.bf16.mxu1 %vm3296_vm0, %v3295_v0 }
 0xe7d   :  { %2816 = vmatprep.subr.bf16.mxu1 %v3295_v0 }
 0xe80   :  { %2817 = vmatpush3.bf16.msra.mxu1 %v3503_v15 }
 0xe81   :  { %2818 = vmatprep.subr.bf16.mxu1 %v3295_v0 }
 0xe84   :  { %2819 = vmatpush3.bf16.msra.mxu1 %v3509_v17 }
 0xe85   :  { %2820 = vmatprep.subr.bf16.mxu1 %v3295_v0 }
 0xe88   :  { %2821 = vmatpush3.bf16.msra.mxu1 %v3519_v18 }
 0xe89   :  { %2834 = vmatprep.subr.bf16.mxu1 %v3295_v0 }
 0xf36   :  { %v1093_v28 = vpop.f32.mrb[20].mxu1 }
 0xf37   :  { %v1094_v14 = vadd.f32 %v3563_v41, %v1093_v28  ;;  %v2760_v34 = vpop.f32.mrb[21].mxu1 }
 0xf38   :  { %v1096_v35 = vpop.f32.mrb[22].mxu1 }
 0xf39   :  { %3062 = vtanh.f32 %v1094_v14  ;;  %v2761_v37 = vpop.f32.mrb[23].mxu1  ;;  %v1099_v53 = vmul.f32 0.5, %v1094_v14 }
 0xf3a   :  { %v3788_v37 = vld [vmem:[#allocation15] sm:$0xff]  }
 0xf43   :  { %v3063_v38 = vpop.eup %3062 }
 0xf44   :  { %1106 = vrot.lane.b32.xlu0 %v3063_v38, %s3289_s10  ;;  %v3794_v38 = vld [vmem:[#allocation15 + $0x8] sm:$0xff]  }
 0xf46   :  { %v1245_v15 = vpop.f32.mrb[24].mxu1 }
 0xf47   :  { %v1246_v42 = vadd.f32 %v3484_v40, %v1245_v15  ;;  %v2780_v17 = vpop.f32.mrb[25].mxu1 }
 0xf48   :  { %v1248_v43 = vpop.f32.mrb[26].mxu1 }
 0xf49   :  { %3064 = vtanh.f32 %v1246_v42  ;;  %v2781_v44 = vpop.f32.mrb[27].mxu1  ;;  %v1251_v55 = vmul.f32 0.5, %v1246_v42  ;;  %v3798_v42 = vld [vmem:[#allocation15 + $0x10] sm:$0xff]  }
 0xf4a   :  { %v3803_v44 = vld [vmem:[#allocation15 + $0x18] sm:$0xff]  }
 0xf4e   :  { %v1396_v46 = vpop.f32.mrb[28].mxu1 }
 0xf4f   :  { %v1402_v12 = vadd.f32 %v1396_v46, %v1354_v45  ;;  %v2800_v47 = vpop.f32.mrb[29].mxu1 }
 0xf50   :  { %v1399_v48 = vpop.f32.mrb[30].mxu1  ;;  %v3821_v47 = vld [vmem:[#allocation17 + $0x8] sm:$0xff]  }
 0xf51   :  { %3066 = vtanh.f32 %v1402_v12  ;;  %v2801_v49 = vpop.f32.mrb[31].mxu1  ;;  %v1403_v60 = vmul.f32 0.5, %v1402_v12  ;;  %v3815_v12 = vld [vmem:[#allocation17] sm:$0xff]   ;;  %v3825_v48 = vld [vmem:[#allocation17 + $0x10] sm:$0xff]  }
 0xf52   :  { %3068 = vtanh.f32 %v1099_v53 }
 0xf53   :  { %v3065_v51 = vpop.eup %3064  ;;  %3070 = vtanh.f32 %v1251_v55 }
 0xf54   :  { %1258 = vrot.lane.b32.xlu1 %v3065_v51, %s3289_s10  ;;  %3072 = vtanh.f32 %v1403_v60 }
 0xf5b   :  { %v3067_v52 = vpop.eup %3066 }
 0xf5c   :  { %1410 = vrot.lane.b32.xlu0 %v3067_v52, %s3289_s10  ;;  %v3069_v40 = vpop.eup %3068 }
 0xf5d   :  { %v1101_v56 = vadd.f32 1.0, %v3069_v40  ;;  %v3071_v61 = vpop.eup %3070 }
 0xf5e   :  { %v1253_v39 = vadd.f32 1.0, %v3071_v61  ;;  %v3073_v63 = vpop.eup %3072 }
 0xf5f   :  { %v1102_v32 = vmul.f32 0.5, %v1101_v56  ;;  %v1405_v6 = vadd.f32 1.0, %v3073_v63 }
 0xf60   :  { %v1254_v62 = vmul.f32 0.5, %v1253_v39 }
 0xf61   :  { %v1406_v8 = vmul.f32 0.5, %v1405_v6  ;;  %v1104_v13 = vmul.f32 %v1102_v32, %v3698_v3 }
 0xf62   :  { %v1256_v57 = vmul.f32 %v1254_v62, %v3703_v7 }
 0xf63   :  { %v1408_v21 = vmul.f32 %v1406_v8, %v3707_v11 }
 0xfb6   :  { %v1107_v58 = vpop.permute.xlu0 %1106 }
 0xfb7   :  { %v1109_v59 = vmul.f32 %v1107_v58, %v1102_v32 }
 0xfb9   :  { %1111 = vrot.lane.b32.xlu1 %v1109_v59, %s3297_s5 }
 0xfc6   :  { %v1259_v4 = vpop.permute.xlu1 %1258 }
 0xfc7   :  { %v1261_v5 = vmul.f32 %v1259_v4, %v1254_v62 }
 0xfc9   :  { %1263 = vrot.lane.b32.xlu0 %v1261_v5, %s3297_s5 }
 0xfce   :  { %v1411_v10 = vpop.permute.xlu0 %1410 }
 0xfcf   :  { %v1413_v50 = vmul.f32 %v1411_v10, %v1406_v8 }
 0xfd1   :  { %1415 = vrot.lane.b32.xlu1 %v1413_v50, %s3297_s5 }
0x102b   :  { %v1112_v1 = vpop.permute.xlu1 %1111 }
0x102c   :  { %v3764_v2 = vadd.f32 %v1112_v1, %v1104_v13 }
0x102e   :  { %3074 = vtanh.f32 %v3764_v2 }
0x1038   :  { %v3075_v16 = vpop.eup %3074 }
0x1039   :  { %1117 = vrot.lane.b32.xlu0 %v3075_v16, %s3289_s10 }
0x103b   :  { %v1264_v19 = vpop.permute.xlu0 %1263 }
0x103c   :  { %v3769_v20 = vadd.f32 %v1264_v19, %v1256_v57 }
0x103e   :  { %3076 = vtanh.f32 %v3769_v20 }
0x1043   :  { %v1416_v22 = vpop.permute.xlu1 %1415 }
0x1044   :  { %v3773_v23 = vadd.f32 %v1416_v22, %v1408_v21 }
0x1046   :  { %3078 = vtanh.f32 %v3773_v23 }
0x1048   :  { %v3077_v3 = vpop.eup %3076 }
0x1049   :  { %1269 = vrot.lane.b32.xlu1 %v3077_v3, %s3289_s10 }
0x1050   :  { %v3079_v27 = vpop.eup %3078 }
0x1051   :  { %1421 = vrot.lane.b32.xlu0 %v3079_v27, %s3289_s10 }
0x10ab   :  { %v1118_v29 = vpop.permute.xlu0 %1117 }
0x10ac   :  { %v3778_v7 = vmul.f32 %v1118_v29, %v1102_v32  ;;  %v3836_v32 = vld [vmem:[%s4091_s4] ss:$0 sm:$0xff] }
0x10ae   :  { %1277 = vrot.lane.b32.xlu0 %v3778_v7, %s3289_s10 }
0x10bb   :  { %v1270_v30 = vpop.permute.xlu1 %1269 }
0x10bc   :  { %v1272_v31 = vmul.f32 %v1270_v30, %v1254_v62 }
0x10be   :  { %1274 = vrot.lane.b32.xlu1 %v1272_v31, %s3297_s5  ;;  %1429 = vrot.lane.b32.xlu0 %v1272_v31, %s3289_s10 }
0x10c3   :  { %v1422_v11 = vpop.permute.xlu0 %1421 }
0x10c4   :  { %v1424_v24 = vmul.f32 %v1422_v11, %v1406_v8 }
0x10c6   :  { %1426 = vrot.lane.b32.xlu1 %v1424_v24, %s3297_s5  ;;  %v1581_v26 = vpack.c.bf16 %v1424_v24, %v1424_v24 }
0x10ca   :  { %1583 = vrot.lane.b32.xlu1 %v1581_v26, %s3297_s5 }
0x1120   :  { %v1278_v28 = vpop.permute.xlu0 %1277 }
0x1130   :  { %v1275_v14 = vpop.permute.xlu1 %1274  ;;  %v1430_v17 = vpop.permute.xlu0 %1429 }
0x1131   :  { %v1280_v34 = vsel %vm105_vm1, %v1275_v14, %v1278_v28 }
0x1132   :  { %v1281_v35 = vpack.c.bf16 %v1280_v34, %v1280_v34 }
0x1134   :  { %2791 = vmatmul.mubr.msk.bf16.vlgmr.msra.gmra.mrb[28].mxu0 %vm265_vm2, %v1281_v35 }
0x1135   :  { %2803 = vmatpush3.bf16.msra.mxu0 %v3788_v37  ;;  %2810 = vmatprep.mubr.msk.bf16.mxu0 %vm3296_vm0, %v3295_v0 }
0x1136   :  { %2804 = vmatprep.subr.bf16.mxu0 %v3295_v0 }
0x1138   :  { %v1427_v15 = vpop.permute.xlu1 %1426 }
0x1139   :  { %2805 = vmatpush3.bf16.msra.mxu0 %v3794_v38  ;;  %v1432_v43 = vsel %vm105_vm1, %v1427_v15, %v1430_v17 }
0x113a   :  { %2806 = vmatprep.subr.bf16.mxu0 %v3295_v0  ;;  %v1433_v45 = vpack.c.bf16 %v1432_v43, %v1432_v43 }
0x113c   :  { %v1584_v46 = vpop.permute.xlu1 %1583 }
0x113d   :  { %2807 = vmatpush3.bf16.msra.mxu0 %v3798_v42 }
0x113e   :  { %2808 = vmatprep.subr.bf16.mxu0 %v3295_v0 }
0x1141   :  { %2809 = vmatpush3.bf16.msra.mxu0 %v3803_v44 }
0x1142   :  { %2826 = vmatprep.subr.bf16.mxu0 %v3295_v0 }
0x1144   :  { %2811 = vmatmul.mubr.msk.bf16.vlgmr.msra.gmra.mrb[32].mxu0 %vm265_vm2, %v1433_v45 }
0x1145   :  { %2827 = vmatpush3.bf16.msra.mxu0 %v3734_v33  ;;  %2830 = vmatprep.mubr.msk.bf16.mxu0 %vm3296_vm0, %v3295_v0 }
0x1146   :  { %2828 = vmatprep.subr.bf16.mxu0 %v3295_v0 }
0x1149   :  { %2829 = vmatpush3.bf16.msra.mxu0 %v3740_v25 }
0x114a   :  { %2846 = vmatprep.subr.bf16.mxu0 %v3295_v0 }
0x114c   :  { %2831 = vmatmul.mubr.msk.bf16.vlgmr.msra.gmra.mrb[36].mxu0 %vm105_vm1, %v1584_v46 }
0x114d   :  { %2847 = vmatpush3.bf16.msra.mxu0 %v3815_v12  ;;  %2854 = vmatprep.mubr.msk.bf16.mxu0 %vm3296_vm0, %v3295_v0 }
0x114e   :  { %2848 = vmatprep.subr.bf16.mxu0 %v3295_v0 }
0x1151   :  { %2849 = vmatpush3.bf16.msra.mxu0 %v3821_v47 }
0x1152   :  { %2850 = vmatprep.subr.bf16.mxu0 %v3295_v0 }
0x1155   :  { %2851 = vmatpush3.bf16.msra.mxu0 %v3825_v48 }
0x1156   :  { %2852 = vmatprep.subr.bf16.mxu0 %v3295_v0 }
0x1159   :  { %2853 = vmatpush3.bf16.msra.mxu0 %v3519_v18 }
0x115a   :  { %2866 = vmatprep.subr.bf16.mxu0 %v3295_v0 }
0x1207   :  { %v1319_v49 = vpop.f32.mrb[28].mxu0 }
0x1208   :  { %v1320_v51 = vadd.f32 %v3563_v41, %v1319_v49  ;;  %v2792_v52 = vpop.f32.mrb[29].mxu0  ;;  %v1580_v41 = vld [vmem:[#allocation9 + $0x30] sm:$0xff] }
0x1209   :  { %v1322_v53 = vpop.f32.mrb[30].mxu0 }
0x120a   :  { %3080 = vtanh.f32 %v1320_v51  ;;  %v2793_v40 = vpop.f32.mrb[31].mxu0  ;;  %v1325_v8 = vmul.f32 0.5, %v1320_v51 }
0x1214   :  { %v3081_v55 = vpop.eup %3080 }
0x1215   :  { %1332 = vrot.lane.b32.xlu0 %v3081_v55, %s3289_s10 }
0x1217   :  { %v1471_v56 = vpop.f32.mrb[32].mxu0 }
0x1218   :  { %v1472_v18 = vadd.f32 %v3836_v32, %v1471_v56  ;;  %v2812_v58 = vpop.f32.mrb[33].mxu0 }
0x1219   :  { %v1474_v59 = vpop.f32.mrb[34].mxu0 }
0x121a   :  { %3082 = vtanh.f32 %v1472_v18  ;;  %v2813_v60 = vpop.f32.mrb[35].mxu0  ;;  %v1477_v50 = vmul.f32 0.5, %v1472_v18 }
0x121f   :  { %v1622_v61 = vpop.f32.mrb[36].mxu0 }
0x1220   :  { %v1628_v39 = vadd.f32 %v1622_v61, %v1580_v41  ;;  %v2832_v62 = vpop.f32.mrb[37].mxu0 }
0x1221   :  { %v1625_v63 = vpop.f32.mrb[38].mxu0 }
0x1222   :  { %3084 = vtanh.f32 %v1628_v39  ;;  %v2833_v4 = vpop.f32.mrb[39].mxu0  ;;  %v1629_v19 = vmul.f32 0.5, %v1628_v39 }
0x1223   :  { %3086 = vtanh.f32 %v1325_v8 }
0x1224   :  { %v3083_v5 = vpop.eup %3082  ;;  %3088 = vtanh.f32 %v1477_v50 }
0x1225   :  { %1484 = vrot.lane.b32.xlu1 %v3083_v5, %s3289_s10  ;;  %3090 = vtanh.f32 %v1629_v19 }
0x122c   :  { %v3085_v6 = vpop.eup %3084 }
0x122d   :  { %1636 = vrot.lane.b32.xlu0 %v3085_v6, %s3289_s10  ;;  %v3087_v10 = vpop.eup %3086 }
0x122e   :  { %v1327_v13 = vadd.f32 1.0, %v3087_v10  ;;  %v3089_v21 = vpop.eup %3088 }
0x122f   :  { %v1479_v22 = vadd.f32 1.0, %v3089_v21  ;;  %v3091_v27 = vpop.eup %3090 }
0x1230   :  { %v1328_v1 = vmul.f32 0.5, %v1327_v13  ;;  %v1631_v31 = vadd.f32 1.0, %v3091_v27 }
0x1231   :  { %v1480_v3 = vmul.f32 0.5, %v1479_v22 }
0x1232   :  { %v1632_v11 = vmul.f32 0.5, %v1631_v31  ;;  %v1330_v28 = vmul.f32 %v1328_v1, %v3764_v2 }
0x1233   :  { %v1482_v15 = vmul.f32 %v1480_v3, %v3769_v20 }
0x1234   :  { %v1634_v45 = vmul.f32 %v1632_v11, %v3773_v23 }
0x1287   :  { %v1333_v16 = vpop.permute.xlu0 %1332 }
0x1288   :  { %v1335_v57 = vmul.f32 %v1333_v16, %v1328_v1  ;;  %v1806_v16 = vld [vmem:[#allocation9 + $0x38] sm:$0xff] }
0x128a   :  { %1337 = vrot.lane.b32.xlu1 %v1335_v57, %s3297_s5 }
0x1297   :  { %v1485_v29 = vpop.permute.xlu1 %1484 }
0x1298   :  { %v1487_v30 = vmul.f32 %v1485_v29, %v1480_v3 }
0x129a   :  { %1489 = vrot.lane.b32.xlu0 %v1487_v30, %s3297_s5 }
0x129f   :  { %v1637_v24 = vpop.permute.xlu0 %1636 }
0x12a0   :  { %v1639_v26 = vmul.f32 %v1637_v24, %v1632_v11 }
0x12a2   :  { %1641 = vrot.lane.b32.xlu1 %v1639_v26, %s3297_s5 }
0x12fc   :  { %v1338_v14 = vpop.permute.xlu1 %1337 }
0x12fd   :  { %v3845_v34 = vadd.f32 %v1338_v14, %v1330_v28 }
0x12ff   :  { %3092 = vtanh.f32 %v3845_v34 }
0x1309   :  { %v3093_v35 = vpop.eup %3092 }
0x130a   :  { %1343 = vrot.lane.b32.xlu0 %v3093_v35, %s3289_s10 }
0x130c   :  { %v1490_v17 = vpop.permute.xlu0 %1489 }
0x130d   :  { %v3850_v43 = vadd.f32 %v1490_v17, %v1482_v15 }
0x130f   :  { %3094 = vtanh.f32 %v3850_v43 }
0x1314   :  { %v1642_v46 = vpop.permute.xlu1 %1641 }
0x1315   :  { %v3854_v49 = vadd.f32 %v1642_v46, %v1634_v45 }
0x1317   :  { %3096 = vtanh.f32 %v3854_v49 }
0x1319   :  { %v3095_v2 = vpop.eup %3094 }
0x131a   :  { %1495 = vrot.lane.b32.xlu1 %v3095_v2, %s3289_s10 }
0x1321   :  { %v3097_v51 = vpop.eup %3096 }
0x1322   :  { %1647 = vrot.lane.b32.xlu0 %v3097_v51, %s3289_s10 }
0x137c   :  { %v1344_v52 = vpop.permute.xlu0 %1343 }
0x137d   :  { %v3859_v20 = vmul.f32 %v1344_v52, %v1328_v1 }
0x137f   :  { %1503 = vrot.lane.b32.xlu0 %v3859_v20, %s3289_s10 }
0x138c   :  { %v1496_v53 = vpop.permute.xlu1 %1495 }
0x138d   :  { %v1498_v40 = vmul.f32 %v1496_v53, %v1480_v3 }
0x138f   :  { %1500 = vrot.lane.b32.xlu1 %v1498_v40, %s3297_s5  ;;  %1655 = vrot.lane.b32.xlu0 %v1498_v40, %s3289_s10 }
0x1394   :  { %v1648_v23 = vpop.permute.xlu0 %1647 }
0x1395   :  { %v1650_v55 = vmul.f32 %v1648_v23, %v1632_v11 }
0x1397   :  { %1652 = vrot.lane.b32.xlu1 %v1650_v55, %s3297_s5  ;;  %v1807_v56 = vpack.c.bf16 %v1650_v55, %v1650_v55 }
0x139b   :  { %1809 = vrot.lane.b32.xlu1 %v1807_v56, %s3297_s5 }
0x13f1   :  { %v1504_v18 = vpop.permute.xlu0 %1503 }
0x1401   :  { %v1501_v58 = vpop.permute.xlu1 %1500  ;;  %v1656_v61 = vpop.permute.xlu0 %1655 }
0x1402   :  { %v1506_v59 = vsel %vm105_vm1, %v1501_v58, %v1504_v18 }
0x1403   :  { %v1507_v60 = vpack.c.bf16 %v1506_v59, %v1506_v59 }
0x1405   :  { %2823 = vmatmul.mubr.msk.bf16.vlgmr.msra.gmra.mrb[32].mxu1 %vm265_vm2, %v1507_v60 }
0x1406   :  { %2835 = vmatpush3.bf16.msra.mxu1 %v3788_v37  ;;  %2842 = vmatprep.mubr.msk.bf16.mxu1 %vm3296_vm0, %v3295_v0 }
0x1407   :  { %2836 = vmatprep.subr.bf16.mxu1 %v3295_v0 }
0x1409   :  { %v1653_v41 = vpop.permute.xlu1 %1652 }
0x140a   :  { %2837 = vmatpush3.bf16.msra.mxu1 %v3794_v38  ;;  %v1658_v39 = vsel %vm105_vm1, %v1653_v41, %v1656_v61 }
0x140b   :  { %2838 = vmatprep.subr.bf16.mxu1 %v3295_v0  ;;  %v1659_v62 = vpack.c.bf16 %v1658_v39, %v1658_v39 }
0x140d   :  { %v1810_v63 = vpop.permute.xlu1 %1809 }
0x140e   :  { %2839 = vmatpush3.bf16.msra.mxu1 %v3798_v42 }
0x140f   :  { %2840 = vmatprep.subr.bf16.mxu1 %v3295_v0 }
0x1412   :  { %2841 = vmatpush3.bf16.msra.mxu1 %v3803_v44 }
0x1413   :  { %2858 = vmatprep.subr.bf16.mxu1 %v3295_v0 }
0x1415   :  { %2843 = vmatmul.mubr.msk.bf16.vlgmr.msra.gmra.mrb[36].mxu1 %vm265_vm2, %v1659_v62 }
0x1416   :  { %2859 = vmatpush3.bf16.msra.mxu1 %v3734_v33  ;;  %2862 = vmatprep.mubr.msk.bf16.mxu1 %vm3296_vm0, %v3295_v0  ;;  %v3144_v33 = vld [vmem:[#allocation17 + $0x18] sm:$0xff]  }
0x1417   :  { %2860 = vmatprep.subr.bf16.mxu1 %v3295_v0 }
0x141a   :  { %2861 = vmatpush3.bf16.msra.mxu1 %v3740_v25 }
0x141b   :  { %2878 = vmatprep.subr.bf16.mxu1 %v3295_v0 }
0x141d   :  { %2863 = vmatmul.mubr.msk.bf16.vlgmr.msra.gmra.mrb[40].mxu1 %vm105_vm1, %v1810_v63 }
0x141e   :  { %2879 = vmatpush3.bf16.msra.mxu1 %v3815_v12  ;;  %2886 = vmatprep.mubr.msk.bf16.mxu1 %vm3296_vm0, %v3295_v0  ;;  %v3900_v12 = vld [vmem:[%s4093_s6] ss:$0 sm:$0xff] }
0x141f   :  { %2880 = vmatprep.subr.bf16.mxu1 %v3295_v0 }
0x1422   :  { %2881 = vmatpush3.bf16.msra.mxu1 %v3821_v47 }
0x1423   :  { %2882 = vmatprep.subr.bf16.mxu1 %v3295_v0 }
0x1426   :  { %2883 = vmatpush3.bf16.msra.mxu1 %v3825_v48 }
0x1427   :  { %2884 = vmatprep.subr.bf16.mxu1 %v3295_v0 }
0x142a   :  { %2885 = vmatpush3.bf16.msra.mxu1 %v3144_v33 }
0x142b   :  { %2898 = vmatprep.subr.bf16.mxu1 %v3295_v0 }
0x14d8   :  { %v1545_v25 = vpop.f32.mrb[32].mxu1 }
0x14d9   :  { %v1546_v4 = vadd.f32 %v3900_v12, %v1545_v25  ;;  %v2824_v5 = vpop.f32.mrb[33].mxu1 }
0x14da   :  { %v1548_v47 = vpop.f32.mrb[34].mxu1 }
0x14db   :  { %3098 = vtanh.f32 %v1546_v4  ;;  %v2825_v6 = vpop.f32.mrb[35].mxu1  ;;  %v1551_v30 = vmul.f32 0.5, %v1546_v4 }
0x14e5   :  { %v3099_v8 = vpop.eup %3098 }
0x14e6   :  { %1558 = vrot.lane.b32.xlu0 %v3099_v8, %s3289_s10 }
0x14e8   :  { %v1697_v48 = vpop.f32.mrb[36].mxu1 }
0x14e9   :  { %v1698_v10 = vadd.f32 %v3836_v32, %v1697_v48  ;;  %v2844_v50 = vpop.f32.mrb[37].mxu1 }
0x14ea   :  { %v1700_v13 = vpop.f32.mrb[38].mxu1 }
0x14eb   :  { %3100 = vtanh.f32 %v1698_v10  ;;  %v2845_v1 = vpop.f32.mrb[39].mxu1  ;;  %v1703_v11 = vmul.f32 0.5, %v1698_v10 }
0x14f0   :  { %v1848_v57 = vpop.f32.mrb[40].mxu1 }
0x14f1   :  { %v1854_v19 = vadd.f32 %v1848_v57, %v1806_v16  ;;  %v2864_v21 = vpop.f32.mrb[41].mxu1 }
0x14f2   :  { %v1851_v22 = vpop.f32.mrb[42].mxu1 }
0x14f3   :  { %3102 = vtanh.f32 %v1854_v19  ;;  %v2865_v3 = vpop.f32.mrb[43].mxu1  ;;  %v1855_v35 = vmul.f32 0.5, %v1854_v19 }
0x14f4   :  { %3104 = vtanh.f32 %v1551_v30 }
0x14f5   :  { %v3101_v27 = vpop.eup %3100  ;;  %3106 = vtanh.f32 %v1703_v11 }
0x14f6   :  { %1710 = vrot.lane.b32.xlu1 %v3101_v27, %s3289_s10  ;;  %3108 = vtanh.f32 %v1855_v35 }
0x14fd   :  { %v3103_v29 = vpop.eup %3102 }
0x14fe   :  { %1862 = vrot.lane.b32.xlu0 %v3103_v29, %s3289_s10  ;;  %v3105_v31 = vpop.eup %3104 }
0x14ff   :  { %v1553_v24 = vadd.f32 1.0, %v3105_v31  ;;  %v3107_v15 = vpop.eup %3106 }
0x1500   :  { %v1705_v17 = vadd.f32 1.0, %v3107_v15  ;;  %v3109_v46 = vpop.eup %3108 }
0x1501   :  { %v1554_v26 = vmul.f32 0.5, %v1553_v24  ;;  %v1857_v52 = vadd.f32 1.0, %v3109_v46 }
0x1502   :  { %v1706_v45 = vmul.f32 0.5, %v1705_v17 }
0x1503   :  { %v1858_v53 = vmul.f32 0.5, %v1857_v52  ;;  %v1556_v55 = vmul.f32 %v1554_v26, %v3845_v34 }
0x1504   :  { %v1708_v59 = vmul.f32 %v1706_v45, %v3850_v43 }
0x1505   :  { %v1860_v61 = vmul.f32 %v1858_v53, %v3854_v49 }
0x1558   :  { %v1559_v28 = vpop.permute.xlu0 %1558 }
0x1559   :  { %v1561_v14 = vmul.f32 %v1559_v28, %v1554_v26 }
0x155b   :  { %1563 = vrot.lane.b32.xlu1 %v1561_v14, %s3297_s5 }
0x1568   :  { %v1711_v2 = vpop.permute.xlu1 %1710 }
0x1569   :  { %v1713_v51 = vmul.f32 %v1711_v2, %v1706_v45 }
0x156b   :  { %1715 = vrot.lane.b32.xlu0 %v1713_v51, %s3297_s5 }
0x1570   :  { %v1863_v40 = vpop.permute.xlu0 %1862 }
0x1571   :  { %v1865_v23 = vmul.f32 %v1863_v40, %v1858_v53 }
0x1573   :  { %1867 = vrot.lane.b32.xlu1 %v1865_v23, %s3297_s5 }
0x15cd   :  { %v1564_v56 = vpop.permute.xlu1 %1563 }
0x15ce   :  { %v3911_v18 = vadd.f32 %v1564_v56, %v1556_v55 }
0x15d0   :  { %3110 = vtanh.f32 %v3911_v18 }
0x15da   :  { %v3111_v58 = vpop.eup %3110 }
0x15db   :  { %1569 = vrot.lane.b32.xlu0 %v3111_v58, %s3289_s10 }
0x15dd   :  { %v1716_v60 = vpop.permute.xlu0 %1715 }
0x15de   :  { %v3916_v41 = vadd.f32 %v1716_v60, %v1708_v59 }
0x15e0   :  { %3112 = vtanh.f32 %v3916_v41 }
0x15e5   :  { %v1868_v39 = vpop.permute.xlu1 %1867 }
0x15e6   :  { %v3920_v62 = vadd.f32 %v1868_v39, %v1860_v61 }
0x15e8   :  { %3114 = vtanh.f32 %v3920_v62 }
0x15ea   :  { %v3113_v34 = vpop.eup %3112 }
0x15eb   :  { %1721 = vrot.lane.b32.xlu1 %v3113_v34, %s3289_s10 }
0x15f2   :  { %v3115_v63 = vpop.eup %3114 }
0x15f3   :  { %1873 = vrot.lane.b32.xlu0 %v3115_v63, %s3289_s10 }
0x164d   :  { %v1570_v33 = vpop.permute.xlu0 %1569 }
0x164e   :  { %v3925_v43 = vmul.f32 %v1570_v33, %v1554_v26 }
0x1650   :  { %1729 = vrot.lane.b32.xlu0 %v3925_v43, %s3289_s10 }
0x165d   :  { %v1722_v25 = vpop.permute.xlu1 %1721 }
0x165e   :  { %v1724_v4 = vmul.f32 %v1722_v25, %v1706_v45 }
0x1660   :  { %1726 = vrot.lane.b32.xlu1 %v1724_v4, %s3297_s5  ;;  %1881 = vrot.lane.b32.xlu0 %v1724_v4, %s3289_s10 }
0x1665   :  { %v1874_v49 = vpop.permute.xlu0 %1873 }
0x1666   :  { %v1876_v5 = vmul.f32 %v1874_v49, %v1858_v53 }
0x1668   :  { %1878 = vrot.lane.b32.xlu1 %v1876_v5, %s3297_s5 }
0x16c2   :  { %v1730_v47 = vpop.permute.xlu0 %1729 }
0x16d2   :  { %v1727_v6 = vpop.permute.xlu1 %1726  ;;  %v1882_v50 = vpop.permute.xlu0 %1881 }
0x16d3   :  { %v1732_v8 = vsel %vm105_vm1, %v1727_v6, %v1730_v47  ;;  %v3974_v6 = vld [vmem:[%s4094_s7] sm:$0xff]  }
0x16d4   :  { %v1733_v48 = vpack.c.bf16 %v1732_v8, %v1732_v8 }
0x16d6   :  { %2855 = vmatmul.mubr.msk.bf16.vlgmr.msra.gmra.mrb[40].mxu0 %vm265_vm2, %v1733_v48 }
0x16d7   :  { %2867 = vmatpush3.bf16.msra.mxu0 %v3788_v37  ;;  %2874 = vmatprep.mubr.msk.bf16.mxu0 %vm3296_vm0, %v3295_v0 }
0x16d8   :  { %2868 = vmatprep.subr.bf16.mxu0 %v3295_v0 }
0x16da   :  { %v1879_v10 = vpop.permute.xlu1 %1878 }
0x16db   :  { %2031 = vst.msk [vmem:[#allocation3] sm:$0xff] %vm105_vm1, %v1879_v10  ;;  %2869 = vmatpush3.bf16.msra.mxu0 %v3794_v38  ;;  %v1884_v13 = vsel %vm105_vm1, %v1879_v10, %v1882_v50 }
0x16dc   :  { %2870 = vmatprep.subr.bf16.mxu0 %v3295_v0  ;;  %v1885_v37 = vpack.c.bf16 %v1884_v13, %v1884_v13 }
0x16df   :  { %2871 = vmatpush3.bf16.msra.mxu0 %v3798_v42 }
0x16e0   :  { %2872 = vmatprep.subr.bf16.mxu0 %v3295_v0 }
0x16e3   :  { %2873 = vmatpush3.bf16.msra.mxu0 %v3803_v44 }
0x16e4   :  { %2890 = vmatprep.subr.bf16.mxu0 %v3295_v0 }
0x16e6   :  { %2875 = vmatmul.mubr.msk.bf16.vlgmr.msra.gmra.mrb[44].mxu0 %vm265_vm2, %v1885_v37 }
0x16e7   :  { %2894 = vmatprep.mubr.msk.bf16.mxu0 %vm3296_vm0, %v3295_v0  ;;  %2891 = vmatpush3.bf16.msra.mxu0 %v3974_v6 }
0x16e8   :  { %2892 = vmatprep.subr.bf16.mxu0 %v3295_v0 }
0x17a9   :  { %v1771_v38 = vpop.f32.mrb[40].mxu0 }
0x17aa   :  { %v1772_v1 = vadd.f32 %v3900_v12, %v1771_v38  ;;  %v2856_v16 = vpop.f32.mrb[41].mxu0 }
0x17ab   :  { %v1774_v42 = vpop.f32.mrb[42].mxu0 }
0x17ac   :  { %3116 = vtanh.f32 %v1772_v1  ;;  %v2857_v57 = vpop.f32.mrb[43].mxu0  ;;  %v1777_v30 = vmul.f32 0.5, %v1772_v1 }
0x17b6   :  { %v3117_v19 = vpop.eup %3116 }
0x17b7   :  { %1784 = vrot.lane.b32.xlu1 %v3117_v19, %s3289_s10 }
0x17b9   :  { %v1923_v21 = vpop.f32.mrb[44].mxu0 }
0x17ba   :  { %v1924_v44 = vadd.f32 %v3836_v32, %v1923_v21  ;;  %v2876_v22 = vpop.f32.mrb[45].mxu0 }
0x17bb   :  { %v1926_v3 = vpop.f32.mrb[46].mxu0 }
0x17bc   :  { %3118 = vtanh.f32 %v1924_v44  ;;  %v2877_v27 = vpop.f32.mrb[47].mxu0  ;;  %v1929_v11 = vmul.f32 0.5, %v1924_v44 }
0x17bd   :  { %3120 = vtanh.f32 %v1777_v30 }
0x17be   :  { %3122 = vtanh.f32 %v1929_v11 }
0x17c6   :  { %v3119_v29 = vpop.eup %3118 }
0x17c7   :  { %1936 = vrot.lane.b32.xlu0 %v3119_v29, %s3289_s10  ;;  %v3121_v31 = vpop.eup %3120 }
0x17c8   :  { %v1779_v24 = vadd.f32 1.0, %v3121_v31  ;;  %v3123_v35 = vpop.eup %3122 }
0x17c9   :  { %v1931_v32 = vadd.f32 1.0, %v3123_v35 }
0x17ca   :  { %v1780_v26 = vmul.f32 0.5, %v1779_v24 }
0x17cb   :  { %v1932_v15 = vmul.f32 0.5, %v1931_v32  ;;  %v2053_v32 = vld [vmem:[%s4095_s8] sm:$0xff]  ;;  %s3299_s8 = smov [#allocation18]  }
0x17cc   :  { %v1782_v46 = vmul.f32 %v1780_v26, %v3911_v18  ;;  %s2446_s18 = sshll.u32 %s3299_s8, 4  ;;  %s2447_s18 = int_to_ptr.vmem [resolvable:$true] %s2446_s18 }
0x17cd   :  { %v1934_v53 = vmul.f32 %v1932_v15, %v3916_v41  ;;  %s3256_s19 = scalar_lea.vmem %s2447_s18, 1024  ;;  %p3261_p13 = scmp.lt.s32.totalorder %s2447_s18, %s2447_s18 }
0x17ce   :  { %p3257_p12 = scmp.ne.s32.totalorder %s2447_s18, %s3256_s19  ;;  %p3262_p0 = scmp.lt.s32.totalorder %s3256_s19, %s3256_s19 }
0x17d0   :  { %p3263_p1 = por %p3262_p0, %p3261_p13 }
0x17d2   :  { %p3264_p2 = pnand %p3263_p1, %p3257_p12 }
0x1829   :  { %v1785_v28 = vpop.permute.xlu1 %1784 }
0x182a   :  { %v1787_v14 = vmul.f32 %v1785_v28, %v1780_v26 }
0x182c   :  { %1789 = vrot.lane.b32.xlu1 %v1787_v14, %s3297_s5 }
0x1839   :  { %v1937_v17 = vpop.permute.xlu0 %1936 }
0x183a   :  { %v1939_v45 = vmul.f32 %v1937_v17, %v1932_v15 }
0x183c   :  { %1941 = vrot.lane.b32.xlu0 %v1939_v45, %s3297_s5 }
0x189e   :  { %v1790_v2 = vpop.permute.xlu1 %1789 }
0x189f   :  { %v1792_v51 = vadd.f32 %v1790_v2, %v1782_v46 }
0x18a1   :  { %3124 = vtanh.f32 %v1792_v51 }
0x18ab   :  { %v3125_v52 = vpop.eup %3124 }
0x18ac   :  { %1795 = vrot.lane.b32.xlu1 %v3125_v52, %s3289_s10 }
0x18ae   :  { %v1942_v40 = vpop.permute.xlu0 %1941 }
0x18af   :  { %v3958_v23 = vadd.f32 %v1942_v40, %v1934_v53 }
0x18b1   :  { %3126 = vtanh.f32 %v3958_v23 }
0x18bb   :  { %v3127_v55 = vpop.eup %3126 }
0x18bc   :  { %1947 = vrot.lane.b32.xlu0 %v3127_v55, %s3289_s10 }
0x191e   :  { %v1796_v56 = vpop.permute.xlu1 %1795 }
0x191f   :  { %v1798_v58 = vmul.f32 %v1796_v56, %v1780_v26 }
0x1921   :  { %1955 = vrot.lane.b32.xlu0 %v1798_v58, %s3289_s10 }
0x192e   :  { %v1948_v18 = vpop.permute.xlu0 %1947 }
0x192f   :  { %v1950_v59 = vmul.f32 %v1948_v18, %v1932_v15 }
0x1931   :  { %1952 = vrot.lane.b32.xlu1 %v1950_v59, %s3297_s5 }
0x1993   :  { %v1956_v60 = vpop.permute.xlu0 %1955 }
0x19a3   :  { %v1953_v61 = vpop.permute.xlu1 %1952 }
0x19a4   :  { %v1958_v41 = vsel %vm105_vm1, %v1953_v61, %v1956_v60  ;;  %2037 = vst.msk [vmem:[#allocation5] sm:$0xff] %vm105_vm1, %v1953_v61 }
0x19a5   :  { %v1959_v39 = vpack.c.bf16 %v1958_v41, %v1958_v41 }
0x19a7   :  { %2887 = vmatmul.mubr.msk.bf16.vlgmr.msra.gmra.mrb[44].mxu1 %vm265_vm2, %v1959_v39 }
0x19a8   :  { %2902 = vmatprep.mubr.msk.bf16.mxu1 %vm3296_vm0, %v3295_v0  ;;  %2899 = vmatpush3.bf16.msra.mxu1 %v3974_v6 }
0x19a9   :  { %2900 = vmatprep.subr.bf16.mxu1 %v3295_v0 }
0x1a7a   :  { %v1997_v34 = vpop.f32.mrb[44].mxu1 }
0x1a7b   :  { %v1998_v63 = vadd.f32 %v3900_v12, %v1997_v34  ;;  %v2888_v33 = vpop.f32.mrb[45].mxu1  ;;  %v3983_v12 = vld [vmem:[%s4094_s7 + $0x8] sm:$0xff]   ;;  %s3298_s7 = smov 96  }
0x1a7c   :  { %v2000_v25 = vpop.f32.mrb[46].mxu1  ;;  %2893 = vmatpush3.bf16.msra.mxu0 %v3983_v12  ;;  %2901 = vmatpush3.bf16.msra.mxu1 %v3983_v12 }
0x1a7d   :  { %3128 = vtanh.f32 %v1998_v63  ;;  %v2889_v4 = vpop.f32.mrb[47].mxu1  ;;  %v2003_v5 = vmul.f32 0.5, %v1998_v63  ;;  %2906 = vmatprep.subr.bf16.mxu0 %v3295_v0  ;;  %2914 = vmatprep.subr.bf16.mxu1 %v3295_v0 }
0x1a7f   :  { %3130 = vtanh.f32 %v2003_v5 }
0x1a87   :  { %v3129_v49 = vpop.eup %3128 }
0x1a88   :  { %2010 = vrot.lane.b32.xlu1 %v3129_v49, %s3289_s10 }
0x1a89   :  { %v3131_v47 = vpop.eup %3130 }
0x1a8a   :  { %v2005_v8 = vadd.f32 1.0, %v3131_v47 }
0x1a8c   :  { %v3985_v48 = vmul.f32 0.5, %v2005_v8 }
0x1a8e   :  { %v2008_v13 = vmul.f32 %v3985_v48, %v1792_v51 }
0x1afa   :  { %v2011_v10 = vpop.permute.xlu1 %2010 }
0x1afb   :  { %v2013_v50 = vmul.f32 %v2011_v10, %v3985_v48 }
0x1afd   :  { %2015 = vrot.lane.b32.xlu0 %v2013_v50, %s3297_s5 }
0x1b01   :  { %445 = vrot.lane.b32.xlu0 %v3588_v9, %s3297_s5 }
0x1b05   :  { %896 = vrot.lane.b32.xlu0 %v3712_v54, %s3297_s5 }
0x1b09   :  { %1348 = vrot.lane.b32.xlu0 %v3859_v20, %s3297_s5 }
0x1b0d   :  { %1800 = vrot.lane.b32.xlu0 %v1798_v58, %s3297_s5 }
0x1b11   :  { %2033 = vrot.lane.b32.xlu0 %v3920_v62, %s3298_s7 }
0x1b6f   :  { %v2016_v37 = vpop.permute.xlu0 %2015 }
0x1b70   :  { %v2018_v38 = vadd.f32 %v2016_v37, %v2008_v13 }
0x1b72   :  { %3132 = vtanh.f32 %v2018_v38  ;;  %2045 = vrot.lane.b32.xlu0 %v2018_v38, %s3298_s7 }
0x1b73   :  { %v446_v9 = vpop.permute.xlu0 %445 }
0x1b74   :  { %448 = vst.msk [vmem:[#allocation2] sm:$0xff] %vm105_vm1, %v446_v9 }
0x1b77   :  { %v897_v54 = vpop.permute.xlu0 %896 }
0x1b78   :  { %900 = vst.msk [vmem:[#allocation2 + $0x10] sm:$0xff] %vm105_vm1, %v897_v54 }
0x1b7b   :  { %v1349_v20 = vpop.permute.xlu0 %1348  ;;  %v2054_v1 = vld [vmem:[#allocation2] sm:$0xff] }
0x1b7c   :  { %v3133_v16 = vpop.eup %3132  ;;  %1352 = vst.msk [vmem:[#allocation2 + $0x20] sm:$0xff] %vm105_vm1, %v1349_v20  ;;  %v2055_v42 = vpack.c.bf16 %v2054_v1, %v2054_v1 }
0x1b7d   :  { %2021 = vrot.lane.b32.xlu1 %v3133_v16, %s3289_s10 }
0x1b7e   :  { %2895 = vmatmul.mubr.msk.bf16.vlgmr.msra.gmra.mrb[48].mxu0 %vm105_vm1, %v2055_v42 }
0x1b7f   :  { %2907 = vmatpush3.bf16.msra.mxu0 %v3974_v6  ;;  %v1801_v62 = vpop.permute.xlu0 %1800  ;;  %2910 = vmatprep.mubr.msk.bf16.mxu0 %vm3296_vm0, %v3295_v0  ;;  %v2159_v57 = vld [vmem:[#allocation2 + $0x10] sm:$0xff] }
0x1b80   :  { %1804 = vst.msk [vmem:[#allocation2 + $0x30] sm:$0xff] %vm105_vm1, %v1801_v62  ;;  %2908 = vmatprep.subr.bf16.mxu0 %v3295_v0  ;;  %v2160_v21 = vpack.c.bf16 %v2159_v57, %v2159_v57 }
0x1b81   :  { %670 = vrot.lane.b32.xlu1 %v3650_v36, %s3297_s5 }
0x1b83   :  { %2909 = vmatpush3.bf16.msra.mxu0 %v3983_v12  ;;  %v2034_v19 = vpop.permute.xlu0 %2033  ;;  %v2253_v36 = vld [vmem:[#allocation2 + $0x20] sm:$0xff] }
0x1b84   :  { %2036 = vst.msk [vmem:[#allocation4] sm:$0xff] %vm105_vm1, %v2034_v19  ;;  %2922 = vmatprep.subr.bf16.mxu0 %v3295_v0  ;;  %v2254_v44 = vpack.c.bf16 %v2253_v36, %v2253_v36 }
0x1b85   :  { %1122 = vrot.lane.b32.xlu1 %v3778_v7, %s3297_s5 }
0x1b86   :  { %2911 = vmatmul.mubr.msk.bf16.vlgmr.msra.gmra.mrb[52].mxu0 %vm105_vm1, %v2160_v21 }
0x1b87   :  { %2923 = vmatpush3.bf16.msra.mxu0 %v3974_v6  ;;  %2926 = vmatprep.mubr.msk.bf16.mxu0 %vm3296_vm0, %v3295_v0  ;;  %v2347_v7 = vld [vmem:[#allocation2 + $0x30] sm:$0xff] }
0x1b88   :  { %2924 = vmatprep.subr.bf16.mxu0 %v3295_v0  ;;  %v2348_v22 = vpack.c.bf16 %v2347_v7, %v2347_v7 }
0x1b89   :  { %1574 = vrot.lane.b32.xlu1 %v3925_v43, %s3297_s5 }
0x1b8b   :  { %2925 = vmatpush3.bf16.msra.mxu0 %v3983_v12 }
0x1b8c   :  { %2938 = vmatprep.subr.bf16.mxu0 %v3295_v0 }
0x1b8e   :  { %2927 = vmatmul.mubr.msk.bf16.vlgmr.msra.gmra.mrb[56].mxu0 %vm105_vm1, %v2254_v44 }
0x1b8f   :  { %2939 = vmatpush3.bf16.msra.mxu0 %v3974_v6  ;;  %2942 = vmatprep.mubr.msk.bf16.mxu0 %vm3296_vm0, %v3295_v0 }
0x1b90   :  { %2940 = vmatprep.subr.bf16.mxu0 %v3295_v0 }
0x1b93   :  { %2941 = vmatpush3.bf16.msra.mxu0 %v3983_v12 }
0x1b96   :  { %2943 = vmatmul.mubr.msk.bf16.vlgmr.msra.gmra.mrb[60].mxu0 %vm105_vm1, %v2348_v22 }
0x1be4   :  { %v2046_v43 = vpop.permute.xlu0 %2045 }
0x1be5   :  { %2048 = vst.msk [vmem:[#allocation8] sm:$0xff] %vm105_vm1, %v2046_v43 }
0x1bef   :  { %v2022_v3 = vpop.permute.xlu1 %2021 }
0x1bf0   :  { %v2024_v27 = vmul.f32 %v2022_v3, %v3985_v48 }
0x1bf2   :  { %2026 = vrot.lane.b32.xlu1 %v2024_v27, %s3297_s5 }
0x1bf3   :  { %v671_v29 = vpop.permute.xlu1 %670 }
0x1bf4   :  { %674 = vst.msk [vmem:[#allocation2 + $0x8] sm:$0xff] %vm105_vm1, %v671_v29 }
0x1bf6   :  { %2039 = vrot.lane.b32.xlu1 %v3958_v23, %s3298_s7 }
0x1bf7   :  { %v1123_v30 = vpop.permute.xlu1 %1122 }
0x1bf8   :  { %1126 = vst.msk [vmem:[#allocation2 + $0x18] sm:$0xff] %vm105_vm1, %v1123_v30 }
0x1bfb   :  { %v1575_v31 = vpop.permute.xlu1 %1574  ;;  %v2112_v11 = vld [vmem:[#allocation2 + $0x8] sm:$0xff] }
0x1bfc   :  { %1578 = vst.msk [vmem:[#allocation2 + $0x28] sm:$0xff] %vm105_vm1, %v1575_v31  ;;  %v2113_v24 = vpack.c.bf16 %v2112_v11, %v2112_v11 }
0x1bfe   :  { %2903 = vmatmul.mubr.msk.bf16.vlgmr.msra.gmra.mrb[48].mxu1 %vm105_vm1, %v2113_v24 }
0x1bff   :  { %2915 = vmatpush3.bf16.msra.mxu1 %v3974_v6  ;;  %2918 = vmatprep.mubr.msk.bf16.mxu1 %vm3296_vm0, %v3295_v0  ;;  %v2206_v26 = vld [vmem:[#allocation2 + $0x18] sm:$0xff] }
0x1c00   :  { %2916 = vmatprep.subr.bf16.mxu1 %v3295_v0  ;;  %v2207_v28 = vpack.c.bf16 %v2206_v26, %v2206_v26 }
0x1c03   :  { %2917 = vmatpush3.bf16.msra.mxu1 %v3983_v12  ;;  %v2300_v14 = vld [vmem:[#allocation2 + $0x28] sm:$0xff] }
0x1c04   :  { %2930 = vmatprep.subr.bf16.mxu1 %v3295_v0  ;;  %v2301_v35 = vpack.c.bf16 %v2300_v14, %v2300_v14 }
0x1c06   :  { %2919 = vmatmul.mubr.msk.bf16.vlgmr.msra.gmra.mrb[52].mxu1 %vm105_vm1, %v2207_v28 }
0x1c07   :  { %2931 = vmatpush3.bf16.msra.mxu1 %v3974_v6  ;;  %2934 = vmatprep.mubr.msk.bf16.mxu1 %vm3296_vm0, %v3295_v0 }
0x1c08   :  { %2932 = vmatprep.subr.bf16.mxu1 %v3295_v0 }
0x1c0b   :  { %2933 = vmatpush3.bf16.msra.mxu1 %v3983_v12 }
0x1c0c   :  { %2946 = vmatprep.subr.bf16.mxu1 %v3295_v0 }
0x1c0e   :  { %2935 = vmatmul.mubr.msk.bf16.vlgmr.msra.gmra.mrb[56].mxu1 %vm105_vm1, %v2301_v35 }
0x1c0f   :  { %2947 = vmatpush3.bf16.msra.mxu1 %v3974_v6  ;;  %2950 = vmatprep.mubr.msk.bf16.mxu1 %vm3296_vm0, %v3295_v0 }
0x1c10   :  { %2948 = vmatprep.subr.bf16.mxu1 %v3295_v0 }
0x1c13   :  { %2949 = vmatpush3.bf16.msra.mxu1 %v3983_v12 }
0x1c51   :  { %v2105_v15 = vpop.f32.mrb[48].mxu0 }
0x1c52   :  { %v2106_v17 = vadd.f32 %v2105_v15, %v2053_v32  ;;  %v2896_v45 = vpop.f32.mrb[49].mxu0 }
0x1c53   :  { %v2108_v46 = vpop.f32.mrb[50].mxu0 }
0x1c54   :  { %2111 = vst [vmem:[#allocation18] sm:$0xff] %v2106_v17  ;;  %v2897_v2 = vpop.f32.mrb[51].mxu0 }
0x1c59   :  { %v2198_v51 = vpop.f32.mrb[52].mxu0 }
0x1c5a   :  { %v2199_v52 = vadd.f32 %v2198_v51, %v2053_v32  ;;  %v2912_v53 = vpop.f32.mrb[53].mxu0 }
0x1c5b   :  { %v2201_v40 = vpop.f32.mrb[54].mxu0 }
0x1c5c   :  { %2205 = vst [vmem:[#allocation18 + $0x10] sm:$0xff] %v2199_v52  ;;  %v2913_v23 = vpop.f32.mrb[55].mxu0 }
0x1c61   :  { %v2292_v55 = vpop.f32.mrb[56].mxu0 }
0x1c62   :  { %v2293_v0 = vadd.f32 %v2292_v55, %v2053_v32  ;;  %v2928_v56 = vpop.f32.mrb[57].mxu0 }
0x1c63   :  { %v2295_v58 = vpop.f32.mrb[58].mxu0 }
0x1c64   :  { %2299 = vst [vmem:[#allocation18 + $0x20] sm:$0xff] %v2293_v0  ;;  %v2027_v18 = vpop.permute.xlu1 %2026  ;;  %v2929_v59 = vpop.f32.mrb[59].mxu0 }
0x1c65   :  { %2030 = vst.msk [vmem:[#allocation2 + $0x38] sm:$0xff] %vm105_vm1, %v2027_v18  ;;  %2043 = vst.msk [vmem:[#allocation7] sm:$0xff] %vm105_vm1, %v2027_v18 }
0x1c68   :  { %v2040_v60 = vpop.permute.xlu1 %2039 }
0x1c69   :  { %2042 = vst.msk [vmem:[#allocation6] sm:$0xff] %vm105_vm1, %v2040_v60  ;;  %v2386_v61 = vpop.f32.mrb[60].mxu0 }
0x1c6a   :  { %v2387_v41 = vadd.f32 %v2386_v61, %v2053_v32  ;;  %v2944_v39 = vpop.f32.mrb[61].mxu0 }
0x1c6b   :  { %v2389_v34 = vpop.f32.mrb[62].mxu0 }
0x1c6c   :  { %2393 = vst [vmem:[#allocation18 + $0x30] sm:$0xff] %v2387_v41  ;;  %v2945_v63 = vpop.f32.mrb[63].mxu0  ;;  %v2394_v33 = vld [vmem:[#allocation2 + $0x38] sm:$0xff] }
0x1c6d   :  { %v2395_v25 = vpack.c.bf16 %v2394_v33, %v2394_v33 }
0x1c6f   :  { %2951 = vmatmul.mubr.msk.bf16.vlgmr.msra.gmra.mrb[60].mxu1 %vm105_vm1, %v2395_v25 }
0x1cd1   :  { %v2151_v4 = vpop.f32.mrb[48].mxu1 }
0x1cd2   :  { %v2152_v49 = vadd.f32 %v2151_v4, %v2053_v32  ;;  %v2904_v5 = vpop.f32.mrb[49].mxu1 }
0x1cd3   :  { %v2154_v47 = vpop.f32.mrb[50].mxu1 }
0x1cd4   :  { %2158 = vst [vmem:[#allocation18 + $0x8] sm:$0xff] %v2152_v49  ;;  %v2905_v6 = vpop.f32.mrb[51].mxu1 }
0x1cd9   :  { %v2245_v8 = vpop.f32.mrb[52].mxu1 }
0x1cda   :  { %v2246_v12 = vadd.f32 %v2245_v8, %v2053_v32  ;;  %v2920_v48 = vpop.f32.mrb[53].mxu1 }
0x1cdb   :  { %v2248_v10 = vpop.f32.mrb[54].mxu1 }
0x1cdc   :  { %2252 = vst [vmem:[#allocation18 + $0x18] sm:$0xff] %v2246_v12  ;;  %v2921_v50 = vpop.f32.mrb[55].mxu1 }
0x1ce1   :  { %v2339_v13 = vpop.f32.mrb[56].mxu1 }
0x1ce2   :  { %v2340_v37 = vadd.f32 %v2339_v13, %v2053_v32  ;;  %v2936_v38 = vpop.f32.mrb[57].mxu1 }
0x1ce3   :  { %v2342_v9 = vpop.f32.mrb[58].mxu1 }
0x1ce4   :  { %2346 = vst [vmem:[#allocation18 + $0x28] sm:$0xff] %v2340_v37  ;;  %v2937_v54 = vpop.f32.mrb[59].mxu1 }
0x1d42   :  { %v2433_v20 = vpop.f32.mrb[60].mxu1 }
0x1d43   :  { %v2434_v1 = vadd.f32 %v2433_v20, %v2053_v32  ;;  %v2952_v16 = vpop.f32.mrb[61].mxu1 }
0x1d44   :  { %v2436_v42 = vpop.f32.mrb[62].mxu1 }
0x1d45   :  { %2440 = vst [vmem:[#allocation18 + $0x38] sm:$0xff] %v2434_v1  ;;  %v2953_v62 = vpop.f32.mrb[63].mxu1 }
0x1d46   :  { %3267 = shalt.err (!%p3264_p2)
}
0x1d47   :  { %s3268_s23 = scalar_lea.hbm %s4096_s9, 1024 }
0x1d48   :  { %p3269_p3 = scmp.ne.s32.totalorder %s4096_s9, %s3268_s23  ;;  %p3272_p4 = scmp.lt.u32.totalorder %s3268_s23, %s4096_s9 }
0x1d4a   :  { %p3274_p5 = pnand %p3272_p4, %p3269_p3 }
0x1d4c   :  { %3277 = shalt.err (!%p3274_p5)
}
0x1d4d   :  { %2452 = dma.vmem_to_hbm [thread:$0]  %s2447_s18, 1024, %s4096_s9, [#allocation11], %s3291_s3, %s3291_s3, %s3292_s22  }
0x1d4e   :  { %3284 = dma.done.wait [#allocation11], 1024  }
0x1d4f   :  { %3285 = vsyncadd [#allocation11], 4294966272 }
0x1d50   :  { %2456 = vsyncpa [#allocation10], 1 }
0x1d51   :  { %2457 = vsyncpa [#allocation13], 1 }
0x1d52   :  { %2458 = vsyncpa [#allocation16], 1 }
0x1d53   :  { %2459 = vsyncpa [#allocation11], 1 }

</bundles_post_ra>
